<compile_context>
chip_gen: v7x
topology: tpu7x:2x2x1
jax: 0.10.0
libtpu: 0.0.40
codegen_flags: <defaults>
</compile_context>

<pallas_src>
import jax
import jax.numpy as jnp
from jax import lax
from jax.experimental import pallas as pl
from jax.experimental.pallas import tpu as pltpu


# ----------------------------------------------------------------------------
# helpers
# ----------------------------------------------------------------------------
def _round_up(n, m=128):
    return ((n + m - 1) // m) * m


def _conv_toeplitz(w, hi, wi, pad):
    """Dense matrix T with flat_out = flat_in @ T for Conv2d(stride=1).

    w: (Cout, Cin, k, k). Rows of T are indexed by the NCHW-flattened input
    (ci, y, x); columns by the NCHW-flattened output (co, yo, xo) — the same
    ordering PyTorch's .view(batch, -1) uses.
    """
    cout, cin, k, _ = w.shape
    n_in = cin * hi * wi
    eye = jnp.eye(n_in, dtype=jnp.float32).reshape(n_in, cin, hi, wi)
    out = lax.conv_general_dilated(
        eye, w.astype(jnp.float32), window_strides=(1, 1),
        padding=((pad, pad), (pad, pad)),
        dimension_numbers=("NCHW", "OIHW", "NCHW"))
    _, _, ho, wo = out.shape
    return out.reshape(n_in, cout * ho * wo), ho, wo


def _convT_eq_weight(wt):
    """ConvTranspose2d(stride=1) == Conv2d with flipped, channel-swapped
    weight and padding k-1-p.  wt: (Cin, Cout, k, k) -> (Cout, Cin, k, k)."""
    return jnp.flip(wt, axis=(2, 3)).transpose(1, 0, 2, 3)


def _pad_weight(t, kp, np_):
    k, n = t.shape
    return jnp.pad(t, ((0, kp - k), (0, np_ - n))).astype(jnp.bfloat16)


def _bias_row(vals, width, sentinel_to=None):
    """One packed bias row of length `width` (f32); optional -1e30 sentinel on
    cols [len(vals), sentinel_to) so padded output columns never win max."""
    v = jnp.asarray(vals, jnp.float32)
    row = jnp.zeros((width,), jnp.float32).at[: v.shape[0]].set(v)
    if sentinel_to is not None:
        row = row.at[v.shape[0]:sentinel_to].set(-1e30)
    return row


# argument order shared by prepare_params / the kernel / the pallas_call site
_VMEM_KEYS = ("t1f", "t2", "ball")                    # auto-DMA'd VMEM inputs
_ANY_KEYS = ("t3", "wl1", "wl2", "tt1", "tt2", "tt3")  # HBM, manual async copy
_ARG_KEYS = _VMEM_KEYS + _ANY_KEYS
_WEIGHT_KEYS = tuple(k for k in _ARG_KEYS if k != "ball")


# ----------------------------------------------------------------------------
# fused Pallas kernel: the whole forward pass in one invocation
# ----------------------------------------------------------------------------
def _fused_qvalue_kernel(x_ref, t1f_ref, t2_ref, ball_ref,
                         t3_hbm, wl1_hbm, wl2_hbm, tt1_hbm, tt2_hbm, tt3_hbm,
                         q_ref, idx_ref,
                         t3_v, wl1_v, wl2_v, tt1_v, tt2_v, tt3_v, dma_sems):
    # Kick off all decoder/linear weight DMAs now so they overlap with the
    # encoder matmuls; each one is waited on right before its consuming layer.
    copies = []
    for i, (src, dst) in enumerate(((t3_hbm, t3_v), (wl1_hbm, wl1_v),
                                    (wl2_hbm, wl2_v), (tt1_hbm, tt1_v),
                                    (tt2_hbm, tt2_v), (tt3_hbm, tt3_v))):
        cp = pltpu.make_async_copy(src, dst, dma_sems.at[i])
        cp.start()
        copies.append(cp)

    ball = ball_ref[...]                                     # (8, 896) f32

    def mm(h_f32, w_ref):
        return jnp.dot(h_f32.astype(jnp.bfloat16), w_ref[...],
                       preferred_element_type=jnp.float32)

    def layer(h_f32, w_ref, bias_row, relu=True):
        n = w_ref.shape[1]
        y = mm(h_f32, w_ref) + ball[bias_row:bias_row + 1, :n]
        return jnp.maximum(y, 0.0) if relu else y

    x = x_ref[...]                                           # (Bp, k0p) bf16

    # conv1(5x5, pad 3) + ReLU + MaxPool2d(2,2): ONE matmul against the fused
    # (k0p, 4*512) matrix, then max over the four lane-aligned phase slabs
    # (max commutes with the per-channel bias and ReLU).
    nslab = t1f_ref.shape[1] // 4
    p4 = jnp.dot(x, t1f_ref[...], preferred_element_type=jnp.float32)
    p = jnp.maximum(
        jnp.maximum(p4[:, 0:nslab], p4[:, nslab:2 * nslab]),
        jnp.maximum(p4[:, 2 * nslab:3 * nslab], p4[:, 3 * nslab:4 * nslab]))
    h = jnp.maximum(p + ball[0:1, :nslab], 0.0)              # (Bp, 512) valid 400

    h = layer(h, t2_ref, 1)                                  # conv2 3x3 p1   (512)
    copies[0].wait()
    h = layer(h, t3_v, 2)                                    # conv3 3x3 p1   (896)
    copies[1].wait()
    h = layer(h, wl1_v, 3)                                   # Linear 800->500 (512)
    copies[2].wait()
    h = layer(h, wl2_v, 4)                                   # Linear 500->800 (896)
    copies[3].wait()
    h = layer(h, tt1_v, 5)                                   # convT1 3x3 p1  (512)
    copies[4].wait()
    h = layer(h, tt2_v, 6)                                   # convT2 3x3 p1  (512)
    copies[5].wait()
    # Upsample(x2, nearest) + ReLU (no-op on post-ReLU data) folded into the
    # final ConvTranspose Toeplitz; padded columns carry a -1e30 bias so the
    # max/argmax below ignore them automatically.
    y = layer(h, tt3_v, 7, relu=False)                       # (Bp, 128) valid 64

    # torch.max(x.view(B, -1), dim=-1): value + first-occurrence argmax.
    m = jnp.max(y, axis=-1, keepdims=True)
    ids = lax.broadcasted_iota(jnp.int32, y.shape, 1)
    idx = jnp.min(jnp.where(y == m, ids, jnp.int32(y.shape[1])),
                  axis=-1, keepdims=True)
    q_ref[...] = m
    idx_ref[...] = idx


# ----------------------------------------------------------------------------
# one-time parameter preparation (weight layout / Toeplitz construction)
# ----------------------------------------------------------------------------
def prepare_params(params, in_channels, H=8, W=8):
    assert H == 8 and W == 8, "Linear(32*25, 500) requires an 8x8 spatial input"
    k0 = in_channels * H * W
    k0p = _round_up(k0)
    n400, n500 = _round_up(16 * 25), _round_up(500)          # 512, 512
    n800, n64 = _round_up(32 * 25), _round_up(64)            # 896, 128
    bw = n800                                                # packed bias width

    # --- encoder ---
    t1, h1, w1 = _conv_toeplitz(params["w1"], H, W, pad=3)   # (k0, 16*10*10)
    assert h1 == 10 and w1 == 10
    t1 = t1.reshape(k0, 16, 10, 10)
    # maxpool phases, each padded to (k0p, 512) then fused along N -> one matmul
    phases = [t1[:, :, 0::2, 0::2], t1[:, :, 0::2, 1::2],
              t1[:, :, 1::2, 0::2], t1[:, :, 1::2, 1::2]]
    t1f = jnp.concatenate(
        [_pad_weight(p.reshape(k0, 16 * 25), k0p, n400) for p in phases], axis=1)
    t2, _, _ = _conv_toeplitz(params["w2"], 5, 5, pad=1)     # (400, 400)
    t3, _, _ = _conv_toeplitz(params["w3"], 5, 5, pad=1)     # (400, 800)

    # --- decoder (ConvTranspose2d, stride 1) ---
    tt1, _, _ = _conv_toeplitz(_convT_eq_weight(params["wt1"]), 5, 5, pad=1)    # (800,400)
    tt2, _, _ = _conv_toeplitz(_convT_eq_weight(params["wt2"]), 5, 5, pad=1)    # (400,400)
    tt3, _, _ = _conv_toeplitz(_convT_eq_weight(params["wt3"]), 10, 10, pad=1)  # (1600,64)
    # fold Upsample(nearest, x2): each 5x5 input cell feeds 4 upsampled rows.
    tt3 = tt3.reshape(16, 5, 2, 5, 2, 64).sum(axis=(2, 4)).reshape(16 * 25, 64)

    # --- linear weights pre-transposed to (K, N) ---
    wl1 = params["wl1"].T                                    # (800, 500)
    wl2 = params["wl2"].T                                    # (500, 800)

    # --- packed per-output-position biases (NCHW flatten => repeat/channel) ---
    ball = jnp.stack([
        _bias_row(jnp.repeat(params["b1"], 25), bw),          # row 0: conv1
        _bias_row(jnp.repeat(params["b2"], 25), bw),          # row 1: conv2
        _bias_row(jnp.repeat(params["b3"], 25), bw),          # row 2: conv3
        _bias_row(params["bl1"], bw),                         # row 3: linear1
        _bias_row(params["bl2"], bw),                         # row 4: linear2
        _bias_row(jnp.repeat(params["bt1"], 25), bw),         # row 5: convT1
        _bias_row(jnp.repeat(params["bt2"], 25), bw),         # row 6: convT2
        # padded output columns get a huge negative bias -> never win max/argmax
        _bias_row(jnp.repeat(params["bt3"], 64), bw, sentinel_to=n64),  # row 7
    ], axis=0)                                               # (8, 896) f32

    return {
        "t1f": t1f,                                          # (k0p, 4*512) bf16
        "t2": _pad_weight(t2, n400, n400),
        "ball": ball,
        "t3": _pad_weight(t3, n400, n800),
        "wl1": _pad_weight(wl1, n800, n500),
        "wl2": _pad_weight(wl2, n500, n800),
        "tt1": _pad_weight(tt1, n800, n400),
        "tt2": _pad_weight(tt2, n400, n400),
        "tt3": _pad_weight(tt3, n400, n64),
    }


# ----------------------------------------------------------------------------
# forward pass
# ----------------------------------------------------------------------------
def q_value_predictor_forward(prep, x):
    B = x.shape[0]
    Bp = _round_up(B, 8)                                     # sublane-aligned rows
    k0 = x.shape[1] * x.shape[2] * x.shape[3]
    k0p = _round_up(k0)

    x_flat = x.reshape(B, k0).astype(jnp.bfloat16)
    x_p = jnp.pad(x_flat, ((0, Bp - B), (0, k0p - k0)))      # (Bp, k0p) bf16

    flops = 2 * Bp * sum(prep[k].shape[0] * prep[k].shape[1] for k in _WEIGHT_KEYS)
    bytes_accessed = int(x_p.size) * 2 + Bp * 8 + sum(
        int(prep[k].size) * prep[k].dtype.itemsize for k in _ARG_KEYS)

    in_specs = ([pl.BlockSpec(memory_space=pltpu.MemorySpace.VMEM)]   # x
                + [pl.BlockSpec(memory_space=pltpu.MemorySpace.VMEM)
                   for _ in _VMEM_KEYS]
                + [pl.BlockSpec(memory_space=pl.ANY) for _ in _ANY_KEYS])
    out_specs = (pl.BlockSpec(memory_space=pltpu.MemorySpace.VMEM),
                 pl.BlockSpec(memory_space=pltpu.MemorySpace.VMEM))
    scratch_shapes = ([pltpu.VMEM(prep[k].shape, prep[k].dtype) for k in _ANY_KEYS]
                      + [pltpu.SemaphoreType.DMA((len(_ANY_KEYS),))])

    q, idx = pl.pallas_call(
        _fused_qvalue_kernel,
        out_shape=(jax.ShapeDtypeStruct((Bp, 1), jnp.float32),
                   jax.ShapeDtypeStruct((Bp, 1), jnp.int32)),
        in_specs=in_specs,
        out_specs=out_specs,
        scratch_shapes=scratch_shapes,
        compiler_params=pltpu.CompilerParams(vmem_limit_bytes=32 * 1024 * 1024),
        cost_estimate=pl.CostEstimate(flops=flops, transcendentals=0,
                                      bytes_accessed=bytes_accessed),
    )(x_p, *[prep[k] for k in _ARG_KEYS])

    # torch.argwhere(input) in the original forward() is dead code -> skipped.
    return q[:B, 0], idx[:B, 0]


# ----------------------------------------------------------------------------
# deterministic parameter construction (shapes from the module's __init__)
# ----------------------------------------------------------------------------
def init_params(key, in_channels):
    ks = jax.random.split(key, 16)

    def w(k, shape, scale=0.1):
        return scale * jax.random.normal(k, shape, dtype=jnp.float32)

    return {
        # encoder
        "w1": w(ks[0], (16, in_channels, 5, 5)), "b1": w(ks[1], (16,)),
        "w2": w(ks[2], (16, 16, 3, 3)),          "b2": w(ks[3], (16,)),
        "w3": w(ks[4], (32, 16, 3, 3)),          "b3": w(ks[5], (32,)),
        # encoder_decoder_linear
        "wl1": w(ks[6], (500, 800)),             "bl1": w(ks[7], (500,)),
        "wl2": w(ks[8], (800, 500)),             "bl2": w(ks[9], (800,)),
        # decoder (ConvTranspose2d weights are (Cin, Cout, k, k))
        "wt1": w(ks[10], (32, 16, 3, 3)),        "bt1": w(ks[11], (16,)),
        "wt2": w(ks[12], (16, 16, 3, 3)),        "bt2": w(ks[13], (16,)),
        "wt3": w(ks[14], (16, 1, 5, 5)),         "bt3": w(ks[15], (1,)),
    }


if __name__ == "__main__":
    key = jax.random.PRNGKey(0)
    k_in, k_par = jax.random.split(key)

    # 8x8 spatial -> 10x10 after conv1, 5x5 after maxpool -> Linear(800, ...)
    B, Cin, H, W = 2, 2, 8, 8
    x = jax.random.normal(k_in, (B, Cin, H, W), dtype=jnp.float32)

    raw_params = init_params(k_par, Cin)
    prep = prepare_params(raw_params, Cin, H, W)      # one-time weight layout prep

    fwd = jax.jit(q_value_predictor_forward)
    max_q, max_idx = fwd(prep, x)
    jax.block_until_ready((max_q, max_idx))

    assert max_q.shape == (B,) and max_idx.shape == (B,)
    assert max_q.dtype == jnp.float32 and max_idx.dtype == jnp.int32
    assert int(jnp.min(max_idx)) >= 0 and int(jnp.max(max_idx)) < 64
    print("KERNEL_OK")
</pallas_src>

<mosaic_0001>
module attributes {stable_mosaic.version = 11 : i64} {
  func.func @_fused_qvalue_kernel(%arg0: memref<8x128xbf16, #tpu.memory_space<vmem>>, %arg1: memref<128x2048xbf16, #tpu.memory_space<vmem>>, %arg2: memref<512x512xbf16, #tpu.memory_space<vmem>>, %arg3: memref<8x896xf32, #tpu.memory_space<vmem>>, %arg4: memref<512x896xbf16, #tpu.memory_space<any>>, %arg5: memref<896x512xbf16, #tpu.memory_space<any>>, %arg6: memref<512x896xbf16, #tpu.memory_space<any>>, %arg7: memref<896x512xbf16, #tpu.memory_space<any>>, %arg8: memref<512x512xbf16, #tpu.memory_space<any>>, %arg9: memref<512x128xbf16, #tpu.memory_space<any>>, %arg10: memref<8x1xf32, #tpu.memory_space<vmem>>, %arg11: memref<8x1xi32, #tpu.memory_space<vmem>>, %arg12: memref<512x896xbf16, #tpu.memory_space<vmem>>, %arg13: memref<896x512xbf16, #tpu.memory_space<vmem>>, %arg14: memref<512x896xbf16, #tpu.memory_space<vmem>>, %arg15: memref<896x512xbf16, #tpu.memory_space<vmem>>, %arg16: memref<512x512xbf16, #tpu.memory_space<vmem>>, %arg17: memref<512x128xbf16, #tpu.memory_space<vmem>>, %arg18: memref<6x!tpu.dma_semaphore, #tpu.memory_space<semaphore_mem>>) attributes {dimension_semantics = [], scalar_prefetch = 0 : i64, scratch_operands = 7 : i64, tpu.core_type = #tpu.core_type<tc>} {
    %c0_i32 = arith.constant 0 : i32
    %0 = tpu.memref_slice %arg18[%c0_i32] : memref<6x!tpu.dma_semaphore, #tpu.memory_space<semaphore_mem>> -> memref<1x!tpu.dma_semaphore, #tpu.memory_space<semaphore_mem>>
    %1 = tpu.memref_squeeze %0 : memref<1x!tpu.dma_semaphore, #tpu.memory_space<semaphore_mem>> -> memref<!tpu.dma_semaphore, #tpu.memory_space<semaphore_mem>>
    tpu.enqueue_dma source(%arg4 : memref<512x896xbf16, #tpu.memory_space<any>>) target(%arg12 : memref<512x896xbf16, #tpu.memory_space<vmem>>) target_semaphore(%1 : memref<!tpu.dma_semaphore, #tpu.memory_space<semaphore_mem>>)
    %c1_i32 = arith.constant 1 : i32
    %2 = tpu.memref_slice %arg18[%c1_i32] : memref<6x!tpu.dma_semaphore, #tpu.memory_space<semaphore_mem>> -> memref<1x!tpu.dma_semaphore, #tpu.memory_space<semaphore_mem>>
    %3 = tpu.memref_squeeze %2 : memref<1x!tpu.dma_semaphore, #tpu.memory_space<semaphore_mem>> -> memref<!tpu.dma_semaphore, #tpu.memory_space<semaphore_mem>>
    tpu.enqueue_dma source(%arg5 : memref<896x512xbf16, #tpu.memory_space<any>>) target(%arg13 : memref<896x512xbf16, #tpu.memory_space<vmem>>) target_semaphore(%3 : memref<!tpu.dma_semaphore, #tpu.memory_space<semaphore_mem>>)
    %c2_i32 = arith.constant 2 : i32
    %4 = tpu.memref_slice %arg18[%c2_i32] : memref<6x!tpu.dma_semaphore, #tpu.memory_space<semaphore_mem>> -> memref<1x!tpu.dma_semaphore, #tpu.memory_space<semaphore_mem>>
    %5 = tpu.memref_squeeze %4 : memref<1x!tpu.dma_semaphore, #tpu.memory_space<semaphore_mem>> -> memref<!tpu.dma_semaphore, #tpu.memory_space<semaphore_mem>>
    tpu.enqueue_dma source(%arg6 : memref<512x896xbf16, #tpu.memory_space<any>>) target(%arg14 : memref<512x896xbf16, #tpu.memory_space<vmem>>) target_semaphore(%5 : memref<!tpu.dma_semaphore, #tpu.memory_space<semaphore_mem>>)
    %c3_i32 = arith.constant 3 : i32
    %6 = tpu.memref_slice %arg18[%c3_i32] : memref<6x!tpu.dma_semaphore, #tpu.memory_space<semaphore_mem>> -> memref<1x!tpu.dma_semaphore, #tpu.memory_space<semaphore_mem>>
    %7 = tpu.memref_squeeze %6 : memref<1x!tpu.dma_semaphore, #tpu.memory_space<semaphore_mem>> -> memref<!tpu.dma_semaphore, #tpu.memory_space<semaphore_mem>>
    tpu.enqueue_dma source(%arg7 : memref<896x512xbf16, #tpu.memory_space<any>>) target(%arg15 : memref<896x512xbf16, #tpu.memory_space<vmem>>) target_semaphore(%7 : memref<!tpu.dma_semaphore, #tpu.memory_space<semaphore_mem>>)
    %c4_i32 = arith.constant 4 : i32
    %8 = tpu.memref_slice %arg18[%c4_i32] : memref<6x!tpu.dma_semaphore, #tpu.memory_space<semaphore_mem>> -> memref<1x!tpu.dma_semaphore, #tpu.memory_space<semaphore_mem>>
    %9 = tpu.memref_squeeze %8 : memref<1x!tpu.dma_semaphore, #tpu.memory_space<semaphore_mem>> -> memref<!tpu.dma_semaphore, #tpu.memory_space<semaphore_mem>>
    tpu.enqueue_dma source(%arg8 : memref<512x512xbf16, #tpu.memory_space<any>>) target(%arg16 : memref<512x512xbf16, #tpu.memory_space<vmem>>) target_semaphore(%9 : memref<!tpu.dma_semaphore, #tpu.memory_space<semaphore_mem>>)
    %c5_i32 = arith.constant 5 : i32
    %10 = tpu.memref_slice %arg18[%c5_i32] : memref<6x!tpu.dma_semaphore, #tpu.memory_space<semaphore_mem>> -> memref<1x!tpu.dma_semaphore, #tpu.memory_space<semaphore_mem>>
    %11 = tpu.memref_squeeze %10 : memref<1x!tpu.dma_semaphore, #tpu.memory_space<semaphore_mem>> -> memref<!tpu.dma_semaphore, #tpu.memory_space<semaphore_mem>>
    tpu.enqueue_dma source(%arg9 : memref<512x128xbf16, #tpu.memory_space<any>>) target(%arg17 : memref<512x128xbf16, #tpu.memory_space<vmem>>) target_semaphore(%11 : memref<!tpu.dma_semaphore, #tpu.memory_space<semaphore_mem>>)
    %c0 = arith.constant 0 : index
    %c0_0 = arith.constant 0 : index
    %12 = vector.load %arg3[%c0, %c0_0] : memref<8x896xf32, #tpu.memory_space<vmem>>, vector<8x896xf32>
    %c0_1 = arith.constant 0 : index
    %c0_2 = arith.constant 0 : index
    %13 = vector.load %arg0[%c0_1, %c0_2] : memref<8x128xbf16, #tpu.memory_space<vmem>>, vector<8x128xbf16>
    %c0_3 = arith.constant 0 : index
    %c0_4 = arith.constant 0 : index
    %14 = vector.load %arg1[%c0_3, %c0_4] : memref<128x2048xbf16, #tpu.memory_space<vmem>>, vector<128x2048xbf16>
    %cst = arith.constant dense<0.000000e+00> : vector<8x2048xf32>
    %15 = tpu.matmul %13, %14, %cst {dimension_numbers = #tpu.dot_dimension_numbers<[1], [0], [0], [1], [0, 0, 1, 1], [], []>} : vector<8x128xbf16>, vector<128x2048xbf16>, vector<8x2048xf32> -> vector<8x2048xf32>
    %16 = vector.extract_strided_slice %15 {offsets = [0, 0], sizes = [8, 512], strides = [1, 1]} : vector<8x2048xf32> to vector<8x512xf32>
    %17 = vector.extract_strided_slice %15 {offsets = [0, 512], sizes = [8, 512], strides = [1, 1]} : vector<8x2048xf32> to vector<8x512xf32>
    %18 = arith.maximumf %16, %17 : vector<8x512xf32>
    %19 = vector.extract_strided_slice %15 {offsets = [0, 1024], sizes = [8, 512], strides = [1, 1]} : vector<8x2048xf32> to vector<8x512xf32>
    %20 = vector.extract_strided_slice %15 {offsets = [0, 1536], sizes = [8, 512], strides = [1, 1]} : vector<8x2048xf32> to vector<8x512xf32>
    %21 = arith.maximumf %19, %20 : vector<8x512xf32>
    %22 = arith.maximumf %18, %21 : vector<8x512xf32>
    %23 = vector.extract_strided_slice %12 {offsets = [0, 0], sizes = [1, 512], strides = [1, 1]} : vector<8x896xf32> to vector<1x512xf32>
    %24 = vector.broadcast %23 : vector<1x512xf32> to vector<8x512xf32>
    %25 = arith.addf %22, %24 : vector<8x512xf32>
    %cst_5 = arith.constant 0.000000e+00 : f32
    %26 = vector.broadcast %cst_5 : f32 to vector<8x512xf32>
    %27 = arith.maximumf %25, %26 : vector<8x512xf32>
    %28 = arith.truncf %27 : vector<8x512xf32> to vector<8x512xbf16>
    %c0_6 = arith.constant 0 : index
    %c0_7 = arith.constant 0 : index
    %29 = vector.load %arg2[%c0_6, %c0_7] : memref<512x512xbf16, #tpu.memory_space<vmem>>, vector<512x512xbf16>
    %cst_8 = arith.constant dense<0.000000e+00> : vector<8x512xf32>
    %30 = tpu.matmul %28, %29, %cst_8 {dimension_numbers = #tpu.dot_dimension_numbers<[1], [0], [0], [1], [0, 0, 1, 1], [], []>} : vector<8x512xbf16>, vector<512x512xbf16>, vector<8x512xf32> -> vector<8x512xf32>
    %31 = vector.extract_strided_slice %12 {offsets = [1, 0], sizes = [1, 512], strides = [1, 1]} : vector<8x896xf32> to vector<1x512xf32>
    %32 = vector.broadcast %31 : vector<1x512xf32> to vector<8x512xf32>
    %33 = arith.addf %30, %32 : vector<8x512xf32>
    %cst_9 = arith.constant 0.000000e+00 : f32
    %34 = vector.broadcast %cst_9 : f32 to vector<8x512xf32>
    %35 = arith.maximumf %33, %34 : vector<8x512xf32>
    %c0_i32_10 = arith.constant 0 : i32
    %36 = tpu.memref_slice %arg18[%c0_i32_10] : memref<6x!tpu.dma_semaphore, #tpu.memory_space<semaphore_mem>> -> memref<1x!tpu.dma_semaphore, #tpu.memory_space<semaphore_mem>>
    %37 = tpu.memref_squeeze %36 : memref<1x!tpu.dma_semaphore, #tpu.memory_space<semaphore_mem>> -> memref<!tpu.dma_semaphore, #tpu.memory_space<semaphore_mem>>
    tpu.wait_dma2 semaphore(%37 : memref<!tpu.dma_semaphore, #tpu.memory_space<semaphore_mem>>) src(%arg4 : memref<512x896xbf16, #tpu.memory_space<any>>) dst(%arg12 : memref<512x896xbf16, #tpu.memory_space<vmem>>)
    %38 = arith.truncf %35 : vector<8x512xf32> to vector<8x512xbf16>
    %c0_11 = arith.constant 0 : index
    %c0_12 = arith.constant 0 : index
    %39 = vector.load %arg12[%c0_11, %c0_12] : memref<512x896xbf16, #tpu.memory_space<vmem>>, vector<512x896xbf16>
    %cst_13 = arith.constant dense<0.000000e+00> : vector<8x896xf32>
    %40 = tpu.matmul %38, %39, %cst_13 {dimension_numbers = #tpu.dot_dimension_numbers<[1], [0], [0], [1], [0, 0, 1, 1], [], []>} : vector<8x512xbf16>, vector<512x896xbf16>, vector<8x896xf32> -> vector<8x896xf32>
    %41 = vector.extract_strided_slice %12 {offsets = [2, 0], sizes = [1, 896], strides = [1, 1]} : vector<8x896xf32> to vector<1x896xf32>
    %42 = vector.broadcast %41 : vector<1x896xf32> to vector<8x896xf32>
    %43 = arith.addf %40, %42 : vector<8x896xf32>
    %cst_14 = arith.constant 0.000000e+00 : f32
    %44 = vector.broadcast %cst_14 : f32 to vector<8x896xf32>
    %45 = arith.maximumf %43, %44 : vector<8x896xf32>
    %c1_i32_15 = arith.constant 1 : i32
    %46 = tpu.memref_slice %arg18[%c1_i32_15] : memref<6x!tpu.dma_semaphore, #tpu.memory_space<semaphore_mem>> -> memref<1x!tpu.dma_semaphore, #tpu.memory_space<semaphore_mem>>
    %47 = tpu.memref_squeeze %46 : memref<1x!tpu.dma_semaphore, #tpu.memory_space<semaphore_mem>> -> memref<!tpu.dma_semaphore, #tpu.memory_space<semaphore_mem>>
    tpu.wait_dma2 semaphore(%47 : memref<!tpu.dma_semaphore, #tpu.memory_space<semaphore_mem>>) src(%arg5 : memref<896x512xbf16, #tpu.memory_space<any>>) dst(%arg13 : memref<896x512xbf16, #tpu.memory_space<vmem>>)
    %48 = arith.truncf %45 : vector<8x896xf32> to vector<8x896xbf16>
    %c0_16 = arith.constant 0 : index
    %c0_17 = arith.constant 0 : index
    %49 = vector.load %arg13[%c0_16, %c0_17] : memref<896x512xbf16, #tpu.memory_space<vmem>>, vector<896x512xbf16>
    %cst_18 = arith.constant dense<0.000000e+00> : vector<8x512xf32>
    %50 = tpu.matmul %48, %49, %cst_18 {dimension_numbers = #tpu.dot_dimension_numbers<[1], [0], [0], [1], [0, 0, 1, 1], [], []>} : vector<8x896xbf16>, vector<896x512xbf16>, vector<8x512xf32> -> vector<8x512xf32>
    %51 = vector.extract_strided_slice %12 {offsets = [3, 0], sizes = [1, 512], strides = [1, 1]} : vector<8x896xf32> to vector<1x512xf32>
    %52 = vector.broadcast %51 : vector<1x512xf32> to vector<8x512xf32>
    %53 = arith.addf %50, %52 : vector<8x512xf32>
    %cst_19 = arith.constant 0.000000e+00 : f32
    %54 = vector.broadcast %cst_19 : f32 to vector<8x512xf32>
    %55 = arith.maximumf %53, %54 : vector<8x512xf32>
    %c2_i32_20 = arith.constant 2 : i32
    %56 = tpu.memref_slice %arg18[%c2_i32_20] : memref<6x!tpu.dma_semaphore, #tpu.memory_space<semaphore_mem>> -> memref<1x!tpu.dma_semaphore, #tpu.memory_space<semaphore_mem>>
    %57 = tpu.memref_squeeze %56 : memref<1x!tpu.dma_semaphore, #tpu.memory_space<semaphore_mem>> -> memref<!tpu.dma_semaphore, #tpu.memory_space<semaphore_mem>>
    tpu.wait_dma2 semaphore(%57 : memref<!tpu.dma_semaphore, #tpu.memory_space<semaphore_mem>>) src(%arg6 : memref<512x896xbf16, #tpu.memory_space<any>>) dst(%arg14 : memref<512x896xbf16, #tpu.memory_space<vmem>>)
    %58 = arith.truncf %55 : vector<8x512xf32> to vector<8x512xbf16>
    %c0_21 = arith.constant 0 : index
    %c0_22 = arith.constant 0 : index
    %59 = vector.load %arg14[%c0_21, %c0_22] : memref<512x896xbf16, #tpu.memory_space<vmem>>, vector<512x896xbf16>
    %cst_23 = arith.constant dense<0.000000e+00> : vector<8x896xf32>
    %60 = tpu.matmul %58, %59, %cst_23 {dimension_numbers = #tpu.dot_dimension_numbers<[1], [0], [0], [1], [0, 0, 1, 1], [], []>} : vector<8x512xbf16>, vector<512x896xbf16>, vector<8x896xf32> -> vector<8x896xf32>
    %61 = vector.extract_strided_slice %12 {offsets = [4, 0], sizes = [1, 896], strides = [1, 1]} : vector<8x896xf32> to vector<1x896xf32>
    %62 = vector.broadcast %61 : vector<1x896xf32> to vector<8x896xf32>
    %63 = arith.addf %60, %62 : vector<8x896xf32>
    %cst_24 = arith.constant 0.000000e+00 : f32
    %64 = vector.broadcast %cst_24 : f32 to vector<8x896xf32>
    %65 = arith.maximumf %63, %64 : vector<8x896xf32>
    %c3_i32_25 = arith.constant 3 : i32
    %66 = tpu.memref_slice %arg18[%c3_i32_25] : memref<6x!tpu.dma_semaphore, #tpu.memory_space<semaphore_mem>> -> memref<1x!tpu.dma_semaphore, #tpu.memory_space<semaphore_mem>>
    %67 = tpu.memref_squeeze %66 : memref<1x!tpu.dma_semaphore, #tpu.memory_space<semaphore_mem>> -> memref<!tpu.dma_semaphore, #tpu.memory_space<semaphore_mem>>
    tpu.wait_dma2 semaphore(%67 : memref<!tpu.dma_semaphore, #tpu.memory_space<semaphore_mem>>) src(%arg7 : memref<896x512xbf16, #tpu.memory_space<any>>) dst(%arg15 : memref<896x512xbf16, #tpu.memory_space<vmem>>)
    %68 = arith.truncf %65 : vector<8x896xf32> to vector<8x896xbf16>
    %c0_26 = arith.constant 0 : index
    %c0_27 = arith.constant 0 : index
    %69 = vector.load %arg15[%c0_26, %c0_27] : memref<896x512xbf16, #tpu.memory_space<vmem>>, vector<896x512xbf16>
    %cst_28 = arith.constant dense<0.000000e+00> : vector<8x512xf32>
    %70 = tpu.matmul %68, %69, %cst_28 {dimension_numbers = #tpu.dot_dimension_numbers<[1], [0], [0], [1], [0, 0, 1, 1], [], []>} : vector<8x896xbf16>, vector<896x512xbf16>, vector<8x512xf32> -> vector<8x512xf32>
    %71 = vector.extract_strided_slice %12 {offsets = [5, 0], sizes = [1, 512], strides = [1, 1]} : vector<8x896xf32> to vector<1x512xf32>
    %72 = vector.broadcast %71 : vector<1x512xf32> to vector<8x512xf32>
    %73 = arith.addf %70, %72 : vector<8x512xf32>
    %cst_29 = arith.constant 0.000000e+00 : f32
    %74 = vector.broadcast %cst_29 : f32 to vector<8x512xf32>
    %75 = arith.maximumf %73, %74 : vector<8x512xf32>
    %c4_i32_30 = arith.constant 4 : i32
    %76 = tpu.memref_slice %arg18[%c4_i32_30] : memref<6x!tpu.dma_semaphore, #tpu.memory_space<semaphore_mem>> -> memref<1x!tpu.dma_semaphore, #tpu.memory_space<semaphore_mem>>
    %77 = tpu.memref_squeeze %76 : memref<1x!tpu.dma_semaphore, #tpu.memory_space<semaphore_mem>> -> memref<!tpu.dma_semaphore, #tpu.memory_space<semaphore_mem>>
    tpu.wait_dma2 semaphore(%77 : memref<!tpu.dma_semaphore, #tpu.memory_space<semaphore_mem>>) src(%arg8 : memref<512x512xbf16, #tpu.memory_space<any>>) dst(%arg16 : memref<512x512xbf16, #tpu.memory_space<vmem>>)
    %78 = arith.truncf %75 : vector<8x512xf32> to vector<8x512xbf16>
    %c0_31 = arith.constant 0 : index
    %c0_32 = arith.constant 0 : index
    %79 = vector.load %arg16[%c0_31, %c0_32] : memref<512x512xbf16, #tpu.memory_space<vmem>>, vector<512x512xbf16>
    %cst_33 = arith.constant dense<0.000000e+00> : vector<8x512xf32>
    %80 = tpu.matmul %78, %79, %cst_33 {dimension_numbers = #tpu.dot_dimension_numbers<[1], [0], [0], [1], [0, 0, 1, 1], [], []>} : vector<8x512xbf16>, vector<512x512xbf16>, vector<8x512xf32> -> vector<8x512xf32>
    %81 = vector.extract_strided_slice %12 {offsets = [6, 0], sizes = [1, 512], strides = [1, 1]} : vector<8x896xf32> to vector<1x512xf32>
    %82 = vector.broadcast %81 : vector<1x512xf32> to vector<8x512xf32>
    %83 = arith.addf %80, %82 : vector<8x512xf32>
    %cst_34 = arith.constant 0.000000e+00 : f32
    %84 = vector.broadcast %cst_34 : f32 to vector<8x512xf32>
    %85 = arith.maximumf %83, %84 : vector<8x512xf32>
    %c5_i32_35 = arith.constant 5 : i32
    %86 = tpu.memref_slice %arg18[%c5_i32_35] : memref<6x!tpu.dma_semaphore, #tpu.memory_space<semaphore_mem>> -> memref<1x!tpu.dma_semaphore, #tpu.memory_space<semaphore_mem>>
    %87 = tpu.memref_squeeze %86 : memref<1x!tpu.dma_semaphore, #tpu.memory_space<semaphore_mem>> -> memref<!tpu.dma_semaphore, #tpu.memory_space<semaphore_mem>>
    tpu.wait_dma2 semaphore(%87 : memref<!tpu.dma_semaphore, #tpu.memory_space<semaphore_mem>>) src(%arg9 : memref<512x128xbf16, #tpu.memory_space<any>>) dst(%arg17 : memref<512x128xbf16, #tpu.memory_space<vmem>>)
    %88 = arith.truncf %85 : vector<8x512xf32> to vector<8x512xbf16>
    %c0_36 = arith.constant 0 : index
    %c0_37 = arith.constant 0 : index
    %89 = vector.load %arg17[%c0_36, %c0_37] : memref<512x128xbf16, #tpu.memory_space<vmem>>, vector<512x128xbf16>
    %cst_38 = arith.constant dense<0.000000e+00> : vector<8x128xf32>
    %90 = tpu.matmul %88, %89, %cst_38 {dimension_numbers = #tpu.dot_dimension_numbers<[1], [0], [0], [1], [0, 0, 1, 1], [], []>} : vector<8x512xbf16>, vector<512x128xbf16>, vector<8x128xf32> -> vector<8x128xf32>
    %91 = vector.extract_strided_slice %12 {offsets = [7, 0], sizes = [1, 128], strides = [1, 1]} : vector<8x896xf32> to vector<1x128xf32>
    %92 = vector.broadcast %91 : vector<1x128xf32> to vector<8x128xf32>
    %93 = arith.addf %90, %92 : vector<8x128xf32>
    %cst_39 = arith.constant dense<0xFF800000> : vector<8xf32>
    %94 = vector.multi_reduction <maximumf>, %93, %cst_39 [1] : vector<8x128xf32> to vector<8xf32>
    %95 = vector.shape_cast %94 : vector<8xf32> to vector<8x1xf32>
    %96 = tpu.iota {dimensions = array<i32: 1>} : vector<8x128xi32>
    %97 = vector.broadcast %95 : vector<8x1xf32> to vector<8x128xf32>
    %98 = arith.cmpf oeq, %93, %97 : vector<8x128xf32>
    %c128_i32 = arith.constant 128 : i32
    %99 = vector.broadcast %c128_i32 : i32 to vector<8x128xi32>
    %100 = arith.select %98, %96, %99 : vector<8x128xi1>, vector<8x128xi32>
    %cst_40 = arith.constant dense<2147483647> : vector<8xi32>
    %101 = vector.multi_reduction <minsi>, %100, %cst_40 [1] : vector<8x128xi32> to vector<8xi32>
    %102 = vector.shape_cast %101 : vector<8xi32> to vector<8x1xi32>
    %c0_41 = arith.constant 0 : index
    %c0_42 = arith.constant 0 : index
    %103 = vector.load %arg10[%c0_41, %c0_42] : memref<8x1xf32, #tpu.memory_space<vmem>>, vector<8x1xf32>
    tpu.vector_store %arg10[%c0_41, %c0_42], %95 {strides = array<i32>} : memref<8x1xf32, #tpu.memory_space<vmem>>, vector<8x1xf32>,
    %c0_43 = arith.constant 0 : index
    %c0_44 = arith.constant 0 : index
    %104 = vector.load %arg11[%c0_43, %c0_44] : memref<8x1xi32, #tpu.memory_space<vmem>>, vector<8x1xi32>
    tpu.vector_store %arg11[%c0_43, %c0_44], %102 {strides = array<i32>} : memref<8x1xi32, #tpu.memory_space<vmem>>, vector<8x1xi32>,
    return
  }
}

</mosaic_0001>

<bundles_post_ra>
// kernel: q_value_predictor_forward.1
= control target key start
LH: loop header
LB: loop body
LE: loop exit
PB: predicated region body
PF: predicated region fallthrough
CT: control target
= control target key end

     0   :  { %17 = vsyncpa [#allocation10], 0  ;;  %s6525_s0 = inlined_call_operand.vmem [shape: bf16[8,128], index: 0, kind: input, shape index: {}]   ;;  %s6526_s1 = inlined_call_operand.hbm [shape: bf16[128,2048], index: 1, kind: input, shape index: {}]   ;;  %s6527_s2 = inlined_call_operand.hbm [shape: bf16[512,512], index: 2, kind: input, shape index: {}]   ;;  %s6528_s3 = inlined_call_operand.vmem [shape: f32[8,896], index: 3, kind: input, shape index: {}]   ;;  %s6529_s4 = inlined_call_operand.hbm [shape: bf16[512,896], index: 4, kind: input, shape index: {}]   ;;  %s6530_s5 = inlined_call_operand.hbm [shape: bf16[896,512], index: 5, kind: input, shape index: {}]   ;;  %s6531_s6 = inlined_call_operand.hbm [shape: bf16[512,896], index: 6, kind: input, shape index: {}]   ;;  %s6532_s7 = inlined_call_operand.hbm [shape: bf16[896,512], index: 7, kind: input, shape index: {}]   ;;  %s6533_s8 = inlined_call_operand.hbm [shape: bf16[512,512], index: 8, kind: input, shape index: {}]   ;;  %s6534_s9 = inlined_call_operand.hbm [shape: bf16[512,128], index: 9, kind: input, shape index: {}]   ;;  %s6535_s10 = inlined_call_operand.vmem [shape: f32[8,1], index: 10, kind: output, shape index: {0}]   ;;  %s6536_s11 = inlined_call_operand.vmem [shape: s32[8,1], index: 11, kind: output, shape index: {1}]  }
   0x1   :  { %18 = vsyncpa [#allocation12], 0  ;;  %s6025_s17 = smov [#allocation9]   ;;  %s5943_s21 = scalar_lea.hbm %s6526_s1, 16384 }
   0x2   :  { %s26_s18 = sshll.u32 %s6025_s17, 4  ;;  %p5944_p0 = scmp.ne.s32.totalorder %s6526_s1, %s5943_s21  ;;  %s27_s18 = int_to_ptr.vmem [resolvable:$true] %s26_s18 }
   0x3   :  { %p5947_p1 = scmp.lt.u32.totalorder %s5943_s21, %s6526_s1 }
   0x5   :  { %p5949_p2 = pnand %p5947_p1, %p5944_p0 }
   0x7   :  { %5952 = shalt.err (!%p5949_p2)
}
   0x8   :  { %s5953_s26 = scalar_lea.vmem %s27_s18, 16384  ;;  %p5958_p4 = scmp.lt.s32.totalorder %s27_s18, %s27_s18 }
   0x9   :  { %p5954_p3 = scmp.ne.s32.totalorder %s27_s18, %s5953_s26  ;;  %p5959_p5 = scmp.lt.s32.totalorder %s5953_s26, %s5953_s26 }
   0xb   :  { %p5960_p6 = por %p5959_p5, %p5958_p4 }
   0xd   :  { %p5961_p7 = pnand %p5960_p6, %p5954_p3 }
   0xf   :  { %5964 = shalt.err (!%p5961_p7)
}
  0x10   :  { %s6026_s27 = smov 1024   ;;  %s6027_s28 = smov 64  }
  0x11   :  { %32 = dma.hbm_to_vmem [thread:$0]  %s6526_s1, 16384, %s27_s18, [#allocation10], %s6026_s27, %s6026_s27, %s6027_s28  }
  0x12   :  { %s6028_s12 = smov [#allocation11]   ;;  %s5965_s16 = scalar_lea.hbm %s6527_s2, 16384 }
  0x13   :  { %s38_s13 = sshll.u32 %s6028_s12, 4  ;;  %p5966_p8 = scmp.ne.s32.totalorder %s6527_s2, %s5965_s16  ;;  %s39_s13 = int_to_ptr.vmem [resolvable:$true] %s38_s13 }
  0x14   :  { %p5969_p9 = scmp.lt.u32.totalorder %s5965_s16, %s6527_s2 }
  0x16   :  { %p5971_p10 = pnand %p5969_p9, %p5966_p8 }
  0x18   :  { %5974 = shalt.err (!%p5971_p10)
}
  0x19   :  { %s5975_s22 = scalar_lea.vmem %s39_s13, 16384  ;;  %p5980_p12 = scmp.lt.s32.totalorder %s39_s13, %s39_s13 }
  0x1a   :  { %p5976_p11 = scmp.ne.s32.totalorder %s39_s13, %s5975_s22  ;;  %p5981_p13 = scmp.lt.s32.totalorder %s5975_s22, %s5975_s22 }
  0x1c   :  { %p5982_p0 = por %p5981_p13, %p5980_p12 }
  0x1e   :  { %p5983_p1 = pnand %p5982_p0, %p5976_p11 }
  0x20   :  { %5986 = shalt.err (!%p5983_p1)
}
  0x21   :  { %s6029_s1 = smov 256   ;;  %s6030_s18 = smov 16  }
  0x22   :  { %44 = dma.hbm_to_vmem [thread:$0]  %s6527_s2, 16384, %s39_s13, [#allocation12], %s6029_s1, %s6029_s1, %s6030_s18  }
  0x23   :  { %6009 = dma.done.wait [#allocation10], 16384  }
  0x24   :  { %6010 = vsyncadd [#allocation10], 4294950912 }
  0x25   :  { %6011 = dma.done.wait [#allocation12], 16384  }
  0x26   :  { %6012 = vsyncadd [#allocation12], 4294950912  ;;  %s58_s25 = sld [smem:[#allocation0]]   ;;  %s6031_s26 = smov 896   ;;  %v6032_v0 = vmov 0  }
  0x27   :  { %70 = sst [smem:[#allocation14]] %s6031_s26  ;;  %1049 = vmatprep.mubr.bf16.mxu0 %v6032_v0  ;;  %1090 = vmatprep.mubr.bf16.mxu1 %v6032_v0  ;;  %s6033_s27 = smov 7  }
  0x28   :  { %72 = sst [smem:[#allocation14 + $0x1]] %s6031_s26  ;;  %s6034_s2 = smov 128  }
  0x29   :  { %74 = sst [smem:[#allocation14 + $0x2]] %s6033_s27  ;;  %s6035_s29 = smov 2  }
  0x2a   :  { %76 = sst [smem:[#allocation14 + $0x3]] %s6027_s28  ;;  %s6036_s12 = smov 448  }
  0x2b   :  { %78 = sst [smem:[#allocation14 + $0x4]] %s6034_s2  ;;  %s6037_s14 = smov 4  }
  0x2c   :  { %80 = sst [smem:[#allocation14 + $0x5]] %s6035_s29  ;;  %s5201_s30 = sshll.u32 %s58_s25, 26 }
  0x2d   :  { %82 = sst [smem:[#allocation14 + $0x6]] %s6036_s12  ;;  %s6151_s13 = sadd.s32 134217728, %s5201_s30 }
  0x2e   :  { %84 = sst [smem:[#allocation14 + $0x7]] %s6027_s28  ;;  %s6038_s15 = smov [#allocation2]  }
  0x2f   :  { %86 = sst [smem:[#allocation14 + $0x8]] %s6037_s14  ;;  %s66_s16 = sshll.u32 %s6038_s15, 4  ;;  %s67_s16 = int_to_ptr.vmem [resolvable:$true] %s66_s16 }
  0x30   :  { %s6039_s17 = smov [#allocation8]   ;;  %s6040_s19 = smov [#allocation13]  }
  0x31   :  { %88 = dma.general %s6529_s4, 28672, %s67_s16, %s6039_s17, %s6040_s19, [#allocation14], %s6151_s13, 0  }
  0x32   :  { %s6041_s22 = smov 512   ;;  %s6042_s18 = smov [#allocation3]  }
  0x33   :  { %105 = sst [smem:[#allocation16]] %s6041_s22  ;;  %s101_s23 = sshll.u32 %s6042_s18, 4  ;;  %s102_s23 = int_to_ptr.vmem [resolvable:$true] %s101_s23 }
  0x34   :  { %107 = sst [smem:[#allocation16 + $0x1]] %s6041_s22  ;;  %s6043_s4 = smov [#allocation8 + $0x1]  }
  0x35   :  { %109 = sst [smem:[#allocation16 + $0x2]] %s6037_s14  ;;  %s6044_s24 = smov [#allocation15]  }
  0x36   :  { %111 = sst [smem:[#allocation16 + $0x3]] %s6027_s28  ;;  %s6045_s15 = smov [#allocation4]  }
  0x37   :  { %113 = sst [smem:[#allocation16 + $0x4]] %s6034_s2  ;;  %s136_s16 = sshll.u32 %s6045_s15, 4  ;;  %s137_s16 = int_to_ptr.vmem [resolvable:$true] %s136_s16 }
  0x38   :  { %115 = sst [smem:[#allocation16 + $0x5]] %s6035_s29  ;;  %s6047_s17 = smov [#allocation17]  }
  0x39   :  { %117 = sst [smem:[#allocation16 + $0x6]] %s6029_s1  ;;  %s5987_s21 = scalar_lea.hbm %s6534_s9, 4096 }
  0x3a   :  { %119 = sst [smem:[#allocation16 + $0x7]] %s6027_s28  ;;  %p5988_p2 = scmp.ne.s32.totalorder %s6534_s9, %s5987_s21 }
  0x3b   :  { %121 = sst [smem:[#allocation16 + $0x8]] %s6037_s14  ;;  %p5991_p3 = scmp.lt.u32.totalorder %s5987_s21, %s6534_s9 }
  0x3c   :  { %123 = dma.general %s6530_s5, 28672, %s102_s23, %s6043_s4, %s6044_s24, [#allocation16], %s6151_s13, 0  }
  0x3d   :  { %140 = sst [smem:[#allocation18]] %s6031_s26  ;;  %s6046_s5 = smov [#allocation8 + $0x2]  }
  0x3e   :  { %142 = sst [smem:[#allocation18 + $0x1]] %s6031_s26  ;;  %s6051_s23 = smov [#allocation6]  }
  0x3f   :  { %144 = sst [smem:[#allocation18 + $0x2]] %s6033_s27  ;;  %s6048_s27 = smov [#allocation5]  }
  0x40   :  { %146 = sst [smem:[#allocation18 + $0x3]] %s6027_s28  ;;  %s171_s20 = sshll.u32 %s6048_s27, 4  ;;  %s172_s20 = int_to_ptr.vmem [resolvable:$true] %s171_s20 }
  0x41   :  { %148 = sst [smem:[#allocation18 + $0x4]] %s6034_s2  ;;  %s206_s4 = sshll.u32 %s6051_s23, 4  ;;  %s207_s4 = int_to_ptr.vmem [resolvable:$true] %s206_s4 }
  0x42   :  { %150 = sst [smem:[#allocation18 + $0x5]] %s6035_s29  ;;  %s6053_s24 = smov [#allocation21]  }
  0x43   :  { %152 = sst [smem:[#allocation18 + $0x6]] %s6036_s12  ;;  %s6050_s12 = smov [#allocation19]  }
  0x44   :  { %154 = sst [smem:[#allocation18 + $0x7]] %s6027_s28  ;;  %p5993_p4 = pnand %p5991_p3, %p5988_p2 }
  0x45   :  { %156 = sst [smem:[#allocation18 + $0x8]] %s6037_s14 }
  0x46   :  { %158 = dma.general %s6531_s6, 28672, %s137_s16, %s6046_s5, %s6047_s17, [#allocation18], %s6151_s13, 0  }
  0x47   :  { %175 = sst [smem:[#allocation20]] %s6041_s22  ;;  %s6049_s6 = smov [#allocation8 + $0x3]  }
  0x48   :  { %177 = sst [smem:[#allocation20 + $0x1]] %s6041_s22 }
  0x49   :  { %179 = sst [smem:[#allocation20 + $0x2]] %s6037_s14 }
  0x4a   :  { %181 = sst [smem:[#allocation20 + $0x3]] %s6027_s28 }
  0x4b   :  { %183 = sst [smem:[#allocation20 + $0x4]] %s6034_s2 }
  0x4c   :  { %185 = sst [smem:[#allocation20 + $0x5]] %s6035_s29 }
  0x4d   :  { %187 = sst [smem:[#allocation20 + $0x6]] %s6029_s1 }
  0x4e   :  { %189 = sst [smem:[#allocation20 + $0x7]] %s6027_s28 }
  0x4f   :  { %191 = sst [smem:[#allocation20 + $0x8]] %s6037_s14 }
  0x50   :  { %193 = dma.general %s6532_s7, 28672, %s172_s20, %s6049_s6, %s6050_s12, [#allocation20], %s6151_s13, 0  }
  0x51   :  { %210 = sst [smem:[#allocation22]] %s6041_s22  ;;  %s6052_s7 = smov [#allocation8 + $0x4]  }
  0x52   :  { %212 = sst [smem:[#allocation22 + $0x1]] %s6041_s22 }
  0x53   :  { %214 = sst [smem:[#allocation22 + $0x2]] %s6037_s14 }
  0x54   :  { %216 = sst [smem:[#allocation22 + $0x3]] %s6027_s28 }
  0x55   :  { %218 = sst [smem:[#allocation22 + $0x4]] %s6034_s2 }
  0x56   :  { %220 = sst [smem:[#allocation22 + $0x5]] %s6035_s29 }
  0x57   :  { %222 = sst [smem:[#allocation22 + $0x6]] %s6029_s1 }
  0x58   :  { %224 = sst [smem:[#allocation22 + $0x7]] %s6027_s28 }
  0x59   :  { %226 = sst [smem:[#allocation22 + $0x8]] %s6037_s14 }
  0x5a   :  { %228 = dma.general %s6533_s8, 16384, %s207_s4, %s6052_s7, %s6053_s24, [#allocation22], %s6151_s13, 0  }
  0x5b   :  { %v6214_v1 = vld [vmem:[%s6528_s3 + $0x20] sm:$0xff]  ;;  %v6219_v2 = vld [vmem:[%s6528_s3 + $0x28] sm:$0xff]  ;;  %v6224_v3 = vld [vmem:[%s6528_s3 + $0x30] sm:$0xff] }
  0x5c   :  { %v249_v4 = vld [vmem:[#allocation9] sm:$0xff]  ;;  %v250_v6 = vld [vmem:[#allocation9 + $0x8] sm:$0xff] }
  0x5d   :  { %v257_v5 = vld [vmem:[#allocation9 + $0x40] sm:$0xff]  ;;  %v258_v8 = vld [vmem:[#allocation9 + $0x48] sm:$0xff] }
  0x5e   :  { %v5212_v7 = vcombine.high %v249_v4, %v257_v5  ;;  %v5211_v9 = vcombine.low %v249_v4, %v257_v5  ;;  %v265_v10 = vld [vmem:[#allocation9 + $0x80] sm:$0xff]  ;;  %v5214_v12 = vcombine.high %v250_v6, %v258_v8  ;;  %v5213_v13 = vcombine.low %v250_v6, %v258_v8  ;;  %v266_v15 = vld [vmem:[#allocation9 + $0x88] sm:$0xff]  ;;  %v251_v6 = vld [vmem:[#allocation9 + $0x10] sm:$0xff] }
  0x5f   :  { %v273_v11 = vld [vmem:[#allocation9 + $0xc0] sm:$0xff]  ;;  %v274_v16 = vld [vmem:[#allocation9 + $0xc8] sm:$0xff]  ;;  %v252_v8 = vld [vmem:[#allocation9 + $0x18] sm:$0xff] }
  0x60   :  { %v5228_v14 = vcombine.high %v265_v10, %v273_v11  ;;  %v281_v17 = vld [vmem:[#allocation9 + $0x100] sm:$0xff]  ;;  %1017 = vmatprep.subr.bf16.mxu0 %v5212_v7  ;;  %v5230_v18 = vcombine.high %v266_v15, %v274_v16  ;;  %v282_v20 = vld [vmem:[#allocation9 + $0x108] sm:$0xff]  ;;  %1058 = vmatprep.subr.bf16.mxu1 %v5214_v12  ;;  %v5227_v22 = vcombine.low %v265_v10, %v273_v11  ;;  %v259_v7 = vld [vmem:[#allocation9 + $0x50] sm:$0xff] }
  0x61   :  { %v289_v19 = vld [vmem:[#allocation9 + $0x140] sm:$0xff]  ;;  %v290_v21 = vld [vmem:[#allocation9 + $0x148] sm:$0xff]  ;;  %1018 = vmatpush1.bf16.msra.mxu0 %v5211_v9  ;;  %1059 = vmatpush1.bf16.msra.mxu1 %v5213_v13  ;;  %v5229_v23 = vcombine.low %v266_v15, %v274_v16  ;;  %v260_v9 = vld [vmem:[#allocation9 + $0x58] sm:$0xff]  ;;  %v5216_v12 = vcombine.high %v251_v6, %v259_v7 }
  0x62   :  { %1019 = vmatprep.subr.bf16.mxu0 %v5228_v14  ;;  %v5244_v24 = vcombine.high %v281_v17, %v289_v19  ;;  %1060 = vmatprep.subr.bf16.mxu1 %v5230_v18  ;;  %v5246_v25 = vcombine.high %v282_v20, %v290_v21  ;;  %v297_v26 = vld [vmem:[#allocation9 + $0x180] sm:$0xff]  ;;  %v298_v28 = vld [vmem:[#allocation9 + $0x188] sm:$0xff]  ;;  %v5243_v30 = vcombine.low %v281_v17, %v289_v19  ;;  %v267_v14 = vld [vmem:[#allocation9 + $0x90] sm:$0xff] }
  0x63   :  { %v305_v27 = vld [vmem:[#allocation9 + $0x1c0] sm:$0xff]  ;;  %v306_v29 = vld [vmem:[#allocation9 + $0x1c8] sm:$0xff]  ;;  %v5245_v31 = vcombine.low %v282_v20, %v290_v21  ;;  %v5218_v13 = vcombine.high %v252_v8, %v260_v9  ;;  %v275_v15 = vld [vmem:[#allocation9 + $0xd0] sm:$0xff]  ;;  %v5215_v19 = vcombine.low %v251_v6, %v259_v7  ;;  %v5217_v20 = vcombine.low %v252_v8, %v260_v9 }
  0x64   :  { %v5260_v32 = vcombine.high %v297_v26, %v305_v27  ;;  %v5262_v33 = vcombine.high %v298_v28, %v306_v29  ;;  %v313_v34 = vld [vmem:[#allocation9 + $0x200] sm:$0xff]  ;;  %v314_v36 = vld [vmem:[#allocation9 + $0x208] sm:$0xff]  ;;  %v5259_v38 = vcombine.low %v297_v26, %v305_v27  ;;  %v5261_v39 = vcombine.low %v298_v28, %v306_v29  ;;  %v268_v16 = vld [vmem:[#allocation9 + $0x98] sm:$0xff] }
  0x65   :  { %1020 = vmatpush1.bf16.msra.mxu0 %v5227_v22  ;;  %1061 = vmatpush1.bf16.msra.mxu1 %v5229_v23  ;;  %v321_v35 = vld [vmem:[#allocation9 + $0x240] sm:$0xff]  ;;  %v322_v37 = vld [vmem:[#allocation9 + $0x248] sm:$0xff]  ;;  %v276_v17 = vld [vmem:[#allocation9 + $0xd8] sm:$0xff]  ;;  %v5232_v21 = vcombine.high %v267_v14, %v275_v15  ;;  %v5231_v27 = vcombine.low %v267_v14, %v275_v15 }
  0x66   :  { %1021 = vmatprep.subr.bf16.mxu0 %v5244_v24  ;;  %1062 = vmatprep.subr.bf16.mxu1 %v5246_v25  ;;  %v5276_v40 = vcombine.high %v313_v34, %v321_v35  ;;  %v5278_v41 = vcombine.high %v314_v36, %v322_v37  ;;  %v329_v42 = vld [vmem:[#allocation9 + $0x280] sm:$0xff]  ;;  %v330_v44 = vld [vmem:[#allocation9 + $0x288] sm:$0xff]  ;;  %v5275_v46 = vcombine.low %v313_v34, %v321_v35  ;;  %v283_v23 = vld [vmem:[#allocation9 + $0x110] sm:$0xff] }
  0x67   :  { %v337_v43 = vld [vmem:[#allocation9 + $0x2c0] sm:$0xff]  ;;  %v338_v45 = vld [vmem:[#allocation9 + $0x2c8] sm:$0xff]  ;;  %v5277_v47 = vcombine.low %v314_v36, %v322_v37  ;;  %v5234_v22 = vcombine.high %v268_v16, %v276_v17  ;;  %v291_v24 = vld [vmem:[#allocation9 + $0x150] sm:$0xff]  ;;  %v5233_v28 = vcombine.low %v268_v16, %v276_v17 }
  0x68   :  { %v5292_v48 = vcombine.high %v329_v42, %v337_v43  ;;  %v5294_v49 = vcombine.high %v330_v44, %v338_v45  ;;  %v345_v50 = vld [vmem:[#allocation9 + $0x300] sm:$0xff]  ;;  %v346_v52 = vld [vmem:[#allocation9 + $0x308] sm:$0xff]  ;;  %v5291_v54 = vcombine.low %v329_v42, %v337_v43  ;;  %v5293_v55 = vcombine.low %v330_v44, %v338_v45  ;;  %v284_v25 = vld [vmem:[#allocation9 + $0x118] sm:$0xff] }
  0x69   :  { %1022 = vmatpush1.bf16.msra.mxu0 %v5243_v30  ;;  %1063 = vmatpush1.bf16.msra.mxu1 %v5245_v31  ;;  %v353_v51 = vld [vmem:[#allocation9 + $0x340] sm:$0xff]  ;;  %v354_v53 = vld [vmem:[#allocation9 + $0x348] sm:$0xff]  ;;  %v292_v26 = vld [vmem:[#allocation9 + $0x158] sm:$0xff]  ;;  %v5248_v29 = vcombine.high %v283_v23, %v291_v24  ;;  %v5247_v35 = vcombine.low %v283_v23, %v291_v24 }
  0x6a   :  { %1023 = vmatprep.subr.bf16.mxu0 %v5260_v32  ;;  %1064 = vmatprep.subr.bf16.mxu1 %v5262_v33  ;;  %v5308_v56 = vcombine.high %v345_v50, %v353_v51  ;;  %v5310_v57 = vcombine.high %v346_v52, %v354_v53  ;;  %v361_v58 = vld [vmem:[#allocation9 + $0x380] sm:$0xff]  ;;  %v362_v60 = vld [vmem:[#allocation9 + $0x388] sm:$0xff]  ;;  %v5307_v62 = vcombine.low %v345_v50, %v353_v51  ;;  %v299_v31 = vld [vmem:[#allocation9 + $0x190] sm:$0xff] }
  0x6b   :  { %v369_v59 = vld [vmem:[#allocation9 + $0x3c0] sm:$0xff]  ;;  %v370_v61 = vld [vmem:[#allocation9 + $0x3c8] sm:$0xff]  ;;  %v5309_v63 = vcombine.low %v346_v52, %v354_v53  ;;  %v5250_v30 = vcombine.high %v284_v25, %v292_v26  ;;  %v307_v32 = vld [vmem:[#allocation9 + $0x1d0] sm:$0xff]  ;;  %v5249_v36 = vcombine.low %v284_v25, %v292_v26 }
  0x6c   :  { %v5324_v4 = vcombine.high %v361_v58, %v369_v59  ;;  %v5326_v5 = vcombine.high %v362_v60, %v370_v61  ;;  %v5323_v10 = vcombine.low %v361_v58, %v369_v59  ;;  %v5325_v11 = vcombine.low %v362_v60, %v370_v61  ;;  %v6229_v18 = vld [vmem:[%s6525_s0] sm:$0xf]  ;;  %v300_v33 = vld [vmem:[#allocation9 + $0x198] sm:$0xff]  ;;  %v331_v44 = vld [vmem:[#allocation9 + $0x290] sm:$0xff] }
  0x6d   :  { %1024 = vmatpush1.bf16.msra.mxu0 %v5259_v38  ;;  %1065 = vmatpush1.bf16.msra.mxu1 %v5261_v39  ;;  %v308_v34 = vld [vmem:[#allocation9 + $0x1d8] sm:$0xff]  ;;  %v5264_v37 = vcombine.high %v299_v31, %v307_v32  ;;  %v315_v38 = vld [vmem:[#allocation9 + $0x210] sm:$0xff]  ;;  %v5263_v43 = vcombine.low %v299_v31, %v307_v32  ;;  %v253_v8 = vld [vmem:[#allocation9 + $0x20] sm:$0xff] }
  0x6e   :  { %1025 = vmatprep.subr.bf16.mxu0 %v5276_v40  ;;  %1066 = vmatprep.subr.bf16.mxu1 %v5278_v41  ;;  %v5266_v39 = vcombine.high %v300_v33, %v308_v34  ;;  %v323_v40 = vld [vmem:[#allocation9 + $0x250] sm:$0xff]  ;;  %v316_v41 = vld [vmem:[#allocation9 + $0x218] sm:$0xff]  ;;  %v261_v9 = vld [vmem:[#allocation9 + $0x60] sm:$0xff] }
  0x6f   :  { %v324_v42 = vld [vmem:[#allocation9 + $0x258] sm:$0xff]  ;;  %v339_v45 = vld [vmem:[#allocation9 + $0x2d0] sm:$0xff]  ;;  %v5279_v51 = vcombine.low %v315_v38, %v323_v40  ;;  %v269_v16 = vld [vmem:[#allocation9 + $0xa0] sm:$0xff]  ;;  %v5219_v24 = vcombine.low %v253_v8, %v261_v9 }
  0x70   :  { %v5282_v50 = vcombine.high %v316_v41, %v324_v42  ;;  %v347_v52 = vld [vmem:[#allocation9 + $0x310] sm:$0xff]  ;;  %v5295_v59 = vcombine.low %v331_v44, %v339_v45  ;;  %v277_v17 = vld [vmem:[#allocation9 + $0xe0] sm:$0xff] }
  0x71   :  { %1026 = vmatpush1.bf16.msra.mxu0 %v5275_v46  ;;  %1067 = vmatpush1.bf16.msra.mxu1 %v5277_v47  ;;  %v5265_v46 = vcombine.low %v300_v33, %v308_v34  ;;  %v5280_v47 = vcombine.high %v315_v38, %v323_v40  ;;  %v355_v53 = vld [vmem:[#allocation9 + $0x350] sm:$0xff]  ;;  %v285_v25 = vld [vmem:[#allocation9 + $0x120] sm:$0xff]  ;;  %v5235_v32 = vcombine.low %v269_v16, %v277_v17  ;;  %v310_v38 = vld [vmem:[#allocation9 + $0x1e8] sm:$0xff] }
  0x72   :  { %1027 = vmatprep.subr.bf16.mxu0 %v5292_v48  ;;  %1068 = vmatprep.subr.bf16.mxu1 %v5294_v49  ;;  %v332_v48 = vld [vmem:[#allocation9 + $0x298] sm:$0xff]  ;;  %v363_v60 = vld [vmem:[#allocation9 + $0x390] sm:$0xff]  ;;  %v5311_v7 = vcombine.low %v347_v52, %v355_v53  ;;  %v293_v26 = vld [vmem:[#allocation9 + $0x160] sm:$0xff] }
  0x73   :  { %v340_v49 = vld [vmem:[#allocation9 + $0x2d8] sm:$0xff]  ;;  %v371_v61 = vld [vmem:[#allocation9 + $0x3d0] sm:$0xff]  ;;  %v301_v33 = vld [vmem:[#allocation9 + $0x1a0] sm:$0xff]  ;;  %v5251_v40 = vcombine.low %v285_v25, %v293_v26 }
  0x74   :  { %v5298_v58 = vcombine.high %v332_v48, %v340_v49  ;;  %v5327_v15 = vcombine.low %v363_v60, %v371_v61  ;;  %v309_v34 = vld [vmem:[#allocation9 + $0x1e0] sm:$0xff] }
  0x75   :  { %1028 = vmatpush1.bf16.msra.mxu0 %v5291_v54  ;;  %1069 = vmatpush1.bf16.msra.mxu1 %v5293_v55  ;;  %v5281_v54 = vcombine.low %v316_v41, %v324_v42  ;;  %v5296_v55 = vcombine.high %v331_v44, %v339_v45  ;;  %v317_v41 = vld [vmem:[#allocation9 + $0x220] sm:$0xff]  ;;  %v5268_v44 = vcombine.high %v301_v33, %v309_v34  ;;  %v318_v45 = vld [vmem:[#allocation9 + $0x228] sm:$0xff] }
  0x76   :  { %1029 = vmatprep.subr.bf16.mxu0 %v5308_v56  ;;  %1070 = vmatprep.subr.bf16.mxu1 %v5310_v57  ;;  %v348_v56 = vld [vmem:[#allocation9 + $0x318] sm:$0xff]  ;;  %v325_v42 = vld [vmem:[#allocation9 + $0x260] sm:$0xff] }
  0x77   :  { %v356_v57 = vld [vmem:[#allocation9 + $0x358] sm:$0xff] }
  0x78   :  { %v5314_v6 = vcombine.high %v348_v56, %v356_v57 }
  0x79   :  { %1030 = vmatpush1.bf16.msra.mxu0 %v5307_v62  ;;  %1071 = vmatpush1.bf16.msra.mxu1 %v5309_v63  ;;  %v5297_v62 = vcombine.low %v332_v48, %v340_v49  ;;  %v5312_v63 = vcombine.high %v347_v52, %v355_v53  ;;  %v5267_v48 = vcombine.low %v301_v33, %v309_v34  ;;  %v333_v49 = vld [vmem:[#allocation9 + $0x2a0] sm:$0xff]  ;;  %v334_v53 = vld [vmem:[#allocation9 + $0x2a8] sm:$0xff]  ;;  %v287_v33 = vld [vmem:[#allocation9 + $0x130] sm:$0xff] }
  0x7a   :  { %1031 = vmatprep.subr.bf16.mxu0 %v5324_v4  ;;  %1072 = vmatprep.subr.bf16.mxu1 %v5326_v5  ;;  %v364_v4 = vld [vmem:[#allocation9 + $0x398] sm:$0xff]  ;;  %v5284_v52 = vcombine.high %v317_v41, %v325_v42  ;;  %v295_v34 = vld [vmem:[#allocation9 + $0x170] sm:$0xff] }
  0x7b   :  { %v372_v5 = vld [vmem:[#allocation9 + $0x3d8] sm:$0xff] }
  0x7c   :  { %v5330_v14 = vcombine.high %v364_v4, %v372_v5 }
  0x7d   :  { %1032 = vmatpush1.bf16.msra.mxu0 %v5323_v10  ;;  %1073 = vmatpush1.bf16.msra.mxu1 %v5325_v11  ;;  %v5313_v10 = vcombine.low %v348_v56, %v356_v57  ;;  %v5328_v11 = vcombine.high %v363_v60, %v371_v61  ;;  %v5283_v56 = vcombine.low %v317_v41, %v325_v42  ;;  %v349_v57 = vld [vmem:[#allocation9 + $0x320] sm:$0xff]  ;;  %v350_v61 = vld [vmem:[#allocation9 + $0x328] sm:$0xff]  ;;  %v303_v41 = vld [vmem:[#allocation9 + $0x1b0] sm:$0xff] }
  0x7e   :  { %1099 = vmatprep.subr.bf16.mxu0 %v5216_v12  ;;  %1140 = vmatprep.subr.bf16.mxu1 %v5218_v13  ;;  %v254_v12 = vld [vmem:[#allocation9 + $0x28] sm:$0xff]  ;;  %v311_v42 = vld [vmem:[#allocation9 + $0x1f0] sm:$0xff] }
  0x7f   :  { %v262_v13 = vld [vmem:[#allocation9 + $0x68] sm:$0xff] }
  0x80   :  { %1050 = vmatmul.mubr.bf16.vlgmr.msra.gmra.mrb[0].mxu0 %v6229_v18  ;;  %1091 = vmatmul.mubr.bf16.vlgmr.msra.gmra.mrb[0].mxu1 %v6229_v18  ;;  %v5222_v23 = vcombine.high %v254_v12, %v262_v13 }
  0x81   :  { %1100 = vmatpush1.bf16.msra.mxu0 %v5215_v19  ;;  %1141 = vmatpush1.bf16.msra.mxu1 %v5217_v20  ;;  %v5329_v19 = vcombine.low %v364_v4, %v372_v5  ;;  %v5220_v20 = vcombine.high %v253_v8, %v261_v9  ;;  %v365_v8 = vld [vmem:[#allocation9 + $0x3a0] sm:$0xff] }
  0x82   :  { %1101 = vmatprep.subr.bf16.mxu0 %v5232_v21  ;;  %1142 = vmatprep.subr.bf16.mxu1 %v5234_v22  ;;  %v270_v21 = vld [vmem:[#allocation9 + $0xa8] sm:$0xff]  ;;  %v373_v9 = vld [vmem:[#allocation9 + $0x3e0] sm:$0xff] }
  0x83   :  { %1131 = vmatprep.mubr.bf16.mxu0 %v6032_v0  ;;  %1172 = vmatprep.mubr.bf16.mxu1 %v6032_v0  ;;  %v278_v22 = vld [vmem:[#allocation9 + $0xe8] sm:$0xff] }
  0x84   :  { %v5238_v31 = vcombine.high %v270_v21, %v278_v22 }
  0x85   :  { %1102 = vmatpush1.bf16.msra.mxu0 %v5231_v27  ;;  %1143 = vmatpush1.bf16.msra.mxu1 %v5233_v28  ;;  %v5221_v27 = vcombine.low %v254_v12, %v262_v13  ;;  %v5236_v28 = vcombine.high %v269_v16, %v277_v17  ;;  %v255_v16 = vld [vmem:[#allocation9 + $0x30] sm:$0xff] }
  0x86   :  { %1103 = vmatprep.subr.bf16.mxu0 %v5248_v29  ;;  %1144 = vmatprep.subr.bf16.mxu1 %v5250_v30  ;;  %v286_v29 = vld [vmem:[#allocation9 + $0x128] sm:$0xff]  ;;  %v263_v17 = vld [vmem:[#allocation9 + $0x70] sm:$0xff] }
  0x87   :  { %v294_v30 = vld [vmem:[#allocation9 + $0x168] sm:$0xff] }
  0x89   :  { %1104 = vmatpush1.bf16.msra.mxu0 %v5247_v35  ;;  %1145 = vmatpush1.bf16.msra.mxu1 %v5249_v36  ;;  %v5237_v35 = vcombine.low %v270_v21, %v278_v22  ;;  %v5252_v36 = vcombine.high %v285_v25, %v293_v26  ;;  %v5331_v21 = vcombine.low %v365_v8, %v373_v9  ;;  %v271_v25 = vld [vmem:[#allocation9 + $0xb0] sm:$0xff] }
  0x8a   :  { %1105 = vmatprep.subr.bf16.mxu0 %v5264_v37  ;;  %1146 = vmatprep.subr.bf16.mxu1 %v5266_v39  ;;  %v302_v37 = vld [vmem:[#allocation9 + $0x1a8] sm:$0xff]  ;;  %v5254_v39 = vcombine.high %v286_v29, %v294_v30  ;;  %v279_v26 = vld [vmem:[#allocation9 + $0xf0] sm:$0xff] }
  0x8d   :  { %1106 = vmatpush1.bf16.msra.mxu0 %v5263_v43  ;;  %1147 = vmatpush1.bf16.msra.mxu1 %v5265_v46  ;;  %v5253_v43 = vcombine.low %v286_v29, %v294_v30  ;;  %v326_v46 = vld [vmem:[#allocation9 + $0x268] sm:$0xff]  ;;  %v5223_v29 = vcombine.low %v255_v16, %v263_v17 }
  0x8e   :  { %1107 = vmatprep.subr.bf16.mxu0 %v5280_v47  ;;  %1148 = vmatprep.subr.bf16.mxu1 %v5282_v50  ;;  %v5270_v47 = vcombine.high %v302_v37, %v310_v38  ;;  %v341_v50 = vld [vmem:[#allocation9 + $0x2e0] sm:$0xff] }
  0x8f   :  { %v5300_v60 = vcombine.high %v333_v49, %v341_v50  ;;  %v5299_v4 = vcombine.low %v333_v49, %v341_v50  ;;  %v319_v49 = vld [vmem:[#allocation9 + $0x230] sm:$0xff] }
  0x90   :  { %v327_v50 = vld [vmem:[#allocation9 + $0x270] sm:$0xff] }
  0x91   :  { %1108 = vmatpush1.bf16.msra.mxu0 %v5279_v51  ;;  %1149 = vmatpush1.bf16.msra.mxu1 %v5281_v54  ;;  %v5269_v51 = vcombine.low %v302_v37, %v310_v38  ;;  %v342_v54 = vld [vmem:[#allocation9 + $0x2e8] sm:$0xff]  ;;  %v5239_v37 = vcombine.low %v271_v25, %v279_v26 }
  0x92   :  { %1109 = vmatprep.subr.bf16.mxu0 %v5296_v55  ;;  %1150 = vmatprep.subr.bf16.mxu1 %v5298_v58  ;;  %v5286_v55 = vcombine.high %v318_v45, %v326_v46  ;;  %v357_v58 = vld [vmem:[#allocation9 + $0x360] sm:$0xff]  ;;  %v5301_v5 = vcombine.low %v334_v53, %v342_v54 }
  0x93   :  { %v5315_v12 = vcombine.low %v349_v57, %v357_v58 }
  0x95   :  { %1110 = vmatpush1.bf16.msra.mxu0 %v5295_v59  ;;  %1151 = vmatpush1.bf16.msra.mxu1 %v5297_v62  ;;  %v5285_v59 = vcombine.low %v318_v45, %v326_v46  ;;  %v358_v62 = vld [vmem:[#allocation9 + $0x368] sm:$0xff]  ;;  %v5255_v45 = vcombine.low %v287_v33, %v295_v34 }
  0x96   :  { %1111 = vmatprep.subr.bf16.mxu0 %v5312_v63  ;;  %1152 = vmatprep.subr.bf16.mxu1 %v5314_v6  ;;  %v5302_v63 = vcombine.high %v334_v53, %v342_v54  ;;  %v5316_v6 = vcombine.high %v349_v57, %v357_v58  ;;  %v5317_v13 = vcombine.low %v350_v61, %v358_v62  ;;  %v335_v57 = vld [vmem:[#allocation9 + $0x2b0] sm:$0xff] }
  0x97   :  { %v5271_v53 = vcombine.low %v303_v41, %v311_v42  ;;  %v343_v58 = vld [vmem:[#allocation9 + $0x2f0] sm:$0xff] }
  0x99   :  { %1112 = vmatpush1.bf16.msra.mxu0 %v5311_v7  ;;  %1153 = vmatpush1.bf16.msra.mxu1 %v5313_v10  ;;  %v5318_v7 = vcombine.high %v350_v61, %v358_v62  ;;  %v366_v10 = vld [vmem:[#allocation9 + $0x3a8] sm:$0xff]  ;;  %v5287_v61 = vcombine.low %v319_v49, %v327_v50 }
  0x9a   :  { %1113 = vmatprep.subr.bf16.mxu0 %v5328_v11  ;;  %1154 = vmatprep.subr.bf16.mxu1 %v5330_v14  ;;  %v374_v11 = vld [vmem:[#allocation9 + $0x3e8] sm:$0xff]  ;;  %v5332_v14 = vcombine.high %v365_v8, %v373_v9  ;;  %v360_v8 = vld [vmem:[#allocation9 + $0x378] sm:$0xff]  ;;  %v5303_v9 = vcombine.low %v335_v57, %v343_v58 }
  0x9b   :  { %v5333_v22 = vcombine.low %v366_v10, %v374_v11 }
  0x9d   :  { %1114 = vmatpush1.bf16.msra.mxu0 %v5327_v15  ;;  %1155 = vmatpush1.bf16.msra.mxu1 %v5329_v19  ;;  %v5334_v15 = vcombine.high %v366_v10, %v374_v11  ;;  %v256_v19 = vld [vmem:[#allocation9 + $0x38] sm:$0xff] }
  0x9e   :  { %1181 = vmatprep.subr.bf16.mxu0 %v5220_v20  ;;  %1222 = vmatprep.subr.bf16.mxu1 %v5222_v23  ;;  %v264_v20 = vld [vmem:[#allocation9 + $0x78] sm:$0xff]  ;;  %v5224_v23 = vcombine.high %v255_v16, %v263_v17 }
  0x9f   :  { %v5225_v30 = vcombine.low %v256_v19, %v264_v20  ;;  %v376_v16 = vld [vmem:[#allocation9 + $0x3f8] sm:$0xff] }
  0xa0   :  { %1132 = vmatmul.mubr.bf16.vlgmr.msra.gmra.mrb[4].mxu0 %v6229_v18  ;;  %1173 = vmatmul.mubr.bf16.vlgmr.msra.gmra.mrb[4].mxu1 %v6229_v18 }
  0xa1   :  { %1182 = vmatpush1.bf16.msra.mxu0 %v5219_v24  ;;  %1223 = vmatpush1.bf16.msra.mxu1 %v5221_v27  ;;  %v5226_v24 = vcombine.high %v256_v19, %v264_v20  ;;  %v272_v27 = vld [vmem:[#allocation9 + $0xb8] sm:$0xff] }
  0xa2   :  { %1183 = vmatprep.subr.bf16.mxu0 %v5236_v28  ;;  %1224 = vmatprep.subr.bf16.mxu1 %v5238_v31  ;;  %v280_v28 = vld [vmem:[#allocation9 + $0xf8] sm:$0xff]  ;;  %v5240_v31 = vcombine.high %v271_v25, %v279_v26  ;;  %v5753_v25 = vld [vmem:[#allocation11 + $0x4] ss:$16 sps:$4 sm:$0xff]  }
  0xa3   :  { %1213 = vmatprep.mubr.bf16.mxu0 %v6032_v0  ;;  %1254 = vmatprep.mubr.bf16.mxu1 %v6032_v0  ;;  %v5241_v38 = vcombine.low %v272_v27, %v280_v28  ;;  %v5754_v26 = vld [vmem:[#allocation11 + $0x8] ss:$16 sps:$4 sm:$0xff]  }
  0xa5   :  { %1184 = vmatpush1.bf16.msra.mxu0 %v5235_v32  ;;  %1225 = vmatpush1.bf16.msra.mxu1 %v5237_v35  ;;  %v5242_v32 = vcombine.high %v272_v27, %v280_v28  ;;  %v288_v35 = vld [vmem:[#allocation9 + $0x138] sm:$0xff]  ;;  %v5759_v28 = vld [vmem:[#allocation11 + $0x24] ss:$16 sps:$4 sm:$0xff]  }
  0xa6   :  { %1185 = vmatprep.subr.bf16.mxu0 %v5252_v36  ;;  %1226 = vmatprep.subr.bf16.mxu1 %v5254_v39  ;;  %v296_v36 = vld [vmem:[#allocation9 + $0x178] sm:$0xff]  ;;  %v5256_v39 = vcombine.high %v287_v33, %v295_v34  ;;  %v5763_v34 = vld [vmem:[#allocation11 + $0x40] ss:$16 sps:$4 sm:$0xff]  }
  0xa7   :  { %v5257_v46 = vcombine.low %v288_v35, %v296_v36  ;;  %v5756_v27 = vld [vmem:[#allocation11 + $0xc] ss:$16 sps:$4 sm:$0xff]  }
  0xa8   :  { %v5768_v33 = vld [vmem:[#allocation11 + $0x4c] ss:$16 sps:$4 sm:$0xff]  }
  0xa9   :  { %1186 = vmatpush1.bf16.msra.mxu0 %v5251_v40  ;;  %1227 = vmatpush1.bf16.msra.mxu1 %v5253_v43  ;;  %v5258_v40 = vcombine.high %v288_v35, %v296_v36  ;;  %v304_v43 = vld [vmem:[#allocation9 + $0x1b8] sm:$0xff]  ;;  %v5771_v35 = vld [vmem:[#allocation11 + $0x64] ss:$16 sps:$4 sm:$0xff]  }
  0xaa   :  { %1187 = vmatprep.subr.bf16.mxu0 %v5268_v44  ;;  %1228 = vmatprep.subr.bf16.mxu1 %v5270_v47  ;;  %v312_v44 = vld [vmem:[#allocation9 + $0x1f8] sm:$0xff]  ;;  %v5272_v47 = vcombine.high %v303_v41, %v311_v42  ;;  %v5775_v41 = vld [vmem:[#allocation11 + $0x80] ss:$16 sps:$4 sm:$0xff]  }
  0xab   :  { %v5273_v54 = vcombine.low %v304_v43, %v312_v44  ;;  %v5774_v36 = vld [vmem:[#allocation11 + $0x6c] ss:$16 sps:$4 sm:$0xff]   ;;  %v5778_v42 = vld [vmem:[#allocation11 + $0x88] ss:$16 sps:$4 sm:$0xff]  }
  0xad   :  { %1188 = vmatpush1.bf16.msra.mxu0 %v5267_v48  ;;  %1229 = vmatpush1.bf16.msra.mxu1 %v5269_v51  ;;  %v5274_v48 = vcombine.high %v304_v43, %v312_v44  ;;  %v320_v51 = vld [vmem:[#allocation9 + $0x238] sm:$0xff]  ;;  %v5783_v43 = vld [vmem:[#allocation11 + $0xa4] ss:$16 sps:$4 sm:$0xff]  }
  0xae   :  { %1189 = vmatprep.subr.bf16.mxu0 %v5284_v52  ;;  %1230 = vmatprep.subr.bf16.mxu1 %v5286_v55  ;;  %v328_v52 = vld [vmem:[#allocation9 + $0x278] sm:$0xff]  ;;  %v5288_v55 = vcombine.high %v319_v49, %v327_v50 }
  0xaf   :  { %v5289_v62 = vcombine.low %v320_v51, %v328_v52  ;;  %v5786_v44 = vld [vmem:[#allocation11 + $0xac] ss:$16 sps:$4 sm:$0xff]   ;;  %v5790_v49 = vld [vmem:[#allocation11 + $0xc8] ss:$16 sps:$4 sm:$0xff]  }
  0xb0   :  { %v5792_v50 = vld [vmem:[#allocation11 + $0xcc] ss:$16 sps:$4 sm:$0xff]  }
  0xb1   :  { %1190 = vmatpush1.bf16.msra.mxu0 %v5283_v56  ;;  %1231 = vmatpush1.bf16.msra.mxu1 %v5285_v59  ;;  %v5290_v56 = vcombine.high %v320_v51, %v328_v52  ;;  %v336_v59 = vld [vmem:[#allocation9 + $0x2b8] sm:$0xff]  ;;  %v5795_v51 = vld [vmem:[#allocation11 + $0xe4] ss:$16 sps:$4 sm:$0xff]  }
  0xb2   :  { %1191 = vmatprep.subr.bf16.mxu0 %v5300_v60  ;;  %1232 = vmatprep.subr.bf16.mxu1 %v5302_v63  ;;  %v344_v60 = vld [vmem:[#allocation9 + $0x2f8] sm:$0xff]  ;;  %v5304_v63 = vcombine.high %v335_v57, %v343_v58  ;;  %v5799_v57 = vld [vmem:[#allocation11 + $0x100] ss:$16 sps:$4 sm:$0xff]  }
  0xb3   :  { %v5305_v10 = vcombine.low %v336_v59, %v344_v60  ;;  %v5798_v52 = vld [vmem:[#allocation11 + $0xec] ss:$16 sps:$4 sm:$0xff]   ;;  %v5802_v58 = vld [vmem:[#allocation11 + $0x108] ss:$16 sps:$4 sm:$0xff]  }
  0xb5   :  { %1192 = vmatpush1.bf16.msra.mxu0 %v5299_v4  ;;  %1233 = vmatpush1.bf16.msra.mxu1 %v5301_v5  ;;  %v5306_v4 = vcombine.high %v336_v59, %v344_v60  ;;  %v351_v5 = vld [vmem:[#allocation9 + $0x330] sm:$0xff]  ;;  %v5810_v60 = vld [vmem:[#allocation11 + $0x12c] ss:$16 sps:$4 sm:$0xff]  }
  0xb6   :  { %1193 = vmatprep.subr.bf16.mxu0 %v5316_v6  ;;  %1234 = vmatprep.subr.bf16.mxu1 %v5318_v7  ;;  %v359_v6 = vld [vmem:[#allocation9 + $0x370] sm:$0xff]  ;;  %v352_v7 = vld [vmem:[#allocation9 + $0x338] sm:$0xff] }
  0xb7   :  { %v5320_v11 = vcombine.high %v351_v5, %v359_v6  ;;  %v5319_v17 = vcombine.low %v351_v5, %v359_v6  ;;  %v5321_v19 = vcombine.low %v352_v7, %v360_v8  ;;  %v5807_v59 = vld [vmem:[#allocation11 + $0x124] ss:$16 sps:$4 sm:$0xff]   ;;  %v5811_v5 = vld [vmem:[#allocation11 + $0x140] ss:$16 sps:$4 sm:$0xff]   ;;  %v5814_v6 = vld [vmem:[#allocation11 + $0x148] ss:$16 sps:$4 sm:$0xff]  }
  0xb9   :  { %1194 = vmatpush1.bf16.msra.mxu0 %v5315_v12  ;;  %1235 = vmatpush1.bf16.msra.mxu1 %v5317_v13  ;;  %v5322_v12 = vcombine.high %v352_v7, %v360_v8  ;;  %v367_v13 = vld [vmem:[#allocation9 + $0x3b0] sm:$0xff]  ;;  %v5822_v8 = vld [vmem:[#allocation11 + $0x16c] ss:$16 sps:$4 sm:$0xff]  }
  0xba   :  { %1195 = vmatprep.subr.bf16.mxu0 %v5332_v14  ;;  %1236 = vmatprep.subr.bf16.mxu1 %v5334_v15  ;;  %v375_v14 = vld [vmem:[#allocation9 + $0x3f0] sm:$0xff]  ;;  %v368_v15 = vld [vmem:[#allocation9 + $0x3b8] sm:$0xff] }
  0xbb   :  { %v5336_v20 = vcombine.high %v367_v13, %v375_v14  ;;  %v5819_v7 = vld [vmem:[#allocation11 + $0x164] ss:$16 sps:$4 sm:$0xff]  }
  0xbd   :  { %1196 = vmatpush1.bf16.msra.mxu0 %v5331_v21  ;;  %1237 = vmatpush1.bf16.msra.mxu1 %v5333_v22  ;;  %v5338_v21 = vcombine.high %v368_v15, %v376_v16  ;;  %v5335_v22 = vcombine.low %v367_v13, %v375_v14  ;;  %v5823_v13 = vld [vmem:[#allocation11 + $0x180] ss:$16 sps:$4 sm:$0xff]   ;;  %v5826_v14 = vld [vmem:[#allocation11 + $0x188] ss:$16 sps:$4 sm:$0xff]  }
  0xbe   :  { %1263 = vmatprep.subr.bf16.mxu0 %v5224_v23  ;;  %1304 = vmatprep.subr.bf16.mxu1 %v5226_v24  ;;  %v5337_v23 = vcombine.low %v368_v15, %v376_v16  ;;  %v5751_v24 = vld [vmem:[#allocation11] ss:$16 sps:$4 sm:$0xff]   ;;  %v5831_v15 = vld [vmem:[#allocation11 + $0x1a4] ss:$16 sps:$4 sm:$0xff]   ;;  %v5834_v16 = vld [vmem:[#allocation11 + $0x1ac] ss:$16 sps:$4 sm:$0xff]  }
  0xc0   :  { %1214 = vmatmul.mubr.bf16.vlgmr.msra.gmra.mrb[8].mxu0 %v6229_v18  ;;  %1255 = vmatmul.mubr.bf16.vlgmr.msra.gmra.mrb[8].mxu1 %v6229_v18 }
  0xc1   :  { %1264 = vmatpush1.bf16.msra.mxu0 %v5223_v29  ;;  %1305 = vmatpush1.bf16.msra.mxu1 %v5225_v30  ;;  %v5762_v29 = vld [vmem:[#allocation11 + $0x2c] ss:$16 sps:$4 sm:$0xff]   ;;  %v5757_v30 = vld [vmem:[#allocation11 + $0x20] ss:$16 sps:$4 sm:$0xff]  }
  0xc2   :  { %1265 = vmatprep.subr.bf16.mxu0 %v5240_v31  ;;  %1306 = vmatprep.subr.bf16.mxu1 %v5242_v32  ;;  %v5760_v31 = vld [vmem:[#allocation11 + $0x28] ss:$16 sps:$4 sm:$0xff]   ;;  %v5765_v32 = vld [vmem:[#allocation11 + $0x44] ss:$16 sps:$4 sm:$0xff]  }
  0xc3   :  { %1295 = vmatprep.mubr.bf16.mxu0 %v6032_v0  ;;  %1336 = vmatprep.mubr.bf16.mxu1 %v6032_v0 }
  0xc5   :  { %1266 = vmatpush1.bf16.msra.mxu0 %v5239_v37  ;;  %1307 = vmatpush1.bf16.msra.mxu1 %v5241_v38  ;;  %v5769_v37 = vld [vmem:[#allocation11 + $0x60] ss:$16 sps:$4 sm:$0xff]   ;;  %v5772_v38 = vld [vmem:[#allocation11 + $0x68] ss:$16 sps:$4 sm:$0xff]  }
  0xc6   :  { %1267 = vmatprep.subr.bf16.mxu0 %v5256_v39  ;;  %1308 = vmatprep.subr.bf16.mxu1 %v5258_v40  ;;  %v5777_v39 = vld [vmem:[#allocation11 + $0x84] ss:$16 sps:$4 sm:$0xff]   ;;  %v5780_v40 = vld [vmem:[#allocation11 + $0x8c] ss:$16 sps:$4 sm:$0xff]  }
  0xc9   :  { %1268 = vmatpush1.bf16.msra.mxu0 %v5255_v45  ;;  %1309 = vmatpush1.bf16.msra.mxu1 %v5257_v46  ;;  %v5781_v45 = vld [vmem:[#allocation11 + $0xa0] ss:$16 sps:$4 sm:$0xff]   ;;  %v5784_v46 = vld [vmem:[#allocation11 + $0xa8] ss:$16 sps:$4 sm:$0xff]  }
  0xca   :  { %1269 = vmatprep.subr.bf16.mxu0 %v5272_v47  ;;  %1310 = vmatprep.subr.bf16.mxu1 %v5274_v48  ;;  %v5787_v47 = vld [vmem:[#allocation11 + $0xc0] ss:$16 sps:$4 sm:$0xff]   ;;  %v5789_v48 = vld [vmem:[#allocation11 + $0xc4] ss:$16 sps:$4 sm:$0xff]  }
  0xcd   :  { %1270 = vmatpush1.bf16.msra.mxu0 %v5271_v53  ;;  %1311 = vmatpush1.bf16.msra.mxu1 %v5273_v54  ;;  %v5793_v53 = vld [vmem:[#allocation11 + $0xe0] ss:$16 sps:$4 sm:$0xff]   ;;  %v5796_v54 = vld [vmem:[#allocation11 + $0xe8] ss:$16 sps:$4 sm:$0xff]  }
  0xce   :  { %1271 = vmatprep.subr.bf16.mxu0 %v5288_v55  ;;  %1312 = vmatprep.subr.bf16.mxu1 %v5290_v56  ;;  %v5801_v55 = vld [vmem:[#allocation11 + $0x104] ss:$16 sps:$4 sm:$0xff]   ;;  %v5804_v56 = vld [vmem:[#allocation11 + $0x10c] ss:$16 sps:$4 sm:$0xff]  }
  0xd1   :  { %1272 = vmatpush1.bf16.msra.mxu0 %v5287_v61  ;;  %1313 = vmatpush1.bf16.msra.mxu1 %v5289_v62  ;;  %v5805_v61 = vld [vmem:[#allocation11 + $0x120] ss:$16 sps:$4 sm:$0xff]   ;;  %v5808_v62 = vld [vmem:[#allocation11 + $0x128] ss:$16 sps:$4 sm:$0xff]  }
  0xd2   :  { %1273 = vmatprep.subr.bf16.mxu0 %v5304_v63  ;;  %1314 = vmatprep.subr.bf16.mxu1 %v5306_v4  ;;  %v5813_v63 = vld [vmem:[#allocation11 + $0x144] ss:$16 sps:$4 sm:$0xff]   ;;  %v5816_v4 = vld [vmem:[#allocation11 + $0x14c] ss:$16 sps:$4 sm:$0xff]  }
  0xd5   :  { %1274 = vmatpush1.bf16.msra.mxu0 %v5303_v9  ;;  %1315 = vmatpush1.bf16.msra.mxu1 %v5305_v10  ;;  %v5817_v9 = vld [vmem:[#allocation11 + $0x160] ss:$16 sps:$4 sm:$0xff]   ;;  %v5820_v10 = vld [vmem:[#allocation11 + $0x168] ss:$16 sps:$4 sm:$0xff]  }
  0xd6   :  { %1275 = vmatprep.subr.bf16.mxu0 %v5320_v11  ;;  %1316 = vmatprep.subr.bf16.mxu1 %v5322_v12  ;;  %v5825_v11 = vld [vmem:[#allocation11 + $0x184] ss:$16 sps:$4 sm:$0xff]   ;;  %v5828_v12 = vld [vmem:[#allocation11 + $0x18c] ss:$16 sps:$4 sm:$0xff]  }
  0xd9   :  { %1276 = vmatpush1.bf16.msra.mxu0 %v5319_v17  ;;  %1317 = vmatpush1.bf16.msra.mxu1 %v5321_v19  ;;  %v5829_v17 = vld [vmem:[#allocation11 + $0x1a0] ss:$16 sps:$4 sm:$0xff]   ;;  %v5832_v19 = vld [vmem:[#allocation11 + $0x1a8] ss:$16 sps:$4 sm:$0xff]  }
  0xda   :  { %1277 = vmatprep.subr.bf16.mxu0 %v5336_v20  ;;  %1318 = vmatprep.subr.bf16.mxu1 %v5338_v21  ;;  %v5837_v20 = vld [vmem:[#allocation11 + $0x1c4] ss:$16 sps:$4 sm:$0xff]   ;;  %v5840_v21 = vld [vmem:[#allocation11 + $0x1cc] ss:$16 sps:$4 sm:$0xff]  }
  0xdd   :  { %1278 = vmatpush1.bf16.msra.mxu0 %v5335_v22  ;;  %1319 = vmatpush1.bf16.msra.mxu1 %v5337_v23  ;;  %v5835_v22 = vld [vmem:[#allocation11 + $0x1c0] ss:$16 sps:$4 sm:$0xff]   ;;  %v5838_v23 = vld [vmem:[#allocation11 + $0x1c8] ss:$16 sps:$4 sm:$0xff]  }
  0xde   :  { %2169 = vmatprep.subr.bf16.mxu0 %v5753_v25  ;;  %2251 = vmatprep.subr.bf16.mxu1 %v5756_v27  ;;  %v5846_v25 = vld [vmem:[#allocation11 + $0x1ec] ss:$16 sps:$4 sm:$0xff]   ;;  %v5844_v27 = vld [vmem:[#allocation11 + $0x1e8] ss:$16 sps:$4 sm:$0xff]  }
  0xe0   :  { %1296 = vmatmul.mubr.bf16.vlgmr.msra.gmra.mrb[12].mxu0 %v6229_v18  ;;  %1337 = vmatmul.mubr.bf16.vlgmr.msra.gmra.mrb[12].mxu1 %v6229_v18  ;;  %v5766_v18 = vld [vmem:[#allocation11 + $0x48] ss:$16 sps:$4 sm:$0xff]  }
  0xe1   :  { %2170 = vmatpush1.bf16.msra.mxu0 %v5751_v24  ;;  %2252 = vmatpush1.bf16.msra.mxu1 %v5754_v26  ;;  %v5843_v24 = vld [vmem:[#allocation11 + $0x1e4] ss:$16 sps:$4 sm:$0xff]   ;;  %v5841_v26 = vld [vmem:[#allocation11 + $0x1e0] ss:$16 sps:$4 sm:$0xff]  }
  0xe2   :  { %2171 = vmatprep.subr.bf16.mxu0 %v5759_v28  ;;  %2253 = vmatprep.subr.bf16.mxu1 %v5762_v29  ;;  %v5849_v28 = vld [vmem:[#allocation11 + $0x204] ss:$16 sps:$4 sm:$0xff]   ;;  %v5852_v29 = vld [vmem:[#allocation11 + $0x20c] ss:$16 sps:$4 sm:$0xff]  }
  0xe5   :  { %2172 = vmatpush1.bf16.msra.mxu0 %v5757_v30  ;;  %2254 = vmatpush1.bf16.msra.mxu1 %v5760_v31 }
  0xe6   :  { %2173 = vmatprep.subr.bf16.mxu0 %v5765_v32  ;;  %2255 = vmatprep.subr.bf16.mxu1 %v5768_v33 }
  0xe9   :  { %2174 = vmatpush1.bf16.msra.mxu0 %v5763_v34  ;;  %2256 = vmatpush1.bf16.msra.mxu1 %v5766_v18 }
  0xea   :  { %2175 = vmatprep.subr.bf16.mxu0 %v5771_v35  ;;  %2257 = vmatprep.subr.bf16.mxu1 %v5774_v36 }
  0xed   :  { %2176 = vmatpush1.bf16.msra.mxu0 %v5769_v37  ;;  %2258 = vmatpush1.bf16.msra.mxu1 %v5772_v38 }
  0xee   :  { %2177 = vmatprep.subr.bf16.mxu0 %v5777_v39  ;;  %2259 = vmatprep.subr.bf16.mxu1 %v5780_v40 }
  0xf1   :  { %2178 = vmatpush1.bf16.msra.mxu0 %v5775_v41  ;;  %2260 = vmatpush1.bf16.msra.mxu1 %v5778_v42 }
  0xf2   :  { %2179 = vmatprep.subr.bf16.mxu0 %v5783_v43  ;;  %2261 = vmatprep.subr.bf16.mxu1 %v5786_v44 }
  0xf5   :  { %2180 = vmatpush1.bf16.msra.mxu0 %v5781_v45  ;;  %2262 = vmatpush1.bf16.msra.mxu1 %v5784_v46 }
  0xf6   :  { %2181 = vmatprep.subr.bf16.mxu0 %v5789_v48  ;;  %2263 = vmatprep.subr.bf16.mxu1 %v5792_v50 }
  0xf9   :  { %2182 = vmatpush1.bf16.msra.mxu0 %v5787_v47  ;;  %2264 = vmatpush1.bf16.msra.mxu1 %v5790_v49 }
  0xfa   :  { %2183 = vmatprep.subr.bf16.mxu0 %v5795_v51  ;;  %2265 = vmatprep.subr.bf16.mxu1 %v5798_v52 }
  0xfd   :  { %2184 = vmatpush1.bf16.msra.mxu0 %v5793_v53  ;;  %2266 = vmatpush1.bf16.msra.mxu1 %v5796_v54 }
  0xfe   :  { %2185 = vmatprep.subr.bf16.mxu0 %v5801_v55  ;;  %2267 = vmatprep.subr.bf16.mxu1 %v5804_v56 }
 0x101   :  { %2186 = vmatpush1.bf16.msra.mxu0 %v5799_v57  ;;  %2268 = vmatpush1.bf16.msra.mxu1 %v5802_v58  ;;  %v1357_v57 = vlaneseq }
 0x102   :  { %2187 = vmatprep.subr.bf16.mxu0 %v5807_v59  ;;  %2269 = vmatprep.subr.bf16.mxu1 %v5810_v60  ;;  %v6252_v60 = vld [vmem:[%s6528_s3] sm:$0xff] }
 0x103   :  { %v6246_v58 = vshrl.u32 %v1357_v57, 7 }
 0x105   :  { %2188 = vmatpush1.bf16.msra.mxu0 %v5805_v61  ;;  %2270 = vmatpush1.bf16.msra.mxu1 %v5808_v62  ;;  %v1359_v59 = vsub.s32 0, %v6246_v58  ;;  %v6257_v61 = vld [vmem:[%s6528_s3 + $0x10] sm:$0xff]  ;;  %v6262_v62 = vld [vmem:[%s6528_s3 + $0x8] sm:$0xff] }
 0x106   :  { %2189 = vmatprep.subr.bf16.mxu0 %v5813_v63  ;;  %2271 = vmatprep.subr.bf16.mxu1 %v5816_v4  ;;  %v6267_v4 = vld [vmem:[%s6528_s3 + $0x18] sm:$0xff]  ;;  %s6054_s3 = smov [#allocation7]  }
 0x107   :  { %s237_s20 = sshll.u32 %s6054_s3, 4  ;;  %s238_s20 = int_to_ptr.vmem [resolvable:$true] %s237_s20 }
 0x109   :  { %2190 = vmatpush1.bf16.msra.mxu0 %v5811_v5  ;;  %2272 = vmatpush1.bf16.msra.mxu1 %v5814_v6  ;;  %v1360_v6 = vrot.slane %v6252_v60, %v1359_v59 }
 0x10a   :  { %2191 = vmatprep.subr.bf16.mxu0 %v5819_v7  ;;  %2273 = vmatprep.subr.bf16.mxu1 %v5822_v8 }
 0x10d   :  { %2192 = vmatpush1.bf16.msra.mxu0 %v5817_v9  ;;  %2274 = vmatpush1.bf16.msra.mxu1 %v5820_v10  ;;  %v1368_v10 = vrot.slane %v6257_v61, %v1359_v59 }
 0x10e   :  { %2193 = vmatprep.subr.bf16.mxu0 %v5825_v11  ;;  %2275 = vmatprep.subr.bf16.mxu1 %v5828_v12  ;;  %v1364_v12 = vrot.slane %v6262_v62, %v1359_v59 }
 0x111   :  { %2194 = vmatpush1.bf16.msra.mxu0 %v5823_v13  ;;  %2276 = vmatpush1.bf16.msra.mxu1 %v5826_v14 }
 0x112   :  { %2195 = vmatprep.subr.bf16.mxu0 %v5831_v15  ;;  %2277 = vmatprep.subr.bf16.mxu1 %v5834_v16 }
 0x115   :  { %2196 = vmatpush1.bf16.msra.mxu0 %v5829_v17  ;;  %2278 = vmatpush1.bf16.msra.mxu1 %v5832_v19  ;;  %v1372_v17 = vrot.slane %v6267_v4, %v1359_v59  ;;  %v5888_v59 = vld [vmem:[#allocation11 + $0x2cc] ss:$16 sps:$4 sm:$0xff]  }
 0x116   :  { %2197 = vmatprep.subr.bf16.mxu0 %v5837_v20  ;;  %2279 = vmatprep.subr.bf16.mxu1 %v5840_v21 }
 0x119   :  { %2198 = vmatpush1.bf16.msra.mxu0 %v5835_v22  ;;  %2280 = vmatpush1.bf16.msra.mxu1 %v5838_v23 }
 0x11a   :  { %2199 = vmatprep.subr.bf16.mxu0 %v5843_v24  ;;  %2281 = vmatprep.subr.bf16.mxu1 %v5846_v25 }
 0x11d   :  { %2200 = vmatpush1.bf16.msra.mxu0 %v5841_v26  ;;  %2282 = vmatpush1.bf16.msra.mxu1 %v5844_v27 }
 0x11e   :  { %2210 = vmatprep.subr.bf16.mxu0 %v5849_v28  ;;  %2292 = vmatprep.subr.bf16.mxu1 %v5852_v29 }
 0x153   :  { %v1051_v30 = vpop.f32.mrb[0].mxu0  ;;  %v1092_v32 = vpop.f32.mrb[0].mxu1 }
 0x154   :  { %v1053_v31 = vpop.f32.mrb[1].mxu0  ;;  %v1094_v34 = vpop.f32.mrb[1].mxu1 }
 0x155   :  { %v1055_v33 = vpop.f32.mrb[2].mxu0  ;;  %v1096_v35 = vpop.f32.mrb[2].mxu1 }
 0x156   :  { %v1056_v18 = vpop.f32.mrb[3].mxu0  ;;  %v1097_v36 = vpop.f32.mrb[3].mxu1  ;;  %v5847_v33 = vld [vmem:[#allocation11 + $0x200] ss:$16 sps:$4 sm:$0xff]   ;;  %v5855_v35 = vld [vmem:[#allocation11 + $0x224] ss:$16 sps:$4 sm:$0xff]  }
 0x157   :  { %v5858_v36 = vld [vmem:[#allocation11 + $0x22c] ss:$16 sps:$4 sm:$0xff]  }
 0x173   :  { %v1133_v37 = vpop.f32.mrb[4].mxu0  ;;  %v1174_v40 = vpop.f32.mrb[4].mxu1 }
 0x174   :  { %v1345_v38 = vmax.f32 %v1051_v30, %v1133_v37  ;;  %v1135_v39 = vpop.f32.mrb[5].mxu0  ;;  %v1347_v43 = vmax.f32 %v1092_v32, %v1174_v40  ;;  %v1176_v44 = vpop.f32.mrb[5].mxu1  ;;  %v5861_v40 = vld [vmem:[#allocation11 + $0x244] ss:$16 sps:$4 sm:$0xff]  }
 0x175   :  { %v1346_v41 = vmax.f32 %v1053_v31, %v1135_v39  ;;  %v1137_v42 = vpop.f32.mrb[6].mxu0  ;;  %v1348_v46 = vmax.f32 %v1094_v34, %v1176_v44  ;;  %v1178_v47 = vpop.f32.mrb[6].mxu1  ;;  %v5850_v34 = vld [vmem:[#allocation11 + $0x208] ss:$16 sps:$4 sm:$0xff]   ;;  %v5867_v44 = vld [vmem:[#allocation11 + $0x264] ss:$16 sps:$4 sm:$0xff]  }
 0x176   :  { %v1138_v45 = vpop.f32.mrb[7].mxu0  ;;  %v1179_v48 = vpop.f32.mrb[7].mxu1  ;;  %v5856_v39 = vld [vmem:[#allocation11 + $0x228] ss:$16 sps:$4 sm:$0xff]   ;;  %v5859_v42 = vld [vmem:[#allocation11 + $0x240] ss:$16 sps:$4 sm:$0xff]  }
 0x177   :  { %v5870_v45 = vld [vmem:[#allocation11 + $0x26c] ss:$16 sps:$4 sm:$0xff]   ;;  %v5868_v47 = vld [vmem:[#allocation11 + $0x268] ss:$16 sps:$4 sm:$0xff]   ;;  %v5873_v48 = vld [vmem:[#allocation11 + $0x284] ss:$16 sps:$4 sm:$0xff]  }
 0x193   :  { %v1215_v49 = vpop.f32.mrb[8].mxu0  ;;  %v1256_v51 = vpop.f32.mrb[8].mxu1 }
 0x194   :  { %v1217_v50 = vpop.f32.mrb[9].mxu0  ;;  %v1258_v53 = vpop.f32.mrb[9].mxu1 }
 0x195   :  { %v1219_v52 = vpop.f32.mrb[10].mxu0  ;;  %v1260_v55 = vpop.f32.mrb[10].mxu1 }
 0x196   :  { %v1220_v54 = vpop.f32.mrb[11].mxu0  ;;  %v1261_v56 = vpop.f32.mrb[11].mxu1  ;;  %v5879_v52 = vld [vmem:[#allocation11 + $0x2a4] ss:$16 sps:$4 sm:$0xff]   ;;  %v5880_v55 = vld [vmem:[#allocation11 + $0x2a8] ss:$16 sps:$4 sm:$0xff]  }
 0x197   :  { %v5877_v54 = vld [vmem:[#allocation11 + $0x2a0] ss:$16 sps:$4 sm:$0xff]   ;;  %v5885_v56 = vld [vmem:[#allocation11 + $0x2c4] ss:$16 sps:$4 sm:$0xff]  }
 0x1b3   :  { %v1297_v63 = vpop.f32.mrb[12].mxu0  ;;  %v1338_v7 = vpop.f32.mrb[12].mxu1 }
 0x1b4   :  { %v1349_v5 = vmax.f32 %v1215_v49, %v1297_v63  ;;  %v1299_v8 = vpop.f32.mrb[13].mxu0  ;;  %v1351_v9 = vmax.f32 %v1256_v51, %v1338_v7  ;;  %v1340_v13 = vpop.f32.mrb[13].mxu1  ;;  %v5876_v49 = vld [vmem:[#allocation11 + $0x28c] ss:$16 sps:$4 sm:$0xff]   ;;  %v5874_v51 = vld [vmem:[#allocation11 + $0x288] ss:$16 sps:$4 sm:$0xff]  }
 0x1b5   :  { %v1350_v11 = vmax.f32 %v1217_v50, %v1299_v8  ;;  %v1301_v14 = vpop.f32.mrb[14].mxu0  ;;  %v1352_v16 = vmax.f32 %v1258_v53, %v1340_v13  ;;  %v1342_v20 = vpop.f32.mrb[14].mxu1  ;;  %v5871_v50 = vld [vmem:[#allocation11 + $0x280] ss:$16 sps:$4 sm:$0xff]   ;;  %v5882_v53 = vld [vmem:[#allocation11 + $0x2ac] ss:$16 sps:$4 sm:$0xff]  }
 0x1b6   :  { %v1353_v15 = vmax.f32 %v1345_v38, %v1349_v5  ;;  %v1302_v19 = vpop.f32.mrb[15].mxu0  ;;  %v1355_v21 = vmax.f32 %v1347_v43, %v1351_v9  ;;  %v1343_v23 = vpop.f32.mrb[15].mxu1  ;;  %v5853_v38 = vld [vmem:[#allocation11 + $0x220] ss:$16 sps:$4 sm:$0xff]   ;;  %v5862_v43 = vld [vmem:[#allocation11 + $0x248] ss:$16 sps:$4 sm:$0xff]  }
 0x1b7   :  { %v1354_v22 = vmax.f32 %v1346_v41, %v1350_v11  ;;  %v1356_v25 = vmax.f32 %v1348_v46, %v1352_v16  ;;  %v5864_v41 = vld [vmem:[#allocation11 + $0x24c] ss:$16 sps:$4 sm:$0xff]   ;;  %v5865_v46 = vld [vmem:[#allocation11 + $0x260] ss:$16 sps:$4 sm:$0xff]   ;;  %v5886_v5 = vld [vmem:[#allocation11 + $0x2c8] ss:$16 sps:$4 sm:$0xff]  }
 0x1b8   :  { %v1373_v24 = vadd.f32 %v1360_v6, %v1353_v15  ;;  %v6273_v26 = vadd.f32 %v1368_v10, %v1355_v21  ;;  %v5883_v63 = vld [vmem:[#allocation11 + $0x2c0] ss:$16 sps:$4 sm:$0xff]   ;;  %v5891_v6 = vld [vmem:[#allocation11 + $0x2e4] ss:$16 sps:$4 sm:$0xff]   ;;  %v5894_v7 = vld [vmem:[#allocation11 + $0x2ec] ss:$16 sps:$4 sm:$0xff]  }
 0x1b9   :  { %v1374_v27 = vadd.f32 %v1364_v12, %v1354_v22  ;;  %v1376_v29 = vadd.f32 %v1372_v17, %v1356_v25  ;;  %v5889_v8 = vld [vmem:[#allocation11 + $0x2e0] ss:$16 sps:$4 sm:$0xff]   ;;  %v5892_v9 = vld [vmem:[#allocation11 + $0x2e8] ss:$16 sps:$4 sm:$0xff]   ;;  %v5897_v10 = vld [vmem:[#allocation11 + $0x304] ss:$16 sps:$4 sm:$0xff]  }
 0x1ba   :  { %v1377_v28 = vmax.f32 %v1373_v24, 0.0  ;;  %v5900_v11 = vld [vmem:[#allocation11 + $0x30c] ss:$16 sps:$4 sm:$0xff]   ;;  %v5895_v12 = vld [vmem:[#allocation11 + $0x300] ss:$16 sps:$4 sm:$0xff]  }
 0x1bb   :  { %v1378_v30 = vmax.f32 %v1374_v27, 0.0  ;;  %v1380_v31 = vmax.f32 %v1376_v29, 0.0  ;;  %v5898_v13 = vld [vmem:[#allocation11 + $0x308] ss:$16 sps:$4 sm:$0xff]   ;;  %v5903_v14 = vld [vmem:[#allocation11 + $0x324] ss:$16 sps:$4 sm:$0xff]  }
 0x1bc   :  { %v1381_v18 = vpack.c.bf16 %v1377_v28, %v1377_v28  ;;  %v5906_v15 = vld [vmem:[#allocation11 + $0x32c] ss:$16 sps:$4 sm:$0xff]   ;;  %v5901_v16 = vld [vmem:[#allocation11 + $0x320] ss:$16 sps:$4 sm:$0xff]   ;;  %v5904_v17 = vld [vmem:[#allocation11 + $0x328] ss:$16 sps:$4 sm:$0xff]  }
 0x1bd   :  { %v1382_v32 = vpack.c.bf16 %v1378_v30, %v1378_v30  ;;  %v1384_v37 = vpack.c.bf16 %v1380_v31, %v1380_v31  ;;  %v5909_v19 = vld [vmem:[#allocation11 + $0x344] ss:$16 sps:$4 sm:$0xff]   ;;  %v5912_v20 = vld [vmem:[#allocation11 + $0x34c] ss:$16 sps:$4 sm:$0xff]   ;;  %v5907_v21 = vld [vmem:[#allocation11 + $0x340] ss:$16 sps:$4 sm:$0xff]  }
 0x1be   :  { %v5910_v22 = vld [vmem:[#allocation11 + $0x348] ss:$16 sps:$4 sm:$0xff]   ;;  %v5915_v23 = vld [vmem:[#allocation11 + $0x364] ss:$16 sps:$4 sm:$0xff]   ;;  %v5918_v24 = vld [vmem:[#allocation11 + $0x36c] ss:$16 sps:$4 sm:$0xff]  }
 0x1bf   :  { %2201 = vmatprep.mubr.bf16.mxu0 %v1382_v32  ;;  %2283 = vmatprep.mubr.bf16.mxu1 %v1382_v32  ;;  %v5913_v25 = vld [vmem:[#allocation11 + $0x360] ss:$16 sps:$4 sm:$0xff]   ;;  %v5916_v27 = vld [vmem:[#allocation11 + $0x368] ss:$16 sps:$4 sm:$0xff]   ;;  %v5921_v28 = vld [vmem:[#allocation11 + $0x384] ss:$16 sps:$4 sm:$0xff]  }
 0x1c0   :  { %2202 = vmatmul.mubr.bf16.vlgmr.msra.gmra.mrb[16].mxu0 %v1381_v18  ;;  %2284 = vmatmul.mubr.bf16.vlgmr.msra.gmra.mrb[16].mxu1 %v1381_v18  ;;  %v5924_v29 = vld [vmem:[#allocation11 + $0x38c] ss:$16 sps:$4 sm:$0xff]   ;;  %v5919_v30 = vld [vmem:[#allocation11 + $0x380] ss:$16 sps:$4 sm:$0xff]   ;;  %v5922_v31 = vld [vmem:[#allocation11 + $0x388] ss:$16 sps:$4 sm:$0xff]  }
 0x1c1   :  { %2211 = vmatpush1.bf16.msra.mxu0 %v5847_v33  ;;  %2293 = vmatpush1.bf16.msra.mxu1 %v5850_v34  ;;  %v5927_v32 = vld [vmem:[#allocation11 + $0x3a4] ss:$16 sps:$4 sm:$0xff]   ;;  %v5930_v33 = vld [vmem:[#allocation11 + $0x3ac] ss:$16 sps:$4 sm:$0xff]   ;;  %v5925_v34 = vld [vmem:[#allocation11 + $0x3a0] ss:$16 sps:$4 sm:$0xff]  }
 0x1c2   :  { %2242 = vmatprep.mubr.bf16.mxu0 %v1384_v37  ;;  %2324 = vmatprep.mubr.bf16.mxu1 %v1384_v37  ;;  %v5928_v18 = vld [vmem:[#allocation11 + $0x3a8] ss:$16 sps:$4 sm:$0xff]   ;;  %v5931_v37 = vld [vmem:[#allocation11 + $0x3c0] ss:$16 sps:$4 sm:$0xff]  }
 0x1c3   :  { %2212 = vmatprep.subr.bf16.mxu0 %v5855_v35  ;;  %2294 = vmatprep.subr.bf16.mxu1 %v5858_v36  ;;  %v5933_v35 = vld [vmem:[#allocation11 + $0x3c4] ss:$16 sps:$4 sm:$0xff]   ;;  %v5936_v36 = vld [vmem:[#allocation11 + $0x3cc] ss:$16 sps:$4 sm:$0xff]  }
 0x1c5   :  { %2213 = vmatpush1.bf16.msra.mxu0 %v5853_v38  ;;  %2295 = vmatpush1.bf16.msra.mxu1 %v5856_v39  ;;  %v5934_v38 = vld [vmem:[#allocation11 + $0x3c8] ss:$16 sps:$4 sm:$0xff]   ;;  %v5939_v39 = vld [vmem:[#allocation11 + $0x3e4] ss:$16 sps:$4 sm:$0xff]  }
 0x1c6   :  { %2214 = vmatprep.subr.bf16.mxu0 %v5861_v40  ;;  %2296 = vmatprep.subr.bf16.mxu1 %v5864_v41  ;;  %v5942_v40 = vld [vmem:[#allocation11 + $0x3ec] ss:$16 sps:$4 sm:$0xff]   ;;  %v5937_v41 = vld [vmem:[#allocation11 + $0x3e0] ss:$16 sps:$4 sm:$0xff]  }
 0x1c9   :  { %2215 = vmatpush1.bf16.msra.mxu0 %v5859_v42  ;;  %2297 = vmatpush1.bf16.msra.mxu1 %v5862_v43  ;;  %v5940_v42 = vld [vmem:[#allocation11 + $0x3e8] ss:$16 sps:$4 sm:$0xff]   ;;  %v1379_v43 = vmax.f32 %v6273_v26, 0.0 }
 0x1ca   :  { %2216 = vmatprep.subr.bf16.mxu0 %v5867_v44  ;;  %2298 = vmatprep.subr.bf16.mxu1 %v5870_v45 }
 0x1cb   :  { %v1383_v44 = vpack.c.bf16 %v1379_v43, %v1379_v43 }
 0x1cd   :  { %2217 = vmatpush1.bf16.msra.mxu0 %v5865_v46  ;;  %2299 = vmatpush1.bf16.msra.mxu1 %v5868_v47 }
 0x1ce   :  { %2218 = vmatprep.subr.bf16.mxu0 %v5873_v48  ;;  %2300 = vmatprep.subr.bf16.mxu1 %v5876_v49 }
 0x1d1   :  { %2219 = vmatpush1.bf16.msra.mxu0 %v5871_v50  ;;  %2301 = vmatpush1.bf16.msra.mxu1 %v5874_v51 }
 0x1d2   :  { %2220 = vmatprep.subr.bf16.mxu0 %v5879_v52  ;;  %2302 = vmatprep.subr.bf16.mxu1 %v5882_v53 }
 0x1d5   :  { %2221 = vmatpush1.bf16.msra.mxu0 %v5877_v54  ;;  %2303 = vmatpush1.bf16.msra.mxu1 %v5880_v55 }
 0x1d6   :  { %2222 = vmatprep.subr.bf16.mxu0 %v5885_v56  ;;  %2304 = vmatprep.subr.bf16.mxu1 %v5888_v59 }
 0x1d9   :  { %2223 = vmatpush1.bf16.msra.mxu0 %v5883_v63  ;;  %2305 = vmatpush1.bf16.msra.mxu1 %v5886_v5 }
 0x1da   :  { %2224 = vmatprep.subr.bf16.mxu0 %v5891_v6  ;;  %2306 = vmatprep.subr.bf16.mxu1 %v5894_v7 }
 0x1dd   :  { %2225 = vmatpush1.bf16.msra.mxu0 %v5889_v8  ;;  %2307 = vmatpush1.bf16.msra.mxu1 %v5892_v9 }
 0x1de   :  { %2226 = vmatprep.subr.bf16.mxu0 %v5897_v10  ;;  %2308 = vmatprep.subr.bf16.mxu1 %v5900_v11 }
 0x1e1   :  { %2227 = vmatpush1.bf16.msra.mxu0 %v5895_v12  ;;  %2309 = vmatpush1.bf16.msra.mxu1 %v5898_v13 }
 0x1e2   :  { %2228 = vmatprep.subr.bf16.mxu0 %v5903_v14  ;;  %2310 = vmatprep.subr.bf16.mxu1 %v5906_v15 }
 0x1e5   :  { %2229 = vmatpush1.bf16.msra.mxu0 %v5901_v16  ;;  %2311 = vmatpush1.bf16.msra.mxu1 %v5904_v17 }
 0x1e6   :  { %2230 = vmatprep.subr.bf16.mxu0 %v5909_v19  ;;  %2312 = vmatprep.subr.bf16.mxu1 %v5912_v20 }
 0x1e9   :  { %2231 = vmatpush1.bf16.msra.mxu0 %v5907_v21  ;;  %2313 = vmatpush1.bf16.msra.mxu1 %v5910_v22 }
 0x1ea   :  { %2232 = vmatprep.subr.bf16.mxu0 %v5915_v23  ;;  %2314 = vmatprep.subr.bf16.mxu1 %v5918_v24 }
 0x1ed   :  { %2233 = vmatpush1.bf16.msra.mxu0 %v5913_v25  ;;  %2315 = vmatpush1.bf16.msra.mxu1 %v5916_v27 }
 0x1ee   :  { %2234 = vmatprep.subr.bf16.mxu0 %v5921_v28  ;;  %2316 = vmatprep.subr.bf16.mxu1 %v5924_v29 }
 0x1f1   :  { %2235 = vmatpush1.bf16.msra.mxu0 %v5919_v30  ;;  %2317 = vmatpush1.bf16.msra.mxu1 %v5922_v31 }
 0x1f2   :  { %2236 = vmatprep.subr.bf16.mxu0 %v5927_v32  ;;  %2318 = vmatprep.subr.bf16.mxu1 %v5930_v33 }
 0x1f5   :  { %2237 = vmatpush1.bf16.msra.mxu0 %v5925_v34  ;;  %2319 = vmatpush1.bf16.msra.mxu1 %v5928_v18 }
 0x1f6   :  { %2238 = vmatprep.subr.bf16.mxu0 %v5933_v35  ;;  %2320 = vmatprep.subr.bf16.mxu1 %v5936_v36 }
 0x1f9   :  { %2239 = vmatpush1.bf16.msra.mxu0 %v5931_v37  ;;  %2321 = vmatpush1.bf16.msra.mxu1 %v5934_v38 }
 0x1fa   :  { %2240 = vmatprep.subr.bf16.mxu0 %v5939_v39  ;;  %2322 = vmatprep.subr.bf16.mxu1 %v5942_v40 }
 0x1fd   :  { %2241 = vmatpush1.bf16.msra.mxu0 %v5937_v41  ;;  %2323 = vmatpush1.bf16.msra.mxu1 %v5940_v42 }
 0x200   :  { %2243 = vmatmul.mubr.bf16.vlgmr.msra.gmra.mrb[16].mxu0 %v1383_v44  ;;  %2325 = vmatmul.mubr.bf16.vlgmr.msra.gmra.mrb[16].mxu1 %v1383_v44 }
 0x201   :  { %5996 = shalt.err (!%p5993_p4)  }
 0x202   :  { %s5997_s24 = scalar_lea.vmem %s238_s20, 4096  ;;  %p6002_p6 = scmp.lt.s32.totalorder %s238_s20, %s238_s20 }
 0x203   :  { %p5998_p5 = scmp.ne.s32.totalorder %s238_s20, %s5997_s24  ;;  %p6003_p7 = scmp.lt.s32.totalorder %s5997_s24, %s5997_s24 }
 0x205   :  { %p6004_p8 = por %p6003_p7, %p6002_p6 }
 0x207   :  { %p6005_p9 = pnand %p6004_p8, %p5998_p5 }
 0x209   :  { %6008 = shalt.err (!%p6005_p9)  }
 0x20a   :  { %240 = dma.hbm_to_vmem [thread:$0]  %s6534_s9, 4096, %s238_s20, [#allocation8 + $0x5]  ;;  %v1515_v26 = vsub.s32 1, %v6246_v58 }
 0x20c   :  { %v1516_v45 = vrot.slane %v6252_v60, %v1515_v26  ;;  %v1524_v46 = vrot.slane %v6257_v61, %v1515_v26  ;;  %v1520_v47 = vrot.slane %v6262_v62, %v1515_v26  ;;  %v1528_v48 = vrot.slane %v6267_v4, %v1515_v26 }
 0x2d3   :  { %v2244_v49 = vpop.f32.mrb[16].mxu0  ;;  %v2326_v50 = vpop.f32.mrb[16].mxu1 }
 0x2d4   :  { %v6293_v51 = vadd.f32 %v2244_v49, %v1516_v45  ;;  %v6295_v52 = vadd.f32 %v2326_v50, %v1524_v46  ;;  %v2246_v53 = vpop.f32.mrb[17].mxu0  ;;  %v2328_v54 = vpop.f32.mrb[17].mxu1 }
 0x2d5   :  { %v5606_v55 = vadd.f32 %v2246_v53, %v1520_v47  ;;  %v6297_v56 = vadd.f32 %v2328_v54, %v1528_v48  ;;  %v2248_v59 = vpop.f32.mrb[18].mxu0  ;;  %v2330_v63 = vpop.f32.mrb[18].mxu1 }
 0x2d6   :  { %v2333_v5 = vmax.f32 %v6293_v51, 0.0  ;;  %v2335_v6 = vmax.f32 %v6295_v52, 0.0  ;;  %v2249_v7 = vpop.f32.mrb[19].mxu0  ;;  %v2331_v8 = vpop.f32.mrb[19].mxu1 }
 0x2d7   :  { %v2334_v9 = vmax.f32 %v5606_v55, 0.0  ;;  %v2336_v10 = vmax.f32 %v6297_v56, 0.0 }
 0x2d8   :  { %6013 = dma.done.wait [#allocation8], 28672 }
 0x2d9   :  { %6014 = vsyncadd [#allocation8], 4294938624  ;;  %v6302_v11 = vpack.c.bf16 %v2334_v9, %v2334_v9  ;;  %v2346_v12 = vld [vmem:[#allocation2 + $0x8] sm:$0xff]  ;;  %v2348_v13 = vld [vmem:[#allocation2 + $0x18] sm:$0xff] }
 0x2da   :  { %v2345_v14 = vld [vmem:[#allocation2] sm:$0xff]  ;;  %2597 = vmatprep.subr.bf16.mxu0 %v2346_v12  ;;  %2679 = vmatprep.subr.bf16.mxu1 %v2348_v13  ;;  %v2347_v15 = vld [vmem:[#allocation2 + $0x10] sm:$0xff]  ;;  %v2352_v19 = vld [vmem:[#allocation2 + $0x38] sm:$0xff] }
 0x2db   :  { %2629 = vmatprep.mubr.bf16.mxu0 %v6302_v11  ;;  %2711 = vmatprep.mubr.bf16.mxu1 %v6302_v11  ;;  %v2353_v16 = vld [vmem:[#allocation2 + $0x40] sm:$0xff]  ;;  %v2355_v17 = vld [vmem:[#allocation2 + $0x50] sm:$0xff]  ;;  %v2354_v20 = vld [vmem:[#allocation2 + $0x48] sm:$0xff] }
 0x2dc   :  { %2598 = vmatpush1.bf16.msra.mxu0 %v2345_v14  ;;  %2680 = vmatpush1.bf16.msra.mxu1 %v2347_v15  ;;  %v2360_v21 = vld [vmem:[#allocation2 + $0x78] sm:$0xff]  ;;  %v2362_v22 = vld [vmem:[#allocation2 + $0x88] sm:$0xff]  ;;  %v2359_v23 = vld [vmem:[#allocation2 + $0x70] sm:$0xff] }
 0x2dd   :  { %2599 = vmatprep.subr.bf16.mxu0 %v2353_v16  ;;  %2681 = vmatprep.subr.bf16.mxu1 %v2355_v17  ;;  %v2361_v24 = vld [vmem:[#allocation2 + $0x80] sm:$0xff]  ;;  %v2367_v25 = vld [vmem:[#allocation2 + $0xb0] sm:$0xff]  ;;  %v2366_v28 = vld [vmem:[#allocation2 + $0xa8] sm:$0xff] }
 0x2de   :  { %v2369_v27 = vld [vmem:[#allocation2 + $0xc0] sm:$0xff]  ;;  %v2368_v29 = vld [vmem:[#allocation2 + $0xb8] sm:$0xff]  ;;  %v2374_v30 = vld [vmem:[#allocation2 + $0xe8] sm:$0xff] }
 0x2df   :  { %v2376_v31 = vld [vmem:[#allocation2 + $0xf8] sm:$0xff]  ;;  %v2373_v32 = vld [vmem:[#allocation2 + $0xe0] sm:$0xff]  ;;  %v2375_v33 = vld [vmem:[#allocation2 + $0xf0] sm:$0xff] }
 0x2e0   :  { %2600 = vmatpush1.bf16.msra.mxu0 %v2352_v19  ;;  %2682 = vmatpush1.bf16.msra.mxu1 %v2354_v20  ;;  %v2381_v34 = vld [vmem:[#allocation2 + $0x120] sm:$0xff]  ;;  %v2383_v18 = vld [vmem:[#allocation2 + $0x130] sm:$0xff]  ;;  %v2380_v35 = vld [vmem:[#allocation2 + $0x118] sm:$0xff] }
 0x2e1   :  { %2601 = vmatprep.subr.bf16.mxu0 %v2360_v21  ;;  %2683 = vmatprep.subr.bf16.mxu1 %v2362_v22  ;;  %v2382_v36 = vld [vmem:[#allocation2 + $0x128] sm:$0xff]  ;;  %v2388_v37 = vld [vmem:[#allocation2 + $0x158] sm:$0xff]  ;;  %v2387_v39 = vld [vmem:[#allocation2 + $0x150] sm:$0xff] }
 0x2e2   :  { %v2390_v38 = vld [vmem:[#allocation2 + $0x168] sm:$0xff]  ;;  %v2389_v40 = vld [vmem:[#allocation2 + $0x160] sm:$0xff]  ;;  %v2395_v41 = vld [vmem:[#allocation2 + $0x190] sm:$0xff] }
 0x2e3   :  { %v2397_v42 = vld [vmem:[#allocation2 + $0x1a0] sm:$0xff]  ;;  %v2394_v43 = vld [vmem:[#allocation2 + $0x188] sm:$0xff]  ;;  %v2396_v44 = vld [vmem:[#allocation2 + $0x198] sm:$0xff] }
 0x2e4   :  { %2602 = vmatpush1.bf16.msra.mxu0 %v2359_v23  ;;  %2684 = vmatpush1.bf16.msra.mxu1 %v2361_v24  ;;  %v2402_v26 = vld [vmem:[#allocation2 + $0x1c8] sm:$0xff]  ;;  %v2404_v45 = vld [vmem:[#allocation2 + $0x1d8] sm:$0xff]  ;;  %v2401_v46 = vld [vmem:[#allocation2 + $0x1c0] sm:$0xff] }
 0x2e5   :  { %2603 = vmatprep.subr.bf16.mxu0 %v2367_v25  ;;  %2685 = vmatprep.subr.bf16.mxu1 %v2369_v27  ;;  %v2403_v47 = vld [vmem:[#allocation2 + $0x1d0] sm:$0xff]  ;;  %v2409_v48 = vld [vmem:[#allocation2 + $0x200] sm:$0xff]  ;;  %v2408_v50 = vld [vmem:[#allocation2 + $0x1f8] sm:$0xff] }
 0x2e6   :  { %v2411_v49 = vld [vmem:[#allocation2 + $0x210] sm:$0xff]  ;;  %v2410_v53 = vld [vmem:[#allocation2 + $0x208] sm:$0xff]  ;;  %v2416_v54 = vld [vmem:[#allocation2 + $0x238] sm:$0xff] }
 0x2e7   :  { %v2418_v55 = vld [vmem:[#allocation2 + $0x248] sm:$0xff]  ;;  %v2415_v59 = vld [vmem:[#allocation2 + $0x230] sm:$0xff]  ;;  %v2417_v63 = vld [vmem:[#allocation2 + $0x240] sm:$0xff] }
 0x2e8   :  { %2604 = vmatpush1.bf16.msra.mxu0 %v2366_v28  ;;  %2686 = vmatpush1.bf16.msra.mxu1 %v2368_v29  ;;  %v2423_v7 = vld [vmem:[#allocation2 + $0x270] sm:$0xff]  ;;  %v2425_v8 = vld [vmem:[#allocation2 + $0x280] sm:$0xff]  ;;  %v2422_v9 = vld [vmem:[#allocation2 + $0x268] sm:$0xff] }
 0x2e9   :  { %2605 = vmatprep.subr.bf16.mxu0 %v2374_v30  ;;  %2687 = vmatprep.subr.bf16.mxu1 %v2376_v31  ;;  %v2424_v12 = vld [vmem:[#allocation2 + $0x278] sm:$0xff]  ;;  %v2430_v13 = vld [vmem:[#allocation2 + $0x2a8] sm:$0xff]  ;;  %v2429_v15 = vld [vmem:[#allocation2 + $0x2a0] sm:$0xff] }
 0x2ea   :  { %v2432_v14 = vld [vmem:[#allocation2 + $0x2b8] sm:$0xff]  ;;  %v2431_v16 = vld [vmem:[#allocation2 + $0x2b0] sm:$0xff]  ;;  %v2437_v17 = vld [vmem:[#allocation2 + $0x2e0] sm:$0xff] }
 0x2eb   :  { %v2439_v19 = vld [vmem:[#allocation2 + $0x2f0] sm:$0xff]  ;;  %v2436_v20 = vld [vmem:[#allocation2 + $0x2d8] sm:$0xff]  ;;  %v2438_v21 = vld [vmem:[#allocation2 + $0x2e8] sm:$0xff] }
 0x2ec   :  { %2606 = vmatpush1.bf16.msra.mxu0 %v2373_v32  ;;  %2688 = vmatpush1.bf16.msra.mxu1 %v2375_v33  ;;  %v2444_v22 = vld [vmem:[#allocation2 + $0x318] sm:$0xff]  ;;  %v2446_v23 = vld [vmem:[#allocation2 + $0x328] sm:$0xff]  ;;  %v2443_v24 = vld [vmem:[#allocation2 + $0x310] sm:$0xff]  ;;  %v6309_v33 = vpack.c.bf16 %v2333_v5, %v2333_v5 }
 0x2ed   :  { %2607 = vmatprep.subr.bf16.mxu0 %v2381_v34  ;;  %2689 = vmatprep.subr.bf16.mxu1 %v2383_v18  ;;  %v2445_v25 = vld [vmem:[#allocation2 + $0x320] sm:$0xff]  ;;  %v2451_v27 = vld [vmem:[#allocation2 + $0x350] sm:$0xff]  ;;  %v2450_v29 = vld [vmem:[#allocation2 + $0x348] sm:$0xff] }
 0x2ee   :  { %v2453_v28 = vld [vmem:[#allocation2 + $0x360] sm:$0xff]  ;;  %v2452_v30 = vld [vmem:[#allocation2 + $0x358] sm:$0xff]  ;;  %v2458_v31 = vld [vmem:[#allocation2 + $0x388] sm:$0xff] }
 0x2ef   :  { %v2460_v32 = vld [vmem:[#allocation2 + $0x398] sm:$0xff]  ;;  %v2457_v34 = vld [vmem:[#allocation2 + $0x380] sm:$0xff]  ;;  %v2459_v18 = vld [vmem:[#allocation2 + $0x390] sm:$0xff] }
 0x2f0   :  { %2608 = vmatpush1.bf16.msra.mxu0 %v2380_v35  ;;  %2690 = vmatpush1.bf16.msra.mxu1 %v2382_v36  ;;  %v2465_v35 = vld [vmem:[#allocation2 + $0x3c0] sm:$0xff]  ;;  %v2467_v36 = vld [vmem:[#allocation2 + $0x3d0] sm:$0xff]  ;;  %v2464_v51 = vld [vmem:[#allocation2 + $0x3b8] sm:$0xff] }
 0x2f1   :  { %2609 = vmatprep.subr.bf16.mxu0 %v2388_v37  ;;  %2691 = vmatprep.subr.bf16.mxu1 %v2390_v38  ;;  %v6314_v37 = vpack.c.bf16 %v2336_v10, %v2336_v10  ;;  %v2466_v5 = vld [vmem:[#allocation2 + $0x3c8] sm:$0xff]  ;;  %v2472_v38 = vld [vmem:[#allocation2 + $0x3f8] sm:$0xff]  ;;  %v2471_v56 = vld [vmem:[#allocation2 + $0x3f0] sm:$0xff] }
 0x2f2   :  { %v2473_v10 = vld [vmem:[#allocation2 + $0x400] sm:$0xff]  ;;  %v2358_v52 = vld [vmem:[#allocation2 + $0x68] sm:$0xff] }
 0x2f4   :  { %2610 = vmatpush1.bf16.msra.mxu0 %v2387_v39  ;;  %2692 = vmatpush1.bf16.msra.mxu1 %v2389_v40  ;;  %v2474_v39 = vld [vmem:[#allocation2 + $0x408] sm:$0xff]  ;;  %v2479_v40 = vld [vmem:[#allocation2 + $0x430] sm:$0xff] }
 0x2f5   :  { %2611 = vmatprep.subr.bf16.mxu0 %v2395_v41  ;;  %2693 = vmatprep.subr.bf16.mxu1 %v2397_v42  ;;  %v2481_v41 = vld [vmem:[#allocation2 + $0x440] sm:$0xff]  ;;  %v2478_v42 = vld [vmem:[#allocation2 + $0x428] sm:$0xff] }
 0x2f8   :  { %2612 = vmatpush1.bf16.msra.mxu0 %v2394_v43  ;;  %2694 = vmatpush1.bf16.msra.mxu1 %v2396_v44  ;;  %v2480_v43 = vld [vmem:[#allocation2 + $0x438] sm:$0xff]  ;;  %v2486_v44 = vld [vmem:[#allocation2 + $0x468] sm:$0xff] }
 0x2f9   :  { %2613 = vmatprep.subr.bf16.mxu0 %v2402_v26  ;;  %2695 = vmatprep.subr.bf16.mxu1 %v2404_v45  ;;  %v2488_v26 = vld [vmem:[#allocation2 + $0x478] sm:$0xff]  ;;  %v2485_v45 = vld [vmem:[#allocation2 + $0x460] sm:$0xff] }
 0x2fc   :  { %2614 = vmatpush1.bf16.msra.mxu0 %v2401_v46  ;;  %2696 = vmatpush1.bf16.msra.mxu1 %v2403_v47  ;;  %v2487_v46 = vld [vmem:[#allocation2 + $0x470] sm:$0xff]  ;;  %v2493_v47 = vld [vmem:[#allocation2 + $0x4a0] sm:$0xff] }
 0x2fd   :  { %2615 = vmatprep.subr.bf16.mxu0 %v2409_v48  ;;  %2697 = vmatprep.subr.bf16.mxu1 %v2411_v49  ;;  %v2495_v48 = vld [vmem:[#allocation2 + $0x4b0] sm:$0xff]  ;;  %v2492_v49 = vld [vmem:[#allocation2 + $0x498] sm:$0xff] }
 0x300   :  { %2616 = vmatpush1.bf16.msra.mxu0 %v2408_v50  ;;  %2698 = vmatpush1.bf16.msra.mxu1 %v2410_v53  ;;  %v2494_v50 = vld [vmem:[#allocation2 + $0x4a8] sm:$0xff]  ;;  %v2500_v53 = vld [vmem:[#allocation2 + $0x4d8] sm:$0xff] }
 0x301   :  { %2617 = vmatprep.subr.bf16.mxu0 %v2416_v54  ;;  %2699 = vmatprep.subr.bf16.mxu1 %v2418_v55  ;;  %v2502_v54 = vld [vmem:[#allocation2 + $0x4e8] sm:$0xff]  ;;  %v2499_v55 = vld [vmem:[#allocation2 + $0x4d0] sm:$0xff] }
 0x304   :  { %2618 = vmatpush1.bf16.msra.mxu0 %v2415_v59  ;;  %2700 = vmatpush1.bf16.msra.mxu1 %v2417_v63  ;;  %v2501_v59 = vld [vmem:[#allocation2 + $0x4e0] sm:$0xff]  ;;  %v2507_v63 = vld [vmem:[#allocation2 + $0x510] sm:$0xff] }
 0x305   :  { %2619 = vmatprep.subr.bf16.mxu0 %v2423_v7  ;;  %2701 = vmatprep.subr.bf16.mxu1 %v2425_v8  ;;  %v2509_v7 = vld [vmem:[#allocation2 + $0x520] sm:$0xff]  ;;  %v2506_v8 = vld [vmem:[#allocation2 + $0x508] sm:$0xff] }
 0x308   :  { %2620 = vmatpush1.bf16.msra.mxu0 %v2422_v9  ;;  %2702 = vmatpush1.bf16.msra.mxu1 %v2424_v12  ;;  %v2508_v9 = vld [vmem:[#allocation2 + $0x518] sm:$0xff]  ;;  %v2514_v12 = vld [vmem:[#allocation2 + $0x548] sm:$0xff] }
 0x309   :  { %2621 = vmatprep.subr.bf16.mxu0 %v2430_v13  ;;  %2703 = vmatprep.subr.bf16.mxu1 %v2432_v14  ;;  %v2516_v13 = vld [vmem:[#allocation2 + $0x558] sm:$0xff]  ;;  %v2513_v14 = vld [vmem:[#allocation2 + $0x540] sm:$0xff] }
 0x30c   :  { %2622 = vmatpush1.bf16.msra.mxu0 %v2429_v15  ;;  %2704 = vmatpush1.bf16.msra.mxu1 %v2431_v16  ;;  %v2515_v15 = vld [vmem:[#allocation2 + $0x550] sm:$0xff]  ;;  %v2521_v16 = vld [vmem:[#allocation2 + $0x580] sm:$0xff] }
 0x30d   :  { %2623 = vmatprep.subr.bf16.mxu0 %v2437_v17  ;;  %2705 = vmatprep.subr.bf16.mxu1 %v2439_v19  ;;  %v2523_v17 = vld [vmem:[#allocation2 + $0x590] sm:$0xff]  ;;  %v2520_v19 = vld [vmem:[#allocation2 + $0x578] sm:$0xff] }
 0x310   :  { %2624 = vmatpush1.bf16.msra.mxu0 %v2436_v20  ;;  %2706 = vmatpush1.bf16.msra.mxu1 %v2438_v21  ;;  %v2522_v20 = vld [vmem:[#allocation2 + $0x588] sm:$0xff]  ;;  %v2528_v21 = vld [vmem:[#allocation2 + $0x5b8] sm:$0xff] }
 0x311   :  { %2625 = vmatprep.subr.bf16.mxu0 %v2444_v22  ;;  %2707 = vmatprep.subr.bf16.mxu1 %v2446_v23  ;;  %v2530_v22 = vld [vmem:[#allocation2 + $0x5c8] sm:$0xff]  ;;  %v2527_v23 = vld [vmem:[#allocation2 + $0x5b0] sm:$0xff] }
 0x314   :  { %2626 = vmatpush1.bf16.msra.mxu0 %v2443_v24  ;;  %2708 = vmatpush1.bf16.msra.mxu1 %v2445_v25  ;;  %v2529_v24 = vld [vmem:[#allocation2 + $0x5c0] sm:$0xff]  ;;  %v2535_v25 = vld [vmem:[#allocation2 + $0x5f0] sm:$0xff] }
 0x315   :  { %2627 = vmatprep.subr.bf16.mxu0 %v2451_v27  ;;  %2709 = vmatprep.subr.bf16.mxu1 %v2453_v28  ;;  %v2537_v27 = vld [vmem:[#allocation2 + $0x600] sm:$0xff]  ;;  %v2534_v28 = vld [vmem:[#allocation2 + $0x5e8] sm:$0xff] }
 0x318   :  { %2628 = vmatpush1.bf16.msra.mxu0 %v2450_v29  ;;  %2710 = vmatpush1.bf16.msra.mxu1 %v2452_v30  ;;  %v2536_v29 = vld [vmem:[#allocation2 + $0x5f8] sm:$0xff]  ;;  %v2542_v30 = vld [vmem:[#allocation2 + $0x628] sm:$0xff] }
 0x319   :  { %2638 = vmatprep.subr.bf16.mxu0 %v2458_v31  ;;  %2720 = vmatprep.subr.bf16.mxu1 %v2460_v32  ;;  %v2544_v31 = vld [vmem:[#allocation2 + $0x638] sm:$0xff]  ;;  %v2541_v32 = vld [vmem:[#allocation2 + $0x620] sm:$0xff] }
 0x31b   :  { %2630 = vmatmul.mubr.bf16.vlgmr.msra.gmra.mrb[20].mxu0 %v6309_v33  ;;  %2712 = vmatmul.mubr.bf16.vlgmr.msra.gmra.mrb[20].mxu1 %v6309_v33 }
 0x31c   :  { %2639 = vmatpush1.bf16.msra.mxu0 %v2457_v34  ;;  %2721 = vmatpush1.bf16.msra.mxu1 %v2459_v18  ;;  %v2543_v34 = vld [vmem:[#allocation2 + $0x630] sm:$0xff]  ;;  %v2549_v18 = vld [vmem:[#allocation2 + $0x660] sm:$0xff] }
 0x31d   :  { %2640 = vmatprep.subr.bf16.mxu0 %v2465_v35  ;;  %2722 = vmatprep.subr.bf16.mxu1 %v2467_v36  ;;  %v2551_v35 = vld [vmem:[#allocation2 + $0x670] sm:$0xff]  ;;  %v2548_v36 = vld [vmem:[#allocation2 + $0x658] sm:$0xff] }
 0x31e   :  { %2670 = vmatprep.mubr.bf16.mxu0 %v6314_v37  ;;  %2752 = vmatprep.mubr.bf16.mxu1 %v6314_v37 }
 0x320   :  { %2641 = vmatpush1.bf16.msra.mxu0 %v2464_v51  ;;  %2723 = vmatpush1.bf16.msra.mxu1 %v2466_v5  ;;  %v2550_v51 = vld [vmem:[#allocation2 + $0x668] sm:$0xff]  ;;  %v2556_v5 = vld [vmem:[#allocation2 + $0x698] sm:$0xff] }
 0x321   :  { %2642 = vmatprep.subr.bf16.mxu0 %v2472_v38  ;;  %2724 = vmatprep.subr.bf16.mxu1 %v2474_v39  ;;  %v2558_v38 = vld [vmem:[#allocation2 + $0x6a8] sm:$0xff]  ;;  %v2555_v39 = vld [vmem:[#allocation2 + $0x690] sm:$0xff] }
 0x324   :  { %2643 = vmatpush1.bf16.msra.mxu0 %v2471_v56  ;;  %2725 = vmatpush1.bf16.msra.mxu1 %v2473_v10  ;;  %v2557_v56 = vld [vmem:[#allocation2 + $0x6a0] sm:$0xff]  ;;  %v2563_v10 = vld [vmem:[#allocation2 + $0x6d0] sm:$0xff] }
 0x325   :  { %2644 = vmatprep.subr.bf16.mxu0 %v2479_v40  ;;  %2726 = vmatprep.subr.bf16.mxu1 %v2481_v41  ;;  %v2565_v40 = vld [vmem:[#allocation2 + $0x6e0] sm:$0xff]  ;;  %v2562_v41 = vld [vmem:[#allocation2 + $0x6c8] sm:$0xff] }
 0x328   :  { %2645 = vmatpush1.bf16.msra.mxu0 %v2478_v42  ;;  %2727 = vmatpush1.bf16.msra.mxu1 %v2480_v43  ;;  %v2564_v42 = vld [vmem:[#allocation2 + $0x6d8] sm:$0xff]  ;;  %v2350_v43 = vld [vmem:[#allocation2 + $0x28] sm:$0xff] }
 0x329   :  { %2646 = vmatprep.subr.bf16.mxu0 %v2486_v44  ;;  %2728 = vmatprep.subr.bf16.mxu1 %v2488_v26  ;;  %v2407_v44 = vld [vmem:[#allocation2 + $0x1f0] sm:$0xff]  ;;  %v6323_v26 = vpack.c.bf16 %v2335_v6, %v2335_v6  ;;  %v2364_v6 = vld [vmem:[#allocation2 + $0x98] sm:$0xff] }
 0x32c   :  { %2647 = vmatpush1.bf16.msra.mxu0 %v2485_v45  ;;  %2729 = vmatpush1.bf16.msra.mxu1 %v2487_v46  ;;  %v2349_v45 = vld [vmem:[#allocation2 + $0x20] sm:$0xff]  ;;  %v2351_v46 = vld [vmem:[#allocation2 + $0x30] sm:$0xff] }
 0x32d   :  { %2648 = vmatprep.subr.bf16.mxu0 %v2493_v47  ;;  %2730 = vmatprep.subr.bf16.mxu1 %v2495_v48  ;;  %v2357_v47 = vld [vmem:[#allocation2 + $0x60] sm:$0xff]  ;;  %v2414_v48 = vld [vmem:[#allocation2 + $0x228] sm:$0xff] }
 0x330   :  { %2649 = vmatpush1.bf16.msra.mxu0 %v2492_v49  ;;  %2731 = vmatpush1.bf16.msra.mxu1 %v2494_v50  ;;  %v2356_v49 = vld [vmem:[#allocation2 + $0x58] sm:$0xff]  ;;  %v2421_v50 = vld [vmem:[#allocation2 + $0x260] sm:$0xff] }
 0x331   :  { %2650 = vmatprep.subr.bf16.mxu0 %v2500_v53  ;;  %2732 = vmatprep.subr.bf16.mxu1 %v2502_v54  ;;  %v2363_v53 = vld [vmem:[#allocation2 + $0x90] sm:$0xff]  ;;  %v2365_v54 = vld [vmem:[#allocation2 + $0xa0] sm:$0xff] }
 0x334   :  { %2651 = vmatpush1.bf16.msra.mxu0 %v2499_v55  ;;  %2733 = vmatpush1.bf16.msra.mxu1 %v2501_v59  ;;  %v2371_v55 = vld [vmem:[#allocation2 + $0xd0] sm:$0xff]  ;;  %v2428_v59 = vld [vmem:[#allocation2 + $0x298] sm:$0xff] }
 0x335   :  { %2652 = vmatprep.subr.bf16.mxu0 %v2507_v63  ;;  %2734 = vmatprep.subr.bf16.mxu1 %v2509_v7  ;;  %v2370_v63 = vld [vmem:[#allocation2 + $0xc8] sm:$0xff]  ;;  %v2372_v7 = vld [vmem:[#allocation2 + $0xd8] sm:$0xff] }
 0x338   :  { %2653 = vmatpush1.bf16.msra.mxu0 %v2506_v8  ;;  %2735 = vmatpush1.bf16.msra.mxu1 %v2508_v9  ;;  %v2378_v8 = vld [vmem:[#allocation2 + $0x108] sm:$0xff]  ;;  %v2435_v9 = vld [vmem:[#allocation2 + $0x2d0] sm:$0xff] }
 0x339   :  { %2654 = vmatprep.subr.bf16.mxu0 %v2514_v12  ;;  %2736 = vmatprep.subr.bf16.mxu1 %v2516_v13  ;;  %v2379_v12 = vld [vmem:[#allocation2 + $0x110] sm:$0xff]  ;;  %v2385_v13 = vld [vmem:[#allocation2 + $0x140] sm:$0xff] }
 0x33c   :  { %2655 = vmatpush1.bf16.msra.mxu0 %v2513_v14  ;;  %2737 = vmatpush1.bf16.msra.mxu1 %v2515_v15  ;;  %v2442_v14 = vld [vmem:[#allocation2 + $0x308] sm:$0xff]  ;;  %v2384_v15 = vld [vmem:[#allocation2 + $0x138] sm:$0xff] }
 0x33d   :  { %2656 = vmatprep.subr.bf16.mxu0 %v2521_v16  ;;  %2738 = vmatprep.subr.bf16.mxu1 %v2523_v17  ;;  %v2386_v16 = vld [vmem:[#allocation2 + $0x148] sm:$0xff]  ;;  %v2392_v17 = vld [vmem:[#allocation2 + $0x178] sm:$0xff] }
 0x340   :  { %2657 = vmatpush1.bf16.msra.mxu0 %v2520_v19  ;;  %2739 = vmatpush1.bf16.msra.mxu1 %v2522_v20  ;;  %v2449_v19 = vld [vmem:[#allocation2 + $0x340] sm:$0xff]  ;;  %v2391_v20 = vld [vmem:[#allocation2 + $0x170] sm:$0xff] }
 0x341   :  { %2658 = vmatprep.subr.bf16.mxu0 %v2528_v21  ;;  %2740 = vmatprep.subr.bf16.mxu1 %v2530_v22  ;;  %v2393_v21 = vld [vmem:[#allocation2 + $0x180] sm:$0xff]  ;;  %v2399_v22 = vld [vmem:[#allocation2 + $0x1b0] sm:$0xff] }
 0x344   :  { %2659 = vmatpush1.bf16.msra.mxu0 %v2527_v23  ;;  %2741 = vmatpush1.bf16.msra.mxu1 %v2529_v24  ;;  %v2456_v23 = vld [vmem:[#allocation2 + $0x378] sm:$0xff]  ;;  %v2398_v24 = vld [vmem:[#allocation2 + $0x1a8] sm:$0xff] }
 0x345   :  { %2660 = vmatprep.subr.bf16.mxu0 %v2535_v25  ;;  %2742 = vmatprep.subr.bf16.mxu1 %v2537_v27  ;;  %v2400_v25 = vld [vmem:[#allocation2 + $0x1b8] sm:$0xff]  ;;  %v2406_v27 = vld [vmem:[#allocation2 + $0x1e8] sm:$0xff] }
 0x348   :  { %2661 = vmatpush1.bf16.msra.mxu0 %v2534_v28  ;;  %2743 = vmatpush1.bf16.msra.mxu1 %v2536_v29  ;;  %v2519_v28 = vld [vmem:[#allocation2 + $0x570] sm:$0xff]  ;;  %v2405_v29 = vld [vmem:[#allocation2 + $0x1e0] sm:$0xff] }
 0x349   :  { %2662 = vmatprep.subr.bf16.mxu0 %v2542_v30  ;;  %2744 = vmatprep.subr.bf16.mxu1 %v2544_v31  ;;  %v2463_v30 = vld [vmem:[#allocation2 + $0x3b0] sm:$0xff]  ;;  %v2413_v31 = vld [vmem:[#allocation2 + $0x220] sm:$0xff] }
 0x34c   :  { %2663 = vmatpush1.bf16.msra.mxu0 %v2541_v32  ;;  %2745 = vmatpush1.bf16.msra.mxu1 %v2543_v34  ;;  %v2526_v32 = vld [vmem:[#allocation2 + $0x5a8] sm:$0xff]  ;;  %v2412_v34 = vld [vmem:[#allocation2 + $0x218] sm:$0xff] }
 0x34d   :  { %2664 = vmatprep.subr.bf16.mxu0 %v2549_v18  ;;  %2746 = vmatprep.subr.bf16.mxu1 %v2551_v35  ;;  %v2470_v18 = vld [vmem:[#allocation2 + $0x3e8] sm:$0xff]  ;;  %v2420_v35 = vld [vmem:[#allocation2 + $0x258] sm:$0xff] }
 0x350   :  { %2665 = vmatpush1.bf16.msra.mxu0 %v2548_v36  ;;  %2747 = vmatpush1.bf16.msra.mxu1 %v2550_v51  ;;  %v2533_v36 = vld [vmem:[#allocation2 + $0x5e0] sm:$0xff]  ;;  %v2419_v51 = vld [vmem:[#allocation2 + $0x250] sm:$0xff] }
 0x351   :  { %2666 = vmatprep.subr.bf16.mxu0 %v2556_v5  ;;  %2748 = vmatprep.subr.bf16.mxu1 %v2558_v38  ;;  %v2477_v5 = vld [vmem:[#allocation2 + $0x420] sm:$0xff]  ;;  %v2427_v38 = vld [vmem:[#allocation2 + $0x290] sm:$0xff] }
 0x354   :  { %2667 = vmatpush1.bf16.msra.mxu0 %v2555_v39  ;;  %2749 = vmatpush1.bf16.msra.mxu1 %v2557_v56  ;;  %v2540_v39 = vld [vmem:[#allocation2 + $0x618] sm:$0xff]  ;;  %v2426_v56 = vld [vmem:[#allocation2 + $0x288] sm:$0xff] }
 0x355   :  { %2668 = vmatprep.subr.bf16.mxu0 %v2563_v10  ;;  %2750 = vmatprep.subr.bf16.mxu1 %v2565_v40  ;;  %v2484_v10 = vld [vmem:[#allocation2 + $0x458] sm:$0xff]  ;;  %v2434_v40 = vld [vmem:[#allocation2 + $0x2c8] sm:$0xff] }
 0x358   :  { %2669 = vmatpush1.bf16.msra.mxu0 %v2562_v41  ;;  %2751 = vmatpush1.bf16.msra.mxu1 %v2564_v42  ;;  %v2547_v41 = vld [vmem:[#allocation2 + $0x650] sm:$0xff]  ;;  %v2433_v42 = vld [vmem:[#allocation2 + $0x2c0] sm:$0xff] }
 0x359   :  { %2761 = vmatprep.subr.bf16.mxu0 %v2350_v43  ;;  %5473 = vmatprep.subr.bf16.mxu1 %v2407_v44  ;;  %v2491_v43 = vld [vmem:[#allocation2 + $0x490] sm:$0xff]  ;;  %v2441_v44 = vld [vmem:[#allocation2 + $0x300] sm:$0xff] }
 0x35b   :  { %2671 = vmatmul.mubr.bf16.vlgmr.msra.gmra.mrb[20].mxu0 %v6323_v26  ;;  %2753 = vmatmul.mubr.bf16.vlgmr.msra.gmra.mrb[20].mxu1 %v6323_v26 }
 0x35c   :  { %2762 = vmatpush1.bf16.msra.mxu0 %v2349_v45  ;;  %5474 = vmatpush3.bf16.msra.mxu1 %v2351_v46  ;;  %v2554_v45 = vld [vmem:[#allocation2 + $0x688] sm:$0xff]  ;;  %v2440_v46 = vld [vmem:[#allocation2 + $0x2f8] sm:$0xff] }
 0x35d   :  { %2763 = vmatprep.subr.bf16.mxu0 %v2357_v47  ;;  %5475 = vmatprep.subr.bf16.mxu1 %v2414_v48  ;;  %v2498_v47 = vld [vmem:[#allocation2 + $0x4c8] sm:$0xff]  ;;  %v2448_v48 = vld [vmem:[#allocation2 + $0x338] sm:$0xff] }
 0x35e   :  { %2793 = vmatprep.mubr.bf16.mxu0 %v6302_v11  ;;  %2875 = vmatprep.mubr.bf16.mxu1 %v6302_v11  ;;  %v2377_v11 = vld [vmem:[#allocation2 + $0x100] sm:$0xff] }
 0x360   :  { %2764 = vmatpush1.bf16.msra.mxu0 %v2356_v49  ;;  %5476 = vmatpush3.bf16.msra.mxu1 %v2358_v52  ;;  %v2561_v49 = vld [vmem:[#allocation2 + $0x6c0] sm:$0xff]  ;;  %v2447_v52 = vld [vmem:[#allocation2 + $0x330] sm:$0xff] }
 0x361   :  { %2765 = vmatprep.subr.bf16.mxu0 %v2364_v6  ;;  %5477 = vmatprep.subr.bf16.mxu1 %v2421_v50  ;;  %v2505_v6 = vld [vmem:[#allocation2 + $0x500] sm:$0xff]  ;;  %v2455_v50 = vld [vmem:[#allocation2 + $0x370] sm:$0xff] }
 0x364   :  { %2766 = vmatpush1.bf16.msra.mxu0 %v2363_v53  ;;  %5478 = vmatpush3.bf16.msra.mxu1 %v2365_v54  ;;  %v2568_v53 = vld [vmem:[#allocation2 + $0x6f8] sm:$0xff]  ;;  %v2454_v54 = vld [vmem:[#allocation2 + $0x368] sm:$0xff] }
 0x365   :  { %2767 = vmatprep.subr.bf16.mxu0 %v2371_v55  ;;  %5479 = vmatprep.subr.bf16.mxu1 %v2428_v59  ;;  %v2512_v55 = vld [vmem:[#allocation2 + $0x538] sm:$0xff]  ;;  %v2462_v59 = vld [vmem:[#allocation2 + $0x3a8] sm:$0xff] }
 0x368   :  { %2768 = vmatpush1.bf16.msra.mxu0 %v2370_v63  ;;  %5480 = vmatpush3.bf16.msra.mxu1 %v2372_v7  ;;  %v2461_v63 = vld [vmem:[#allocation2 + $0x3a0] sm:$0xff] }
 0x369   :  { %2769 = vmatprep.subr.bf16.mxu0 %v2378_v8  ;;  %5481 = vmatprep.subr.bf16.mxu1 %v2435_v9  ;;  %v2469_v7 = vld [vmem:[#allocation2 + $0x3e0] sm:$0xff]  ;;  %v2468_v8 = vld [vmem:[#allocation2 + $0x3d8] sm:$0xff] }
 0x36a   :  { %v2476_v9 = vld [vmem:[#allocation2 + $0x418] sm:$0xff] }
 0x36c   :  { %2770 = vmatpush1.bf16.msra.mxu0 %v2377_v11  ;;  %5482 = vmatpush3.bf16.msra.mxu1 %v2379_v12  ;;  %v2475_v11 = vld [vmem:[#allocation2 + $0x410] sm:$0xff] }
 0x36d   :  { %2771 = vmatprep.subr.bf16.mxu0 %v2385_v13  ;;  %5483 = vmatprep.subr.bf16.mxu1 %v2442_v14  ;;  %v2483_v12 = vld [vmem:[#allocation2 + $0x450] sm:$0xff]  ;;  %v2482_v13 = vld [vmem:[#allocation2 + $0x448] sm:$0xff] }
 0x36e   :  { %v2490_v14 = vld [vmem:[#allocation2 + $0x488] sm:$0xff] }
 0x370   :  { %2772 = vmatpush1.bf16.msra.mxu0 %v2384_v15  ;;  %5484 = vmatpush3.bf16.msra.mxu1 %v2386_v16  ;;  %v2489_v15 = vld [vmem:[#allocation2 + $0x480] sm:$0xff]  ;;  %v2496_v16 = vld [vmem:[#allocation2 + $0x4b8] sm:$0xff] }
 0x371   :  { %2773 = vmatprep.subr.bf16.mxu0 %v2392_v17  ;;  %5485 = vmatprep.subr.bf16.mxu1 %v2449_v19  ;;  %v2504_v17 = vld [vmem:[#allocation2 + $0x4f8] sm:$0xff]  ;;  %v2511_v19 = vld [vmem:[#allocation2 + $0x530] sm:$0xff] }
 0x374   :  { %2774 = vmatpush1.bf16.msra.mxu0 %v2391_v20  ;;  %5486 = vmatpush3.bf16.msra.mxu1 %v2393_v21  ;;  %v2510_v20 = vld [vmem:[#allocation2 + $0x528] sm:$0xff] }
 0x375   :  { %2775 = vmatprep.subr.bf16.mxu0 %v2399_v22  ;;  %5487 = vmatprep.subr.bf16.mxu1 %v2456_v23  ;;  %v2518_v21 = vld [vmem:[#allocation2 + $0x568] sm:$0xff]  ;;  %v2517_v22 = vld [vmem:[#allocation2 + $0x560] sm:$0xff] }
 0x376   :  { %v2525_v23 = vld [vmem:[#allocation2 + $0x5a0] sm:$0xff] }
 0x378   :  { %2776 = vmatpush1.bf16.msra.mxu0 %v2398_v24  ;;  %5488 = vmatpush3.bf16.msra.mxu1 %v2400_v25  ;;  %v2524_v24 = vld [vmem:[#allocation2 + $0x598] sm:$0xff] }
 0x379   :  { %2777 = vmatprep.subr.bf16.mxu0 %v2406_v27  ;;  %5495 = vmatprep.subr.bf16.mxu1 %v2519_v28  ;;  %v2532_v25 = vld [vmem:[#allocation2 + $0x5d8] sm:$0xff]  ;;  %v2531_v27 = vld [vmem:[#allocation2 + $0x5d0] sm:$0xff] }
 0x37a   :  { %v2539_v28 = vld [vmem:[#allocation2 + $0x610] sm:$0xff] }
 0x37b   :  { %2876 = vmatmul.mubr.bf16.vlgmr.msra.gmra.mrb[24].mxu1 %v6309_v33 }
 0x37c   :  { %2778 = vmatpush1.bf16.msra.mxu0 %v2405_v29  ;;  %5496 = vmatpush3.bf16.msra.mxu1 %v2463_v30  ;;  %v2538_v29 = vld [vmem:[#allocation2 + $0x608] sm:$0xff] }
 0x37d   :  { %2779 = vmatprep.subr.bf16.mxu0 %v2413_v31  ;;  %5497 = vmatprep.subr.bf16.mxu1 %v2526_v32  ;;  %v2546_v30 = vld [vmem:[#allocation2 + $0x648] sm:$0xff]  ;;  %v2545_v31 = vld [vmem:[#allocation2 + $0x640] sm:$0xff] }
 0x37e   :  { %2915 = vmatprep.mubr.bf16.mxu1 %v6314_v37  ;;  %v2553_v32 = vld [vmem:[#allocation2 + $0x680] sm:$0xff] }
 0x380   :  { %2780 = vmatpush1.bf16.msra.mxu0 %v2412_v34  ;;  %5498 = vmatpush3.bf16.msra.mxu1 %v2470_v18  ;;  %v2552_v34 = vld [vmem:[#allocation2 + $0x678] sm:$0xff] }
 0x381   :  { %2781 = vmatprep.subr.bf16.mxu0 %v2420_v35  ;;  %5499 = vmatprep.subr.bf16.mxu1 %v2533_v36  ;;  %v2560_v18 = vld [vmem:[#allocation2 + $0x6b8] sm:$0xff]  ;;  %v2559_v35 = vld [vmem:[#allocation2 + $0x6b0] sm:$0xff] }
 0x382   :  { %v2567_v36 = vld [vmem:[#allocation2 + $0x6f0] sm:$0xff] }
 0x384   :  { %2782 = vmatpush1.bf16.msra.mxu0 %v2419_v51  ;;  %5500 = vmatpush3.bf16.msra.mxu1 %v2477_v5  ;;  %v2566_v51 = vld [vmem:[#allocation2 + $0x6e8] sm:$0xff]  ;;  %v2571_v5 = vsub.s32 2, %v6246_v58 }
 0x385   :  { %2783 = vmatprep.subr.bf16.mxu0 %v2427_v38  ;;  %5501 = vmatprep.subr.bf16.mxu1 %v2540_v39 }
 0x386   :  { %v2572_v38 = vrot.slane %v6252_v60, %v2571_v5  ;;  %v2580_v39 = vrot.slane %v6257_v61, %v2571_v5 }
 0x388   :  { %2784 = vmatpush1.bf16.msra.mxu0 %v2426_v56  ;;  %5502 = vmatpush3.bf16.msra.mxu1 %v2484_v10  ;;  %v2576_v56 = vrot.slane %v6262_v62, %v2571_v5  ;;  %v2584_v10 = vrot.slane %v6267_v4, %v2571_v5 }
 0x389   :  { %2785 = vmatprep.subr.bf16.mxu0 %v2434_v40  ;;  %5503 = vmatprep.subr.bf16.mxu1 %v2547_v41 }
 0x38c   :  { %2786 = vmatpush1.bf16.msra.mxu0 %v2433_v42  ;;  %5504 = vmatpush3.bf16.msra.mxu1 %v2491_v43 }
 0x38d   :  { %2787 = vmatprep.subr.bf16.mxu0 %v2441_v44  ;;  %5505 = vmatprep.subr.bf16.mxu1 %v2554_v45 }
 0x390   :  { %2788 = vmatpush1.bf16.msra.mxu0 %v2440_v46  ;;  %5506 = vmatpush3.bf16.msra.mxu1 %v2498_v47 }
 0x391   :  { %2789 = vmatprep.subr.bf16.mxu0 %v2448_v48  ;;  %5507 = vmatprep.subr.bf16.mxu1 %v2561_v49 }
 0x394   :  { %2790 = vmatpush1.bf16.msra.mxu0 %v2447_v52  ;;  %5508 = vmatpush3.bf16.msra.mxu1 %v2505_v6 }
 0x395   :  { %2791 = vmatprep.subr.bf16.mxu0 %v2455_v50  ;;  %5509 = vmatprep.subr.bf16.mxu1 %v2568_v53 }
 0x398   :  { %2792 = vmatpush1.bf16.msra.mxu0 %v2454_v54  ;;  %5510 = vmatpush3.bf16.msra.mxu1 %v2512_v55 }
 0x399   :  { %2802 = vmatprep.subr.bf16.mxu0 %v2462_v59 }
 0x39b   :  { %2794 = vmatmul.mubr.bf16.vlgmr.msra.gmra.mrb[24].mxu0 %v6309_v33  ;;  %2916 = vmatmul.mubr.bf16.vlgmr.msra.gmra.mrb[28].mxu1 %v6323_v26  ;;  %v2497_v33 = vld [vmem:[#allocation2 + $0x4c0] sm:$0xff] }
 0x39c   :  { %2803 = vmatpush1.bf16.msra.mxu0 %v2461_v63  ;;  %2834 = vmatprep.mubr.bf16.mxu0 %v6314_v37  ;;  %v2503_v37 = vld [vmem:[#allocation2 + $0x4f0] sm:$0xff] }
 0x39d   :  { %2804 = vmatprep.subr.bf16.mxu0 %v2469_v7 }
 0x3a0   :  { %2805 = vmatpush1.bf16.msra.mxu0 %v2468_v8 }
 0x3a1   :  { %2806 = vmatprep.subr.bf16.mxu0 %v2476_v9  ;;  %v2596_v9 = vrot.slane %v6224_v3, %v2571_v5 }
 0x3a4   :  { %2807 = vmatpush1.bf16.msra.mxu0 %v2475_v11 }
 0x3a5   :  { %2808 = vmatprep.subr.bf16.mxu0 %v2483_v12 }
 0x3a8   :  { %2809 = vmatpush1.bf16.msra.mxu0 %v2482_v13 }
 0x3a9   :  { %2810 = vmatprep.subr.bf16.mxu0 %v2490_v14 }
 0x3ac   :  { %2811 = vmatpush1.bf16.msra.mxu0 %v2489_v15 }
 0x3ad   :  { %2812 = vmatprep.subr.bf16.mxu0 %v2497_v33 }
 0x3b0   :  { %2813 = vmatpush1.bf16.msra.mxu0 %v2496_v16 }
 0x3b1   :  { %2814 = vmatprep.subr.bf16.mxu0 %v2504_v17 }
 0x3b4   :  { %2815 = vmatpush1.bf16.msra.mxu0 %v2503_v37  ;;  %v2588_v37 = vrot.slane %v6214_v1, %v2571_v5 }
 0x3b5   :  { %2816 = vmatprep.subr.bf16.mxu0 %v2511_v19  ;;  %v2592_v19 = vrot.slane %v6219_v2, %v2571_v5 }
 0x3b8   :  { %2817 = vmatpush1.bf16.msra.mxu0 %v2510_v20 }
 0x3b9   :  { %2818 = vmatprep.subr.bf16.mxu0 %v2518_v21 }
 0x3bc   :  { %2819 = vmatpush1.bf16.msra.mxu0 %v2517_v22 }
 0x3bd   :  { %2820 = vmatprep.subr.bf16.mxu0 %v2525_v23 }
 0x3c0   :  { %2821 = vmatpush1.bf16.msra.mxu0 %v2524_v24 }
 0x3c1   :  { %2822 = vmatprep.subr.bf16.mxu0 %v2532_v25 }
 0x3c4   :  { %2823 = vmatpush1.bf16.msra.mxu0 %v2531_v27 }
 0x3c5   :  { %2824 = vmatprep.subr.bf16.mxu0 %v2539_v28 }
 0x3c8   :  { %2825 = vmatpush1.bf16.msra.mxu0 %v2538_v29 }
 0x3c9   :  { %2826 = vmatprep.subr.bf16.mxu0 %v2546_v30 }
 0x3cc   :  { %2827 = vmatpush1.bf16.msra.mxu0 %v2545_v31 }
 0x3cd   :  { %2828 = vmatprep.subr.bf16.mxu0 %v2553_v32 }
 0x3d0   :  { %2829 = vmatpush1.bf16.msra.mxu0 %v2552_v34 }
 0x3d1   :  { %2830 = vmatprep.subr.bf16.mxu0 %v2560_v18 }
 0x3d4   :  { %2831 = vmatpush1.bf16.msra.mxu0 %v2559_v35 }
 0x3d5   :  { %2832 = vmatprep.subr.bf16.mxu0 %v2567_v36 }
 0x3d8   :  { %2833 = vmatpush1.bf16.msra.mxu0 %v2566_v51 }
 0x3db   :  { %2835 = vmatmul.mubr.bf16.vlgmr.msra.gmra.mrb[24].mxu0 %v6323_v26 }
 0x42e   :  { %v2672_v40 = vpop.f32.mrb[20].mxu0  ;;  %v2754_v41 = vpop.f32.mrb[20].mxu1 }
 0x42f   :  { %v6340_v42 = vadd.f32 %v2672_v40, %v2572_v38  ;;  %v6342_v43 = vadd.f32 %v2754_v41, %v2580_v39  ;;  %v2674_v44 = vpop.f32.mrb[21].mxu0  ;;  %v2756_v45 = vpop.f32.mrb[21].mxu1 }
 0x430   :  { %v5610_v46 = vadd.f32 %v2674_v44, %v2576_v56  ;;  %v6344_v26 = vadd.f32 %v2756_v45, %v2584_v10  ;;  %v2676_v47 = vpop.f32.mrb[22].mxu0  ;;  %v2758_v48 = vpop.f32.mrb[22].mxu1 }
 0x431   :  { %v2923_v49 = vmax.f32 %v6340_v42, 0.0  ;;  %v2925_v52 = vmax.f32 %v6342_v43, 0.0  ;;  %v2677_v6 = vpop.f32.mrb[23].mxu0  ;;  %v2759_v50 = vpop.f32.mrb[23].mxu1 }
 0x432   :  { %v2924_v53 = vmax.f32 %v5610_v46, 0.0  ;;  %v2926_v54 = vmax.f32 %v6344_v26, 0.0 }
 0x44e   :  { %v5489_v55 = vpop.f32.mrb[24].mxu1 }
 0x44f   :  { %v5490_v59 = vpop.f32.mrb[25].mxu1 }
 0x450   :  { %v5491_v63 = vadd.f32 %v5490_v59, %v5489_v55  ;;  %v5492_v7 = vpop.f32.mrb[26].mxu1 }
 0x451   :  { %v5493_v8 = vpop.f32.mrb[27].mxu1 }
 0x452   :  { %v2878_v11 = vadd.f32 %v5491_v63, %v2596_v9 }
 0x46e   :  { %v5511_v12 = vpop.f32.mrb[28].mxu1 }
 0x46f   :  { %v5512_v13 = vpop.f32.mrb[29].mxu1 }
 0x470   :  { %v5513_v14 = vadd.f32 %v5512_v13, %v5511_v12  ;;  %v5514_v15 = vpop.f32.mrb[30].mxu1 }
 0x471   :  { %v5515_v33 = vpop.f32.mrb[31].mxu1 }
 0x472   :  { %v6350_v16 = vadd.f32 %v5513_v14, %v2878_v11 }
 0x474   :  { %v2929_v17 = vmax.f32 %v6350_v16, 0.0 }
 0x4ae   :  { %v2836_v20 = vpop.f32.mrb[24].mxu0 }
 0x4af   :  { %v6355_v21 = vadd.f32 %v2836_v20, %v2588_v37  ;;  %v2838_v22 = vpop.f32.mrb[25].mxu0 }
 0x4b0   :  { %v6357_v23 = vadd.f32 %v2838_v22, %v2592_v19  ;;  %v2840_v24 = vpop.f32.mrb[26].mxu0 }
 0x4b1   :  { %v2927_v25 = vmax.f32 %v6355_v21, 0.0  ;;  %v2841_v27 = vpop.f32.mrb[27].mxu0 }
 0x4b2   :  { %v2928_v28 = vmax.f32 %v6357_v23, 0.0 }
 0x4b3   :  { %6015 = dma.done.wait [#allocation8 + $0x1], 28672 }
 0x4b4   :  { %6016 = vsyncadd [#allocation8 + $0x1], 4294938624  ;;  %v2935_v29 = vpack.c.bf16 %v2924_v53, %v2924_v53  ;;  %v2942_v30 = vld [vmem:[#allocation3 + $0x8] sm:$0xff]  ;;  %v2944_v31 = vld [vmem:[#allocation3 + $0x18] sm:$0xff] }
 0x4b5   :  { %v2941_v32 = vld [vmem:[#allocation3] sm:$0xff]  ;;  %3181 = vmatprep.subr.bf16.mxu1 %v2942_v30  ;;  %3345 = vmatprep.subr.bf16.mxu0 %v2944_v31  ;;  %v2943_v34 = vld [vmem:[#allocation3 + $0x10] sm:$0xff]  ;;  %v2946_v18 = vld [vmem:[#allocation3 + $0x28] sm:$0xff] }
 0x4b6   :  { %3213 = vmatprep.mubr.bf16.mxu1 %v2935_v29  ;;  %3377 = vmatprep.mubr.bf16.mxu0 %v2935_v29  ;;  %v2948_v35 = vld [vmem:[#allocation3 + $0x38] sm:$0xff]  ;;  %v2945_v36 = vld [vmem:[#allocation3 + $0x20] sm:$0xff]  ;;  %v2947_v51 = vld [vmem:[#allocation3 + $0x30] sm:$0xff] }
 0x4b7   :  { %3182 = vmatpush1.bf16.msra.mxu1 %v2941_v32  ;;  %3346 = vmatpush1.bf16.msra.mxu0 %v2943_v34  ;;  %v2950_v5 = vld [vmem:[#allocation3 + $0x48] sm:$0xff]  ;;  %v2952_v38 = vld [vmem:[#allocation3 + $0x58] sm:$0xff]  ;;  %v2949_v39 = vld [vmem:[#allocation3 + $0x40] sm:$0xff] }
 0x4b8   :  { %3183 = vmatprep.subr.bf16.mxu1 %v2946_v18  ;;  %3347 = vmatprep.subr.bf16.mxu0 %v2948_v35  ;;  %v2951_v56 = vld [vmem:[#allocation3 + $0x50] sm:$0xff]  ;;  %v2954_v10 = vld [vmem:[#allocation3 + $0x68] sm:$0xff]  ;;  %v2956_v40 = vld [vmem:[#allocation3 + $0x78] sm:$0xff] }
 0x4b9   :  { %v2953_v41 = vld [vmem:[#allocation3 + $0x60] sm:$0xff]  ;;  %v2955_v44 = vld [vmem:[#allocation3 + $0x70] sm:$0xff]  ;;  %v2958_v45 = vld [vmem:[#allocation3 + $0x88] sm:$0xff] }
 0x4ba   :  { %v2960_v46 = vld [vmem:[#allocation3 + $0x98] sm:$0xff]  ;;  %v2957_v47 = vld [vmem:[#allocation3 + $0x80] sm:$0xff]  ;;  %v2959_v48 = vld [vmem:[#allocation3 + $0x90] sm:$0xff] }
 0x4bb   :  { %3184 = vmatpush1.bf16.msra.mxu1 %v2945_v36  ;;  %3348 = vmatpush1.bf16.msra.mxu0 %v2947_v51  ;;  %v2962_v6 = vld [vmem:[#allocation3 + $0xa8] sm:$0xff]  ;;  %v2964_v50 = vld [vmem:[#allocation3 + $0xb8] sm:$0xff]  ;;  %v2961_v53 = vld [vmem:[#allocation3 + $0xa0] sm:$0xff] }
 0x4bc   :  { %3185 = vmatprep.subr.bf16.mxu1 %v2950_v5  ;;  %3349 = vmatprep.subr.bf16.mxu0 %v2952_v38  ;;  %v2963_v55 = vld [vmem:[#allocation3 + $0xb0] sm:$0xff]  ;;  %v2966_v59 = vld [vmem:[#allocation3 + $0xc8] sm:$0xff]  ;;  %v2968_v63 = vld [vmem:[#allocation3 + $0xd8] sm:$0xff] }
 0x4bd   :  { %v2965_v7 = vld [vmem:[#allocation3 + $0xc0] sm:$0xff]  ;;  %v2967_v8 = vld [vmem:[#allocation3 + $0xd0] sm:$0xff]  ;;  %v2970_v9 = vld [vmem:[#allocation3 + $0xe8] sm:$0xff] }
 0x4be   :  { %v2972_v11 = vld [vmem:[#allocation3 + $0xf8] sm:$0xff]  ;;  %v2969_v12 = vld [vmem:[#allocation3 + $0xe0] sm:$0xff]  ;;  %v2971_v13 = vld [vmem:[#allocation3 + $0xf0] sm:$0xff] }
 0x4bf   :  { %3186 = vmatpush1.bf16.msra.mxu1 %v2949_v39  ;;  %3350 = vmatpush1.bf16.msra.mxu0 %v2951_v56  ;;  %v2974_v14 = vld [vmem:[#allocation3 + $0x108] sm:$0xff]  ;;  %v2976_v15 = vld [vmem:[#allocation3 + $0x118] sm:$0xff]  ;;  %v2973_v33 = vld [vmem:[#allocation3 + $0x100] sm:$0xff] }
 0x4c0   :  { %3187 = vmatprep.subr.bf16.mxu1 %v2954_v10  ;;  %3351 = vmatprep.subr.bf16.mxu0 %v2956_v40  ;;  %v2975_v37 = vld [vmem:[#allocation3 + $0x110] sm:$0xff]  ;;  %v2978_v19 = vld [vmem:[#allocation3 + $0x128] sm:$0xff]  ;;  %v2980_v20 = vld [vmem:[#allocation3 + $0x138] sm:$0xff] }
 0x4c1   :  { %v2977_v22 = vld [vmem:[#allocation3 + $0x120] sm:$0xff]  ;;  %v2979_v24 = vld [vmem:[#allocation3 + $0x130] sm:$0xff]  ;;  %v2982_v27 = vld [vmem:[#allocation3 + $0x148] sm:$0xff] }
 0x4c2   :  { %v2984_v29 = vld [vmem:[#allocation3 + $0x158] sm:$0xff]  ;;  %v2981_v30 = vld [vmem:[#allocation3 + $0x140] sm:$0xff]  ;;  %v2983_v31 = vld [vmem:[#allocation3 + $0x150] sm:$0xff] }
 0x4c3   :  { %3188 = vmatpush1.bf16.msra.mxu1 %v2953_v41  ;;  %3352 = vmatpush1.bf16.msra.mxu0 %v2955_v44  ;;  %v2986_v32 = vld [vmem:[#allocation3 + $0x168] sm:$0xff]  ;;  %v2988_v34 = vld [vmem:[#allocation3 + $0x178] sm:$0xff]  ;;  %v2985_v18 = vld [vmem:[#allocation3 + $0x160] sm:$0xff] }
 0x4c4   :  { %3189 = vmatprep.subr.bf16.mxu1 %v2958_v45  ;;  %3353 = vmatprep.subr.bf16.mxu0 %v2960_v46  ;;  %v2987_v35 = vld [vmem:[#allocation3 + $0x170] sm:$0xff]  ;;  %v2990_v36 = vld [vmem:[#allocation3 + $0x188] sm:$0xff]  ;;  %v2992_v51 = vld [vmem:[#allocation3 + $0x198] sm:$0xff] }
 0x4c5   :  { %v2989_v5 = vld [vmem:[#allocation3 + $0x180] sm:$0xff]  ;;  %v2991_v38 = vld [vmem:[#allocation3 + $0x190] sm:$0xff]  ;;  %v2994_v39 = vld [vmem:[#allocation3 + $0x1a8] sm:$0xff] }
 0x4c6   :  { %v2996_v56 = vld [vmem:[#allocation3 + $0x1b8] sm:$0xff]  ;;  %v2993_v10 = vld [vmem:[#allocation3 + $0x1a0] sm:$0xff]  ;;  %v2995_v40 = vld [vmem:[#allocation3 + $0x1b0] sm:$0xff] }
 0x4c7   :  { %3190 = vmatpush1.bf16.msra.mxu1 %v2957_v47  ;;  %3354 = vmatpush1.bf16.msra.mxu0 %v2959_v48  ;;  %v2998_v41 = vld [vmem:[#allocation3 + $0x1c8] sm:$0xff]  ;;  %v3000_v44 = vld [vmem:[#allocation3 + $0x1d8] sm:$0xff]  ;;  %v2997_v45 = vld [vmem:[#allocation3 + $0x1c0] sm:$0xff] }
 0x4c8   :  { %3191 = vmatprep.subr.bf16.mxu1 %v2962_v6  ;;  %3355 = vmatprep.subr.bf16.mxu0 %v2964_v50  ;;  %v2999_v46 = vld [vmem:[#allocation3 + $0x1d0] sm:$0xff]  ;;  %v3002_v47 = vld [vmem:[#allocation3 + $0x1e8] sm:$0xff]  ;;  %v3004_v48 = vld [vmem:[#allocation3 + $0x1f8] sm:$0xff] }
 0x4c9   :  { %v3001_v6 = vld [vmem:[#allocation3 + $0x1e0] sm:$0xff]  ;;  %v3003_v50 = vld [vmem:[#allocation3 + $0x1f0] sm:$0xff]  ;;  %v3144_v21 = vld [vmem:[#allocation3 + $0x658] sm:$0xff] }
 0x4ca   :  { %v3009_v42 = vld [vmem:[#allocation3 + $0x220] sm:$0xff]  ;;  %v3015_v26 = vld [vmem:[#allocation3 + $0x250] sm:$0xff] }
 0x4cb   :  { %3192 = vmatpush1.bf16.msra.mxu1 %v2961_v53  ;;  %3356 = vmatpush1.bf16.msra.mxu0 %v2963_v55  ;;  %v3006_v53 = vld [vmem:[#allocation3 + $0x208] sm:$0xff]  ;;  %v3008_v55 = vld [vmem:[#allocation3 + $0x218] sm:$0xff]  ;;  %v3073_v43 = vld [vmem:[#allocation3 + $0x420] sm:$0xff] }
 0x4cc   :  { %3193 = vmatprep.subr.bf16.mxu1 %v2966_v59  ;;  %3357 = vmatprep.subr.bf16.mxu0 %v2968_v63  ;;  %v2934_v59 = vpack.c.bf16 %v2923_v49, %v2923_v49  ;;  %v3005_v63 = vld [vmem:[#allocation3 + $0x200] sm:$0xff]  ;;  %v3011_v49 = vld [vmem:[#allocation3 + $0x230] sm:$0xff] }
 0x4cd   :  { %v3079_v23 = vld [vmem:[#allocation3 + $0x450] sm:$0xff] }
 0x4cf   :  { %3194 = vmatpush1.bf16.msra.mxu1 %v2965_v7  ;;  %3358 = vmatpush1.bf16.msra.mxu0 %v2967_v8  ;;  %v3007_v7 = vld [vmem:[#allocation3 + $0x210] sm:$0xff]  ;;  %v3010_v8 = vld [vmem:[#allocation3 + $0x228] sm:$0xff] }
 0x4d0   :  { %3195 = vmatprep.subr.bf16.mxu1 %v2970_v9  ;;  %3359 = vmatprep.subr.bf16.mxu0 %v2972_v11  ;;  %v3012_v9 = vld [vmem:[#allocation3 + $0x238] sm:$0xff]  ;;  %v2937_v11 = vpack.c.bf16 %v2926_v54, %v2926_v54 }
 0x4d1   :  { %v3020_v54 = vld [vmem:[#allocation3 + $0x278] sm:$0xff] }
 0x4d3   :  { %3196 = vmatpush1.bf16.msra.mxu1 %v2969_v12  ;;  %3360 = vmatpush1.bf16.msra.mxu0 %v2971_v13  ;;  %v3014_v12 = vld [vmem:[#allocation3 + $0x248] sm:$0xff]  ;;  %v3016_v13 = vld [vmem:[#allocation3 + $0x258] sm:$0xff] }
 0x4d4   :  { %3197 = vmatprep.subr.bf16.mxu1 %v2974_v14  ;;  %3361 = vmatprep.subr.bf16.mxu0 %v2976_v15  ;;  %v3013_v14 = vld [vmem:[#allocation3 + $0x240] sm:$0xff]  ;;  %v3018_v15 = vld [vmem:[#allocation3 + $0x268] sm:$0xff] }
 0x4d7   :  { %3198 = vmatpush1.bf16.msra.mxu1 %v2973_v33  ;;  %3362 = vmatpush1.bf16.msra.mxu0 %v2975_v37  ;;  %v3017_v33 = vld [vmem:[#allocation3 + $0x260] sm:$0xff]  ;;  %v3019_v37 = vld [vmem:[#allocation3 + $0x270] sm:$0xff] }
 0x4d8   :  { %3199 = vmatprep.subr.bf16.mxu1 %v2978_v19  ;;  %3363 = vmatprep.subr.bf16.mxu0 %v2980_v20  ;;  %v3022_v19 = vld [vmem:[#allocation3 + $0x288] sm:$0xff]  ;;  %v3024_v20 = vld [vmem:[#allocation3 + $0x298] sm:$0xff] }
 0x4db   :  { %3200 = vmatpush1.bf16.msra.mxu1 %v2977_v22  ;;  %3364 = vmatpush1.bf16.msra.mxu0 %v2979_v24  ;;  %v3021_v22 = vld [vmem:[#allocation3 + $0x280] sm:$0xff]  ;;  %v3023_v24 = vld [vmem:[#allocation3 + $0x290] sm:$0xff] }
 0x4dc   :  { %3201 = vmatprep.subr.bf16.mxu1 %v2982_v27  ;;  %3365 = vmatprep.subr.bf16.mxu0 %v2984_v29  ;;  %v3026_v27 = vld [vmem:[#allocation3 + $0x2a8] sm:$0xff]  ;;  %v3028_v29 = vld [vmem:[#allocation3 + $0x2b8] sm:$0xff] }
 0x4df   :  { %3202 = vmatpush1.bf16.msra.mxu1 %v2981_v30  ;;  %3366 = vmatpush1.bf16.msra.mxu0 %v2983_v31  ;;  %v3025_v30 = vld [vmem:[#allocation3 + $0x2a0] sm:$0xff]  ;;  %v3027_v31 = vld [vmem:[#allocation3 + $0x2b0] sm:$0xff] }
 0x4e0   :  { %3203 = vmatprep.subr.bf16.mxu1 %v2986_v32  ;;  %3367 = vmatprep.subr.bf16.mxu0 %v2988_v34  ;;  %v3030_v32 = vld [vmem:[#allocation3 + $0x2c8] sm:$0xff]  ;;  %v3032_v34 = vld [vmem:[#allocation3 + $0x2d8] sm:$0xff] }
 0x4e3   :  { %3204 = vmatpush1.bf16.msra.mxu1 %v2985_v18  ;;  %3368 = vmatpush1.bf16.msra.mxu0 %v2987_v35  ;;  %v3029_v18 = vld [vmem:[#allocation3 + $0x2c0] sm:$0xff]  ;;  %v3031_v35 = vld [vmem:[#allocation3 + $0x2d0] sm:$0xff] }
 0x4e4   :  { %3205 = vmatprep.subr.bf16.mxu1 %v2990_v36  ;;  %3369 = vmatprep.subr.bf16.mxu0 %v2992_v51  ;;  %v3034_v36 = vld [vmem:[#allocation3 + $0x2e8] sm:$0xff]  ;;  %v3036_v51 = vld [vmem:[#allocation3 + $0x2f8] sm:$0xff] }
 0x4e7   :  { %3206 = vmatpush1.bf16.msra.mxu1 %v2989_v5  ;;  %3370 = vmatpush1.bf16.msra.mxu0 %v2991_v38  ;;  %v3033_v5 = vld [vmem:[#allocation3 + $0x2e0] sm:$0xff]  ;;  %v3035_v38 = vld [vmem:[#allocation3 + $0x2f0] sm:$0xff] }
 0x4e8   :  { %3207 = vmatprep.subr.bf16.mxu1 %v2994_v39  ;;  %3371 = vmatprep.subr.bf16.mxu0 %v2996_v56  ;;  %v3038_v39 = vld [vmem:[#allocation3 + $0x308] sm:$0xff]  ;;  %v3040_v56 = vld [vmem:[#allocation3 + $0x318] sm:$0xff] }
 0x4eb   :  { %3208 = vmatpush1.bf16.msra.mxu1 %v2993_v10  ;;  %3372 = vmatpush1.bf16.msra.mxu0 %v2995_v40  ;;  %v3037_v10 = vld [vmem:[#allocation3 + $0x300] sm:$0xff]  ;;  %v3039_v40 = vld [vmem:[#allocation3 + $0x310] sm:$0xff] }
 0x4ec   :  { %3209 = vmatprep.subr.bf16.mxu1 %v2998_v41  ;;  %3373 = vmatprep.subr.bf16.mxu0 %v3000_v44  ;;  %v3042_v41 = vld [vmem:[#allocation3 + $0x328] sm:$0xff]  ;;  %v3044_v44 = vld [vmem:[#allocation3 + $0x338] sm:$0xff] }
 0x4ef   :  { %3210 = vmatpush1.bf16.msra.mxu1 %v2997_v45  ;;  %3374 = vmatpush1.bf16.msra.mxu0 %v2999_v46  ;;  %v3041_v45 = vld [vmem:[#allocation3 + $0x320] sm:$0xff]  ;;  %v3043_v46 = vld [vmem:[#allocation3 + $0x330] sm:$0xff] }
 0x4f0   :  { %3211 = vmatprep.subr.bf16.mxu1 %v3002_v47  ;;  %3375 = vmatprep.subr.bf16.mxu0 %v3004_v48  ;;  %v3046_v47 = vld [vmem:[#allocation3 + $0x348] sm:$0xff]  ;;  %v3048_v48 = vld [vmem:[#allocation3 + $0x358] sm:$0xff] }
 0x4f3   :  { %3212 = vmatpush1.bf16.msra.mxu1 %v3001_v6  ;;  %3376 = vmatpush1.bf16.msra.mxu0 %v3003_v50  ;;  %v3045_v6 = vld [vmem:[#allocation3 + $0x340] sm:$0xff]  ;;  %v3047_v50 = vld [vmem:[#allocation3 + $0x350] sm:$0xff] }
 0x4f4   :  { %3222 = vmatprep.subr.bf16.mxu1 %v3006_v53  ;;  %3386 = vmatprep.subr.bf16.mxu0 %v3008_v55  ;;  %v3050_v53 = vld [vmem:[#allocation3 + $0x368] sm:$0xff]  ;;  %v3052_v55 = vld [vmem:[#allocation3 + $0x378] sm:$0xff] }
 0x4f6   :  { %3214 = vmatmul.mubr.bf16.vlgmr.msra.gmra.mrb[32].mxu1 %v2934_v59  ;;  %3378 = vmatmul.mubr.bf16.vlgmr.msra.gmra.mrb[28].mxu0 %v2934_v59  ;;  %v3049_v59 = vld [vmem:[#allocation3 + $0x360] sm:$0xff] }
 0x4f7   :  { %3223 = vmatpush1.bf16.msra.mxu1 %v3005_v63  ;;  %3387 = vmatpush1.bf16.msra.mxu0 %v3007_v7  ;;  %v3051_v63 = vld [vmem:[#allocation3 + $0x370] sm:$0xff]  ;;  %v3054_v7 = vld [vmem:[#allocation3 + $0x388] sm:$0xff] }
 0x4f8   :  { %3224 = vmatprep.subr.bf16.mxu1 %v3010_v8  ;;  %3388 = vmatprep.subr.bf16.mxu0 %v3012_v9  ;;  %v3056_v8 = vld [vmem:[#allocation3 + $0x398] sm:$0xff]  ;;  %v3053_v9 = vld [vmem:[#allocation3 + $0x380] sm:$0xff] }
 0x4f9   :  { %3254 = vmatprep.mubr.bf16.mxu1 %v2937_v11  ;;  %3418 = vmatprep.mubr.bf16.mxu0 %v2937_v11  ;;  %v3055_v11 = vld [vmem:[#allocation3 + $0x390] sm:$0xff] }
 0x4fb   :  { %3225 = vmatpush1.bf16.msra.mxu1 %v3009_v42  ;;  %3389 = vmatpush1.bf16.msra.mxu0 %v3011_v49  ;;  %v3058_v42 = vld [vmem:[#allocation3 + $0x3a8] sm:$0xff]  ;;  %v3060_v49 = vld [vmem:[#allocation3 + $0x3b8] sm:$0xff] }
 0x4fc   :  { %3226 = vmatprep.subr.bf16.mxu1 %v3014_v12  ;;  %3390 = vmatprep.subr.bf16.mxu0 %v3016_v13  ;;  %v3057_v12 = vld [vmem:[#allocation3 + $0x3a0] sm:$0xff]  ;;  %v3059_v13 = vld [vmem:[#allocation3 + $0x3b0] sm:$0xff] }
 0x4ff   :  { %3227 = vmatpush1.bf16.msra.mxu1 %v3013_v14  ;;  %3391 = vmatpush1.bf16.msra.mxu0 %v3015_v26  ;;  %v3062_v14 = vld [vmem:[#allocation3 + $0x3c8] sm:$0xff]  ;;  %v3064_v26 = vld [vmem:[#allocation3 + $0x3d8] sm:$0xff] }
 0x500   :  { %3228 = vmatprep.subr.bf16.mxu1 %v3018_v15  ;;  %3392 = vmatprep.subr.bf16.mxu0 %v3020_v54  ;;  %v3061_v15 = vld [vmem:[#allocation3 + $0x3c0] sm:$0xff]  ;;  %v3063_v54 = vld [vmem:[#allocation3 + $0x3d0] sm:$0xff] }
 0x503   :  { %3229 = vmatpush1.bf16.msra.mxu1 %v3017_v33  ;;  %3393 = vmatpush1.bf16.msra.mxu0 %v3019_v37  ;;  %v3066_v33 = vld [vmem:[#allocation3 + $0x3e8] sm:$0xff]  ;;  %v3068_v37 = vld [vmem:[#allocation3 + $0x3f8] sm:$0xff] }
 0x504   :  { %3230 = vmatprep.subr.bf16.mxu1 %v3022_v19  ;;  %3394 = vmatprep.subr.bf16.mxu0 %v3024_v20  ;;  %v3065_v19 = vld [vmem:[#allocation3 + $0x3e0] sm:$0xff]  ;;  %v3067_v20 = vld [vmem:[#allocation3 + $0x3f0] sm:$0xff] }
 0x507   :  { %3231 = vmatpush1.bf16.msra.mxu1 %v3021_v22  ;;  %3395 = vmatpush1.bf16.msra.mxu0 %v3023_v24  ;;  %v3070_v22 = vld [vmem:[#allocation3 + $0x408] sm:$0xff]  ;;  %v3072_v24 = vld [vmem:[#allocation3 + $0x418] sm:$0xff] }
 0x508   :  { %3232 = vmatprep.subr.bf16.mxu1 %v3026_v27  ;;  %3396 = vmatprep.subr.bf16.mxu0 %v3028_v29  ;;  %v2936_v27 = vpack.c.bf16 %v2925_v52, %v2925_v52  ;;  %v3069_v29 = vld [vmem:[#allocation3 + $0x400] sm:$0xff]  ;;  %v3075_v52 = vld [vmem:[#allocation3 + $0x430] sm:$0xff] }
 0x50b   :  { %3233 = vmatpush1.bf16.msra.mxu1 %v3025_v30  ;;  %3397 = vmatpush1.bf16.msra.mxu0 %v3027_v31  ;;  %v3071_v30 = vld [vmem:[#allocation3 + $0x410] sm:$0xff]  ;;  %v3074_v31 = vld [vmem:[#allocation3 + $0x428] sm:$0xff] }
 0x50c   :  { %3234 = vmatprep.subr.bf16.mxu1 %v3030_v32  ;;  %3398 = vmatprep.subr.bf16.mxu0 %v3032_v34  ;;  %v3076_v32 = vld [vmem:[#allocation3 + $0x438] sm:$0xff]  ;;  %v2939_v34 = vpack.c.bf16 %v2928_v28, %v2928_v28 }
 0x50d   :  { %v3084_v28 = vld [vmem:[#allocation3 + $0x478] sm:$0xff] }
 0x50f   :  { %3235 = vmatpush1.bf16.msra.mxu1 %v3029_v18  ;;  %3399 = vmatpush1.bf16.msra.mxu0 %v3031_v35  ;;  %v3078_v18 = vld [vmem:[#allocation3 + $0x448] sm:$0xff]  ;;  %v3080_v35 = vld [vmem:[#allocation3 + $0x458] sm:$0xff] }
 0x510   :  { %3236 = vmatprep.subr.bf16.mxu1 %v3034_v36  ;;  %3400 = vmatprep.subr.bf16.mxu0 %v3036_v51  ;;  %v3077_v36 = vld [vmem:[#allocation3 + $0x440] sm:$0xff]  ;;  %v3082_v51 = vld [vmem:[#allocation3 + $0x468] sm:$0xff] }
 0x513   :  { %3237 = vmatpush1.bf16.msra.mxu1 %v3033_v5  ;;  %3401 = vmatpush1.bf16.msra.mxu0 %v3035_v38  ;;  %v3081_v5 = vld [vmem:[#allocation3 + $0x460] sm:$0xff]  ;;  %v3083_v38 = vld [vmem:[#allocation3 + $0x470] sm:$0xff] }
 0x514   :  { %3238 = vmatprep.subr.bf16.mxu1 %v3038_v39  ;;  %3402 = vmatprep.subr.bf16.mxu0 %v3040_v56  ;;  %v3086_v39 = vld [vmem:[#allocation3 + $0x488] sm:$0xff]  ;;  %v3088_v56 = vld [vmem:[#allocation3 + $0x498] sm:$0xff] }
 0x517   :  { %3239 = vmatpush1.bf16.msra.mxu1 %v3037_v10  ;;  %3403 = vmatpush1.bf16.msra.mxu0 %v3039_v40  ;;  %v3085_v10 = vld [vmem:[#allocation3 + $0x480] sm:$0xff]  ;;  %v3087_v40 = vld [vmem:[#allocation3 + $0x490] sm:$0xff] }
 0x518   :  { %3240 = vmatprep.subr.bf16.mxu1 %v3042_v41  ;;  %3404 = vmatprep.subr.bf16.mxu0 %v3044_v44  ;;  %v3090_v41 = vld [vmem:[#allocation3 + $0x4a8] sm:$0xff]  ;;  %v3092_v44 = vld [vmem:[#allocation3 + $0x4b8] sm:$0xff] }
 0x51b   :  { %3241 = vmatpush1.bf16.msra.mxu1 %v3041_v45  ;;  %3405 = vmatpush1.bf16.msra.mxu0 %v3043_v46  ;;  %v3089_v45 = vld [vmem:[#allocation3 + $0x4a0] sm:$0xff]  ;;  %v3091_v46 = vld [vmem:[#allocation3 + $0x4b0] sm:$0xff] }
 0x51c   :  { %3242 = vmatprep.subr.bf16.mxu1 %v3046_v47  ;;  %3406 = vmatprep.subr.bf16.mxu0 %v3048_v48  ;;  %v3094_v47 = vld [vmem:[#allocation3 + $0x4c8] sm:$0xff]  ;;  %v3096_v48 = vld [vmem:[#allocation3 + $0x4d8] sm:$0xff] }
 0x51f   :  { %3243 = vmatpush1.bf16.msra.mxu1 %v3045_v6  ;;  %3407 = vmatpush1.bf16.msra.mxu0 %v3047_v50  ;;  %v3093_v6 = vld [vmem:[#allocation3 + $0x4c0] sm:$0xff]  ;;  %v3095_v50 = vld [vmem:[#allocation3 + $0x4d0] sm:$0xff] }
 0x520   :  { %3244 = vmatprep.subr.bf16.mxu1 %v3050_v53  ;;  %3408 = vmatprep.subr.bf16.mxu0 %v3052_v55  ;;  %v3098_v53 = vld [vmem:[#allocation3 + $0x4e8] sm:$0xff]  ;;  %v3100_v55 = vld [vmem:[#allocation3 + $0x4f8] sm:$0xff] }
 0x523   :  { %3245 = vmatpush1.bf16.msra.mxu1 %v3049_v59  ;;  %3409 = vmatpush1.bf16.msra.mxu0 %v3051_v63  ;;  %v3097_v59 = vld [vmem:[#allocation3 + $0x4e0] sm:$0xff]  ;;  %v3099_v63 = vld [vmem:[#allocation3 + $0x4f0] sm:$0xff] }
 0x524   :  { %3246 = vmatprep.subr.bf16.mxu1 %v3054_v7  ;;  %3410 = vmatprep.subr.bf16.mxu0 %v3056_v8  ;;  %v3102_v7 = vld [vmem:[#allocation3 + $0x508] sm:$0xff]  ;;  %v3104_v8 = vld [vmem:[#allocation3 + $0x518] sm:$0xff] }
 0x527   :  { %3247 = vmatpush1.bf16.msra.mxu1 %v3053_v9  ;;  %3411 = vmatpush1.bf16.msra.mxu0 %v3055_v11  ;;  %v3101_v9 = vld [vmem:[#allocation3 + $0x500] sm:$0xff]  ;;  %v3103_v11 = vld [vmem:[#allocation3 + $0x510] sm:$0xff] }
 0x528   :  { %3248 = vmatprep.subr.bf16.mxu1 %v3058_v42  ;;  %3412 = vmatprep.subr.bf16.mxu0 %v3060_v49  ;;  %v3106_v42 = vld [vmem:[#allocation3 + $0x528] sm:$0xff]  ;;  %v3108_v49 = vld [vmem:[#allocation3 + $0x538] sm:$0xff] }
 0x52b   :  { %3249 = vmatpush1.bf16.msra.mxu1 %v3057_v12  ;;  %3413 = vmatpush1.bf16.msra.mxu0 %v3059_v13  ;;  %v3105_v12 = vld [vmem:[#allocation3 + $0x520] sm:$0xff]  ;;  %v3107_v13 = vld [vmem:[#allocation3 + $0x530] sm:$0xff] }
 0x52c   :  { %3250 = vmatprep.subr.bf16.mxu1 %v3062_v14  ;;  %3414 = vmatprep.subr.bf16.mxu0 %v3064_v26  ;;  %v3110_v14 = vld [vmem:[#allocation3 + $0x548] sm:$0xff]  ;;  %v3112_v26 = vld [vmem:[#allocation3 + $0x558] sm:$0xff] }
 0x52f   :  { %3251 = vmatpush1.bf16.msra.mxu1 %v3061_v15  ;;  %3415 = vmatpush1.bf16.msra.mxu0 %v3063_v54  ;;  %v3109_v15 = vld [vmem:[#allocation3 + $0x540] sm:$0xff]  ;;  %v3111_v54 = vld [vmem:[#allocation3 + $0x550] sm:$0xff] }
 0x530   :  { %3252 = vmatprep.subr.bf16.mxu1 %v3066_v33  ;;  %3416 = vmatprep.subr.bf16.mxu0 %v3068_v37  ;;  %v3114_v33 = vld [vmem:[#allocation3 + $0x568] sm:$0xff]  ;;  %v3116_v37 = vld [vmem:[#allocation3 + $0x578] sm:$0xff] }
 0x533   :  { %3253 = vmatpush1.bf16.msra.mxu1 %v3065_v19  ;;  %3417 = vmatpush1.bf16.msra.mxu0 %v3067_v20  ;;  %v3113_v19 = vld [vmem:[#allocation3 + $0x560] sm:$0xff]  ;;  %v3115_v20 = vld [vmem:[#allocation3 + $0x570] sm:$0xff] }
 0x534   :  { %3263 = vmatprep.subr.bf16.mxu1 %v3070_v22  ;;  %3427 = vmatprep.subr.bf16.mxu0 %v3072_v24  ;;  %v3118_v22 = vld [vmem:[#allocation3 + $0x588] sm:$0xff]  ;;  %v3120_v24 = vld [vmem:[#allocation3 + $0x598] sm:$0xff] }
 0x536   :  { %3255 = vmatmul.mubr.bf16.vlgmr.msra.gmra.mrb[32].mxu1 %v2936_v27  ;;  %3419 = vmatmul.mubr.bf16.vlgmr.msra.gmra.mrb[28].mxu0 %v2936_v27  ;;  %v3117_v27 = vld [vmem:[#allocation3 + $0x580] sm:$0xff] }
 0x537   :  { %3264 = vmatpush1.bf16.msra.mxu1 %v3069_v29  ;;  %3428 = vmatpush1.bf16.msra.mxu0 %v3071_v30  ;;  %v3119_v29 = vld [vmem:[#allocation3 + $0x590] sm:$0xff]  ;;  %v3122_v30 = vld [vmem:[#allocation3 + $0x5a8] sm:$0xff] }
 0x538   :  { %3265 = vmatprep.subr.bf16.mxu1 %v3074_v31  ;;  %3429 = vmatprep.subr.bf16.mxu0 %v3076_v32  ;;  %v3124_v31 = vld [vmem:[#allocation3 + $0x5b8] sm:$0xff]  ;;  %v3121_v32 = vld [vmem:[#allocation3 + $0x5a0] sm:$0xff] }
 0x539   :  { %3295 = vmatprep.mubr.bf16.mxu1 %v2939_v34  ;;  %3459 = vmatprep.mubr.bf16.mxu0 %v2939_v34  ;;  %v3123_v34 = vld [vmem:[#allocation3 + $0x5b0] sm:$0xff] }
 0x53b   :  { %3266 = vmatpush1.bf16.msra.mxu1 %v3073_v43  ;;  %3430 = vmatpush1.bf16.msra.mxu0 %v3075_v52  ;;  %v3126_v43 = vld [vmem:[#allocation3 + $0x5c8] sm:$0xff]  ;;  %v3128_v52 = vld [vmem:[#allocation3 + $0x5d8] sm:$0xff] }
 0x53c   :  { %3267 = vmatprep.subr.bf16.mxu1 %v3078_v18  ;;  %3431 = vmatprep.subr.bf16.mxu0 %v3080_v35  ;;  %v3125_v18 = vld [vmem:[#allocation3 + $0x5c0] sm:$0xff]  ;;  %v3127_v35 = vld [vmem:[#allocation3 + $0x5d0] sm:$0xff] }
 0x53f   :  { %3268 = vmatpush1.bf16.msra.mxu1 %v3077_v36  ;;  %3432 = vmatpush1.bf16.msra.mxu0 %v3079_v23  ;;  %v3130_v36 = vld [vmem:[#allocation3 + $0x5e8] sm:$0xff]  ;;  %v3132_v23 = vld [vmem:[#allocation3 + $0x5f8] sm:$0xff] }
 0x540   :  { %3269 = vmatprep.subr.bf16.mxu1 %v3082_v51  ;;  %3433 = vmatprep.subr.bf16.mxu0 %v3084_v28  ;;  %v3129_v51 = vld [vmem:[#allocation3 + $0x5e0] sm:$0xff]  ;;  %v3131_v28 = vld [vmem:[#allocation3 + $0x5f0] sm:$0xff] }
 0x543   :  { %3270 = vmatpush1.bf16.msra.mxu1 %v3081_v5  ;;  %3434 = vmatpush1.bf16.msra.mxu0 %v3083_v38  ;;  %v3134_v5 = vld [vmem:[#allocation3 + $0x608] sm:$0xff]  ;;  %v3136_v38 = vld [vmem:[#allocation3 + $0x618] sm:$0xff] }
 0x544   :  { %3271 = vmatprep.subr.bf16.mxu1 %v3086_v39  ;;  %3435 = vmatprep.subr.bf16.mxu0 %v3088_v56  ;;  %v2938_v39 = vpack.c.bf16 %v2927_v25, %v2927_v25  ;;  %v3133_v56 = vld [vmem:[#allocation3 + $0x600] sm:$0xff] }
 0x545   :  { %v3141_v25 = vld [vmem:[#allocation3 + $0x640] sm:$0xff] }
 0x547   :  { %3272 = vmatpush1.bf16.msra.mxu1 %v3085_v10  ;;  %3436 = vmatpush1.bf16.msra.mxu0 %v3087_v40  ;;  %v3135_v10 = vld [vmem:[#allocation3 + $0x610] sm:$0xff]  ;;  %v3138_v40 = vld [vmem:[#allocation3 + $0x628] sm:$0xff] }
 0x548   :  { %3273 = vmatprep.subr.bf16.mxu1 %v3090_v41  ;;  %3437 = vmatprep.subr.bf16.mxu0 %v3092_v44  ;;  %v3140_v41 = vld [vmem:[#allocation3 + $0x638] sm:$0xff]  ;;  %v3137_v44 = vld [vmem:[#allocation3 + $0x620] sm:$0xff] }
 0x54b   :  { %3274 = vmatpush1.bf16.msra.mxu1 %v3089_v45  ;;  %3438 = vmatpush1.bf16.msra.mxu0 %v3091_v46  ;;  %v3139_v45 = vld [vmem:[#allocation3 + $0x630] sm:$0xff]  ;;  %v3142_v46 = vld [vmem:[#allocation3 + $0x648] sm:$0xff] }
 0x54c   :  { %3275 = vmatprep.subr.bf16.mxu1 %v3094_v47  ;;  %3439 = vmatprep.subr.bf16.mxu0 %v3096_v48  ;;  %v3143_v47 = vld [vmem:[#allocation3 + $0x650] sm:$0xff]  ;;  %v3146_v48 = vld [vmem:[#allocation3 + $0x668] sm:$0xff] }
 0x54f   :  { %3276 = vmatpush1.bf16.msra.mxu1 %v3093_v6  ;;  %3440 = vmatpush1.bf16.msra.mxu0 %v3095_v50  ;;  %v3148_v6 = vld [vmem:[#allocation3 + $0x678] sm:$0xff]  ;;  %v3145_v50 = vld [vmem:[#allocation3 + $0x660] sm:$0xff] }
 0x550   :  { %3277 = vmatprep.subr.bf16.mxu1 %v3098_v53  ;;  %3441 = vmatprep.subr.bf16.mxu0 %v3100_v55  ;;  %v3147_v53 = vld [vmem:[#allocation3 + $0x670] sm:$0xff]  ;;  %v3150_v55 = vld [vmem:[#allocation3 + $0x688] sm:$0xff] }
 0x553   :  { %3278 = vmatpush1.bf16.msra.mxu1 %v3097_v59  ;;  %3442 = vmatpush1.bf16.msra.mxu0 %v3099_v63  ;;  %v3152_v59 = vld [vmem:[#allocation3 + $0x698] sm:$0xff]  ;;  %v3149_v63 = vld [vmem:[#allocation3 + $0x680] sm:$0xff] }
 0x554   :  { %3279 = vmatprep.subr.bf16.mxu1 %v3102_v7  ;;  %3443 = vmatprep.subr.bf16.mxu0 %v3104_v8  ;;  %v3151_v7 = vld [vmem:[#allocation3 + $0x690] sm:$0xff]  ;;  %v3154_v8 = vld [vmem:[#allocation3 + $0x6a8] sm:$0xff] }
 0x557   :  { %3280 = vmatpush1.bf16.msra.mxu1 %v3101_v9  ;;  %3444 = vmatpush1.bf16.msra.mxu0 %v3103_v11  ;;  %v3156_v9 = vld [vmem:[#allocation3 + $0x6b8] sm:$0xff]  ;;  %v3153_v11 = vld [vmem:[#allocation3 + $0x6a0] sm:$0xff] }
 0x558   :  { %3281 = vmatprep.subr.bf16.mxu1 %v3106_v42  ;;  %3445 = vmatprep.subr.bf16.mxu0 %v3108_v49  ;;  %v3155_v42 = vld [vmem:[#allocation3 + $0x6b0] sm:$0xff]  ;;  %v3158_v49 = vld [vmem:[#allocation3 + $0x6c8] sm:$0xff] }
 0x55b   :  { %3282 = vmatpush1.bf16.msra.mxu1 %v3105_v12  ;;  %3446 = vmatpush1.bf16.msra.mxu0 %v3107_v13  ;;  %v3160_v12 = vld [vmem:[#allocation3 + $0x6d8] sm:$0xff]  ;;  %v3157_v13 = vld [vmem:[#allocation3 + $0x6c0] sm:$0xff] }
 0x55c   :  { %3283 = vmatprep.subr.bf16.mxu1 %v3110_v14  ;;  %3447 = vmatprep.subr.bf16.mxu0 %v3112_v26  ;;  %v3159_v14 = vld [vmem:[#allocation3 + $0x6d0] sm:$0xff]  ;;  %v3162_v26 = vld [vmem:[#allocation3 + $0x6e8] sm:$0xff] }
 0x55f   :  { %3284 = vmatpush1.bf16.msra.mxu1 %v3109_v15  ;;  %3448 = vmatpush1.bf16.msra.mxu0 %v3111_v54  ;;  %v3164_v15 = vld [vmem:[#allocation3 + $0x6f8] sm:$0xff]  ;;  %v3161_v54 = vld [vmem:[#allocation3 + $0x6e0] sm:$0xff] }
 0x560   :  { %3285 = vmatprep.subr.bf16.mxu1 %v3114_v33  ;;  %3449 = vmatprep.subr.bf16.mxu0 %v3116_v37  ;;  %v3163_v33 = vld [vmem:[#allocation3 + $0x6f0] sm:$0xff]  ;;  %v2940_v37 = vpack.c.bf16 %v2929_v17, %v2929_v17 }
 0x563   :  { %3286 = vmatpush1.bf16.msra.mxu1 %v3113_v19  ;;  %3450 = vmatpush1.bf16.msra.mxu0 %v3115_v20  ;;  %v3167_v19 = vsub.s32 3, %v6246_v58 }
 0x564   :  { %3287 = vmatprep.subr.bf16.mxu1 %v3118_v22  ;;  %3451 = vmatprep.subr.bf16.mxu0 %v3120_v24 }
 0x565   :  { %v3168_v20 = vrot.slane %v6252_v60, %v3167_v19  ;;  %v3176_v22 = vrot.slane %v6257_v61, %v3167_v19  ;;  %v3172_v24 = vrot.slane %v6262_v62, %v3167_v19 }
 0x567   :  { %3288 = vmatpush1.bf16.msra.mxu1 %v3117_v27  ;;  %3452 = vmatpush1.bf16.msra.mxu0 %v3119_v29  ;;  %v3180_v27 = vrot.slane %v6267_v4, %v3167_v19 }
 0x568   :  { %3289 = vmatprep.subr.bf16.mxu1 %v3122_v30  ;;  %3453 = vmatprep.subr.bf16.mxu0 %v3124_v31 }
 0x56b   :  { %3290 = vmatpush1.bf16.msra.mxu1 %v3121_v32  ;;  %3454 = vmatpush1.bf16.msra.mxu0 %v3123_v34 }
 0x56c   :  { %3291 = vmatprep.subr.bf16.mxu1 %v3126_v43  ;;  %3455 = vmatprep.subr.bf16.mxu0 %v3128_v52 }
 0x56f   :  { %3292 = vmatpush1.bf16.msra.mxu1 %v3125_v18  ;;  %3456 = vmatpush1.bf16.msra.mxu0 %v3127_v35 }
 0x570   :  { %3293 = vmatprep.subr.bf16.mxu1 %v3130_v36  ;;  %3457 = vmatprep.subr.bf16.mxu0 %v3132_v23 }
 0x573   :  { %3294 = vmatpush1.bf16.msra.mxu1 %v3129_v51  ;;  %3458 = vmatpush1.bf16.msra.mxu0 %v3131_v28 }
 0x574   :  { %3304 = vmatprep.subr.bf16.mxu1 %v3134_v5  ;;  %3468 = vmatprep.subr.bf16.mxu0 %v3136_v38 }
 0x576   :  { %3296 = vmatmul.mubr.bf16.vlgmr.msra.gmra.mrb[32].mxu1 %v2938_v39  ;;  %3460 = vmatmul.mubr.bf16.vlgmr.msra.gmra.mrb[28].mxu0 %v2938_v39 }
 0x577   :  { %3305 = vmatpush1.bf16.msra.mxu1 %v3133_v56  ;;  %3469 = vmatpush1.bf16.msra.mxu0 %v3135_v10 }
 0x578   :  { %3306 = vmatprep.subr.bf16.mxu1 %v3138_v40  ;;  %3470 = vmatprep.subr.bf16.mxu0 %v3140_v41 }
 0x579   :  { %3336 = vmatprep.mubr.bf16.mxu1 %v6032_v0  ;;  %3500 = vmatprep.mubr.bf16.mxu0 %v6032_v0 }
 0x57b   :  { %3307 = vmatpush1.bf16.msra.mxu1 %v3137_v44  ;;  %3471 = vmatpush1.bf16.msra.mxu0 %v3139_v45 }
 0x57c   :  { %3308 = vmatprep.subr.bf16.mxu1 %v3142_v46  ;;  %3472 = vmatprep.subr.bf16.mxu0 %v3144_v21 }
 0x57f   :  { %3309 = vmatpush1.bf16.msra.mxu1 %v3141_v25  ;;  %3473 = vmatpush1.bf16.msra.mxu0 %v3143_v47 }
 0x580   :  { %3310 = vmatprep.subr.bf16.mxu1 %v3146_v48  ;;  %3474 = vmatprep.subr.bf16.mxu0 %v3148_v6 }
 0x583   :  { %3311 = vmatpush1.bf16.msra.mxu1 %v3145_v50  ;;  %3475 = vmatpush1.bf16.msra.mxu0 %v3147_v53 }
 0x584   :  { %3312 = vmatprep.subr.bf16.mxu1 %v3150_v55  ;;  %3476 = vmatprep.subr.bf16.mxu0 %v3152_v59 }
 0x587   :  { %3313 = vmatpush1.bf16.msra.mxu1 %v3149_v63  ;;  %3477 = vmatpush1.bf16.msra.mxu0 %v3151_v7 }
 0x588   :  { %3314 = vmatprep.subr.bf16.mxu1 %v3154_v8  ;;  %3478 = vmatprep.subr.bf16.mxu0 %v3156_v9 }
 0x58b   :  { %3315 = vmatpush1.bf16.msra.mxu1 %v3153_v11  ;;  %3479 = vmatpush1.bf16.msra.mxu0 %v3155_v42 }
 0x58c   :  { %3316 = vmatprep.subr.bf16.mxu1 %v3158_v49  ;;  %3480 = vmatprep.subr.bf16.mxu0 %v3160_v12 }
 0x58f   :  { %3317 = vmatpush1.bf16.msra.mxu1 %v3157_v13  ;;  %3481 = vmatpush1.bf16.msra.mxu0 %v3159_v14 }
 0x590   :  { %3318 = vmatprep.subr.bf16.mxu1 %v3162_v26  ;;  %3482 = vmatprep.subr.bf16.mxu0 %v3164_v15 }
 0x593   :  { %3319 = vmatpush1.bf16.msra.mxu1 %v3161_v54  ;;  %3483 = vmatpush1.bf16.msra.mxu0 %v3163_v33 }
 0x596   :  { %3337 = vmatmul.mubr.bf16.vlgmr.msra.gmra.mrb[32].mxu1 %v2940_v37  ;;  %3501 = vmatmul.mubr.bf16.vlgmr.msra.gmra.mrb[28].mxu0 %v2940_v37 }
 0x669   :  { %v3338_v29 = vpop.f32.mrb[32].mxu1  ;;  %v3502_v30 = vpop.f32.mrb[28].mxu0 }
 0x66a   :  { %v6386_v31 = vadd.f32 %v3338_v29, %v3168_v20  ;;  %v6388_v16 = vadd.f32 %v3502_v30, %v3176_v22  ;;  %v3340_v17 = vpop.f32.mrb[33].mxu1  ;;  %v3504_v32 = vpop.f32.mrb[29].mxu0 }
 0x66b   :  { %v5616_v34 = vadd.f32 %v3340_v17, %v3172_v24  ;;  %v6390_v43 = vadd.f32 %v3504_v32, %v3180_v27  ;;  %v3342_v52 = vpop.f32.mrb[34].mxu1  ;;  %v3506_v18 = vpop.f32.mrb[30].mxu0 }
 0x66c   :  { %v3509_v35 = vmax.f32 %v6386_v31, 0.0  ;;  %v3511_v36 = vmax.f32 %v6388_v16, 0.0  ;;  %v3343_v23 = vpop.f32.mrb[35].mxu1  ;;  %v3507_v51 = vpop.f32.mrb[31].mxu0 }
 0x66d   :  { %v3510_v28 = vmax.f32 %v5616_v34, 0.0  ;;  %v3512_v5 = vmax.f32 %v6390_v43, 0.0 }
 0x66e   :  { %6017 = dma.done.wait [#allocation8 + $0x2], 28672 }
 0x66f   :  { %6018 = vsyncadd [#allocation8 + $0x2], 4294938624  ;;  %v6395_v38 = vpack.c.bf16 %v3510_v28, %v3510_v28  ;;  %v3520_v39 = vld [vmem:[#allocation4 + $0x8] sm:$0xff]  ;;  %v3522_v56 = vld [vmem:[#allocation4 + $0x18] sm:$0xff] }
 0x670   :  { %v3519_v10 = vld [vmem:[#allocation4] sm:$0xff]  ;;  %3771 = vmatprep.subr.bf16.mxu1 %v3520_v39  ;;  %3853 = vmatprep.subr.bf16.mxu0 %v3522_v56  ;;  %v3521_v40 = vld [vmem:[#allocation4 + $0x10] sm:$0xff]  ;;  %v3526_v45 = vld [vmem:[#allocation4 + $0x38] sm:$0xff] }
 0x671   :  { %3803 = vmatprep.mubr.bf16.mxu1 %v6395_v38  ;;  %3885 = vmatprep.mubr.bf16.mxu0 %v6395_v38  ;;  %v3527_v41 = vld [vmem:[#allocation4 + $0x40] sm:$0xff]  ;;  %v3529_v44 = vld [vmem:[#allocation4 + $0x50] sm:$0xff]  ;;  %v3528_v46 = vld [vmem:[#allocation4 + $0x48] sm:$0xff] }
 0x672   :  { %3772 = vmatpush1.bf16.msra.mxu1 %v3519_v10  ;;  %3854 = vmatpush1.bf16.msra.mxu0 %v3521_v40  ;;  %v3534_v21 = vld [vmem:[#allocation4 + $0x78] sm:$0xff]  ;;  %v3536_v25 = vld [vmem:[#allocation4 + $0x88] sm:$0xff]  ;;  %v3533_v47 = vld [vmem:[#allocation4 + $0x70] sm:$0xff] }
 0x673   :  { %3773 = vmatprep.subr.bf16.mxu1 %v3527_v41  ;;  %3855 = vmatprep.subr.bf16.mxu0 %v3529_v44  ;;  %v3535_v48 = vld [vmem:[#allocation4 + $0x80] sm:$0xff]  ;;  %v3541_v6 = vld [vmem:[#allocation4 + $0xb0] sm:$0xff]  ;;  %v3540_v53 = vld [vmem:[#allocation4 + $0xa8] sm:$0xff] }
 0x674   :  { %v3543_v50 = vld [vmem:[#allocation4 + $0xc0] sm:$0xff]  ;;  %v3542_v55 = vld [vmem:[#allocation4 + $0xb8] sm:$0xff]  ;;  %v3548_v59 = vld [vmem:[#allocation4 + $0xe8] sm:$0xff] }
 0x675   :  { %v3550_v63 = vld [vmem:[#allocation4 + $0xf8] sm:$0xff]  ;;  %v3547_v7 = vld [vmem:[#allocation4 + $0xe0] sm:$0xff]  ;;  %v3549_v8 = vld [vmem:[#allocation4 + $0xf0] sm:$0xff] }
 0x676   :  { %3774 = vmatpush1.bf16.msra.mxu1 %v3526_v45  ;;  %3856 = vmatpush1.bf16.msra.mxu0 %v3528_v46  ;;  %v3555_v9 = vld [vmem:[#allocation4 + $0x120] sm:$0xff]  ;;  %v3557_v11 = vld [vmem:[#allocation4 + $0x130] sm:$0xff]  ;;  %v3554_v42 = vld [vmem:[#allocation4 + $0x118] sm:$0xff] }
 0x677   :  { %3775 = vmatprep.subr.bf16.mxu1 %v3534_v21  ;;  %3857 = vmatprep.subr.bf16.mxu0 %v3536_v25  ;;  %v3556_v49 = vld [vmem:[#allocation4 + $0x128] sm:$0xff]  ;;  %v3562_v12 = vld [vmem:[#allocation4 + $0x158] sm:$0xff]  ;;  %v3561_v14 = vld [vmem:[#allocation4 + $0x150] sm:$0xff] }
 0x678   :  { %v3564_v13 = vld [vmem:[#allocation4 + $0x168] sm:$0xff]  ;;  %v3563_v26 = vld [vmem:[#allocation4 + $0x160] sm:$0xff]  ;;  %v3569_v15 = vld [vmem:[#allocation4 + $0x190] sm:$0xff] }
 0x679   :  { %v3571_v54 = vld [vmem:[#allocation4 + $0x1a0] sm:$0xff]  ;;  %v3568_v33 = vld [vmem:[#allocation4 + $0x188] sm:$0xff]  ;;  %v3570_v37 = vld [vmem:[#allocation4 + $0x198] sm:$0xff] }
 0x67a   :  { %3776 = vmatpush1.bf16.msra.mxu1 %v3533_v47  ;;  %3858 = vmatpush1.bf16.msra.mxu0 %v3535_v48  ;;  %v3576_v19 = vld [vmem:[#allocation4 + $0x1c8] sm:$0xff]  ;;  %v3578_v20 = vld [vmem:[#allocation4 + $0x1d8] sm:$0xff]  ;;  %v3575_v22 = vld [vmem:[#allocation4 + $0x1c0] sm:$0xff] }
 0x67b   :  { %3777 = vmatprep.subr.bf16.mxu1 %v3541_v6  ;;  %3859 = vmatprep.subr.bf16.mxu0 %v3543_v50  ;;  %v3577_v24 = vld [vmem:[#allocation4 + $0x1d0] sm:$0xff]  ;;  %v3583_v27 = vld [vmem:[#allocation4 + $0x200] sm:$0xff]  ;;  %v3582_v30 = vld [vmem:[#allocation4 + $0x1f8] sm:$0xff] }
 0x67c   :  { %v3585_v29 = vld [vmem:[#allocation4 + $0x210] sm:$0xff]  ;;  %v3584_v17 = vld [vmem:[#allocation4 + $0x208] sm:$0xff]  ;;  %v3590_v32 = vld [vmem:[#allocation4 + $0x238] sm:$0xff] }
 0x67d   :  { %v3592_v34 = vld [vmem:[#allocation4 + $0x248] sm:$0xff]  ;;  %v3589_v52 = vld [vmem:[#allocation4 + $0x230] sm:$0xff]  ;;  %v3591_v18 = vld [vmem:[#allocation4 + $0x240] sm:$0xff] }
 0x67e   :  { %3778 = vmatpush1.bf16.msra.mxu1 %v3540_v53  ;;  %3860 = vmatpush1.bf16.msra.mxu0 %v3542_v55  ;;  %v3597_v23 = vld [vmem:[#allocation4 + $0x270] sm:$0xff]  ;;  %v3599_v51 = vld [vmem:[#allocation4 + $0x280] sm:$0xff]  ;;  %v3596_v28 = vld [vmem:[#allocation4 + $0x268] sm:$0xff] }
 0x67f   :  { %3779 = vmatprep.subr.bf16.mxu1 %v3548_v59  ;;  %3861 = vmatprep.subr.bf16.mxu0 %v3550_v63  ;;  %v3598_v39 = vld [vmem:[#allocation4 + $0x278] sm:$0xff]  ;;  %v3604_v56 = vld [vmem:[#allocation4 + $0x2a8] sm:$0xff]  ;;  %v3603_v40 = vld [vmem:[#allocation4 + $0x2a0] sm:$0xff] }
 0x680   :  { %v3606_v10 = vld [vmem:[#allocation4 + $0x2b8] sm:$0xff]  ;;  %v3605_v41 = vld [vmem:[#allocation4 + $0x2b0] sm:$0xff]  ;;  %v3611_v44 = vld [vmem:[#allocation4 + $0x2e0] sm:$0xff] }
 0x681   :  { %v3613_v45 = vld [vmem:[#allocation4 + $0x2f0] sm:$0xff]  ;;  %v3610_v46 = vld [vmem:[#allocation4 + $0x2d8] sm:$0xff]  ;;  %v3612_v21 = vld [vmem:[#allocation4 + $0x2e8] sm:$0xff] }
 0x682   :  { %3780 = vmatpush1.bf16.msra.mxu1 %v3547_v7  ;;  %3862 = vmatpush1.bf16.msra.mxu0 %v3549_v8  ;;  %v3618_v25 = vld [vmem:[#allocation4 + $0x318] sm:$0xff]  ;;  %v3620_v47 = vld [vmem:[#allocation4 + $0x328] sm:$0xff]  ;;  %v3617_v48 = vld [vmem:[#allocation4 + $0x310] sm:$0xff]  ;;  %v6402_v8 = vpack.c.bf16 %v3509_v35, %v3509_v35 }
 0x683   :  { %3781 = vmatprep.subr.bf16.mxu1 %v3555_v9  ;;  %3863 = vmatprep.subr.bf16.mxu0 %v3557_v11  ;;  %v3619_v6 = vld [vmem:[#allocation4 + $0x320] sm:$0xff]  ;;  %v3625_v50 = vld [vmem:[#allocation4 + $0x350] sm:$0xff]  ;;  %v3624_v55 = vld [vmem:[#allocation4 + $0x348] sm:$0xff] }
 0x684   :  { %v3627_v53 = vld [vmem:[#allocation4 + $0x360] sm:$0xff]  ;;  %v3626_v59 = vld [vmem:[#allocation4 + $0x358] sm:$0xff]  ;;  %v3632_v63 = vld [vmem:[#allocation4 + $0x388] sm:$0xff] }
 0x685   :  { %v3634_v7 = vld [vmem:[#allocation4 + $0x398] sm:$0xff]  ;;  %v3631_v9 = vld [vmem:[#allocation4 + $0x380] sm:$0xff]  ;;  %v3633_v11 = vld [vmem:[#allocation4 + $0x390] sm:$0xff] }
 0x686   :  { %3782 = vmatpush1.bf16.msra.mxu1 %v3554_v42  ;;  %3864 = vmatpush1.bf16.msra.mxu0 %v3556_v49  ;;  %v3639_v42 = vld [vmem:[#allocation4 + $0x3c0] sm:$0xff]  ;;  %v3641_v49 = vld [vmem:[#allocation4 + $0x3d0] sm:$0xff]  ;;  %v3638_v31 = vld [vmem:[#allocation4 + $0x3b8] sm:$0xff] }
 0x687   :  { %3783 = vmatprep.subr.bf16.mxu1 %v3562_v12  ;;  %3865 = vmatprep.subr.bf16.mxu0 %v3564_v13  ;;  %v6407_v12 = vpack.c.bf16 %v3512_v5, %v3512_v5  ;;  %v3640_v35 = vld [vmem:[#allocation4 + $0x3c8] sm:$0xff]  ;;  %v3646_v13 = vld [vmem:[#allocation4 + $0x3f8] sm:$0xff]  ;;  %v3645_v43 = vld [vmem:[#allocation4 + $0x3f0] sm:$0xff] }
 0x688   :  { %v3647_v5 = vld [vmem:[#allocation4 + $0x400] sm:$0xff]  ;;  %v3532_v16 = vld [vmem:[#allocation4 + $0x68] sm:$0xff] }
 0x68a   :  { %3784 = vmatpush1.bf16.msra.mxu1 %v3561_v14  ;;  %3866 = vmatpush1.bf16.msra.mxu0 %v3563_v26  ;;  %v3648_v14 = vld [vmem:[#allocation4 + $0x408] sm:$0xff]  ;;  %v3653_v26 = vld [vmem:[#allocation4 + $0x430] sm:$0xff] }
 0x68b   :  { %3785 = vmatprep.subr.bf16.mxu1 %v3569_v15  ;;  %3867 = vmatprep.subr.bf16.mxu0 %v3571_v54  ;;  %v3655_v15 = vld [vmem:[#allocation4 + $0x440] sm:$0xff]  ;;  %v3652_v54 = vld [vmem:[#allocation4 + $0x428] sm:$0xff] }
 0x68e   :  { %3786 = vmatpush1.bf16.msra.mxu1 %v3568_v33  ;;  %3868 = vmatpush1.bf16.msra.mxu0 %v3570_v37  ;;  %v3654_v33 = vld [vmem:[#allocation4 + $0x438] sm:$0xff]  ;;  %v3660_v37 = vld [vmem:[#allocation4 + $0x468] sm:$0xff] }
 0x68f   :  { %3787 = vmatprep.subr.bf16.mxu1 %v3576_v19  ;;  %3869 = vmatprep.subr.bf16.mxu0 %v3578_v20  ;;  %v3662_v19 = vld [vmem:[#allocation4 + $0x478] sm:$0xff]  ;;  %v3659_v20 = vld [vmem:[#allocation4 + $0x460] sm:$0xff] }
 0x692   :  { %3788 = vmatpush1.bf16.msra.mxu1 %v3575_v22  ;;  %3870 = vmatpush1.bf16.msra.mxu0 %v3577_v24  ;;  %v3661_v22 = vld [vmem:[#allocation4 + $0x470] sm:$0xff]  ;;  %v3667_v24 = vld [vmem:[#allocation4 + $0x4a0] sm:$0xff] }
 0x693   :  { %3789 = vmatprep.subr.bf16.mxu1 %v3583_v27  ;;  %3871 = vmatprep.subr.bf16.mxu0 %v3585_v29  ;;  %v3669_v27 = vld [vmem:[#allocation4 + $0x4b0] sm:$0xff]  ;;  %v3666_v29 = vld [vmem:[#allocation4 + $0x498] sm:$0xff] }
 0x696   :  { %3790 = vmatpush1.bf16.msra.mxu1 %v3582_v30  ;;  %3872 = vmatpush1.bf16.msra.mxu0 %v3584_v17  ;;  %v3668_v30 = vld [vmem:[#allocation4 + $0x4a8] sm:$0xff]  ;;  %v3674_v17 = vld [vmem:[#allocation4 + $0x4d8] sm:$0xff] }
 0x697   :  { %3791 = vmatprep.subr.bf16.mxu1 %v3590_v32  ;;  %3873 = vmatprep.subr.bf16.mxu0 %v3592_v34  ;;  %v3676_v32 = vld [vmem:[#allocation4 + $0x4e8] sm:$0xff]  ;;  %v3673_v34 = vld [vmem:[#allocation4 + $0x4d0] sm:$0xff] }
 0x69a   :  { %3792 = vmatpush1.bf16.msra.mxu1 %v3589_v52  ;;  %3874 = vmatpush1.bf16.msra.mxu0 %v3591_v18  ;;  %v3675_v52 = vld [vmem:[#allocation4 + $0x4e0] sm:$0xff]  ;;  %v3681_v18 = vld [vmem:[#allocation4 + $0x510] sm:$0xff] }
 0x69b   :  { %3793 = vmatprep.subr.bf16.mxu1 %v3597_v23  ;;  %3875 = vmatprep.subr.bf16.mxu0 %v3599_v51  ;;  %v3683_v23 = vld [vmem:[#allocation4 + $0x520] sm:$0xff]  ;;  %v3680_v51 = vld [vmem:[#allocation4 + $0x508] sm:$0xff] }
 0x69e   :  { %3794 = vmatpush1.bf16.msra.mxu1 %v3596_v28  ;;  %3876 = vmatpush1.bf16.msra.mxu0 %v3598_v39  ;;  %v3682_v28 = vld [vmem:[#allocation4 + $0x518] sm:$0xff]  ;;  %v3688_v39 = vld [vmem:[#allocation4 + $0x548] sm:$0xff] }
 0x69f   :  { %3795 = vmatprep.subr.bf16.mxu1 %v3604_v56  ;;  %3877 = vmatprep.subr.bf16.mxu0 %v3606_v10  ;;  %v3690_v56 = vld [vmem:[#allocation4 + $0x558] sm:$0xff]  ;;  %v3687_v10 = vld [vmem:[#allocation4 + $0x540] sm:$0xff] }
 0x6a2   :  { %3796 = vmatpush1.bf16.msra.mxu1 %v3603_v40  ;;  %3878 = vmatpush1.bf16.msra.mxu0 %v3605_v41  ;;  %v3689_v40 = vld [vmem:[#allocation4 + $0x550] sm:$0xff]  ;;  %v3695_v41 = vld [vmem:[#allocation4 + $0x580] sm:$0xff] }
 0x6a3   :  { %3797 = vmatprep.subr.bf16.mxu1 %v3611_v44  ;;  %3879 = vmatprep.subr.bf16.mxu0 %v3613_v45  ;;  %v3697_v44 = vld [vmem:[#allocation4 + $0x590] sm:$0xff]  ;;  %v3694_v45 = vld [vmem:[#allocation4 + $0x578] sm:$0xff] }
 0x6a6   :  { %3798 = vmatpush1.bf16.msra.mxu1 %v3610_v46  ;;  %3880 = vmatpush1.bf16.msra.mxu0 %v3612_v21  ;;  %v3696_v46 = vld [vmem:[#allocation4 + $0x588] sm:$0xff]  ;;  %v3702_v21 = vld [vmem:[#allocation4 + $0x5b8] sm:$0xff] }
 0x6a7   :  { %3799 = vmatprep.subr.bf16.mxu1 %v3618_v25  ;;  %3881 = vmatprep.subr.bf16.mxu0 %v3620_v47  ;;  %v3704_v25 = vld [vmem:[#allocation4 + $0x5c8] sm:$0xff]  ;;  %v3701_v47 = vld [vmem:[#allocation4 + $0x5b0] sm:$0xff] }
 0x6aa   :  { %3800 = vmatpush1.bf16.msra.mxu1 %v3617_v48  ;;  %3882 = vmatpush1.bf16.msra.mxu0 %v3619_v6  ;;  %v3703_v48 = vld [vmem:[#allocation4 + $0x5c0] sm:$0xff]  ;;  %v3709_v6 = vld [vmem:[#allocation4 + $0x5f0] sm:$0xff] }
 0x6ab   :  { %3801 = vmatprep.subr.bf16.mxu1 %v3625_v50  ;;  %3883 = vmatprep.subr.bf16.mxu0 %v3627_v53  ;;  %v3711_v50 = vld [vmem:[#allocation4 + $0x600] sm:$0xff]  ;;  %v3708_v53 = vld [vmem:[#allocation4 + $0x5e8] sm:$0xff] }
 0x6ae   :  { %3802 = vmatpush1.bf16.msra.mxu1 %v3624_v55  ;;  %3884 = vmatpush1.bf16.msra.mxu0 %v3626_v59  ;;  %v3710_v55 = vld [vmem:[#allocation4 + $0x5f8] sm:$0xff]  ;;  %v3716_v59 = vld [vmem:[#allocation4 + $0x628] sm:$0xff] }
 0x6af   :  { %3812 = vmatprep.subr.bf16.mxu1 %v3632_v63  ;;  %3894 = vmatprep.subr.bf16.mxu0 %v3634_v7  ;;  %v3718_v63 = vld [vmem:[#allocation4 + $0x638] sm:$0xff]  ;;  %v3715_v7 = vld [vmem:[#allocation4 + $0x620] sm:$0xff] }
 0x6b1   :  { %3804 = vmatmul.mubr.bf16.vlgmr.msra.gmra.mrb[36].mxu1 %v6402_v8  ;;  %3886 = vmatmul.mubr.bf16.vlgmr.msra.gmra.mrb[32].mxu0 %v6402_v8 }
 0x6b2   :  { %3813 = vmatpush1.bf16.msra.mxu1 %v3631_v9  ;;  %3895 = vmatpush1.bf16.msra.mxu0 %v3633_v11  ;;  %v3717_v9 = vld [vmem:[#allocation4 + $0x630] sm:$0xff]  ;;  %v3723_v11 = vld [vmem:[#allocation4 + $0x660] sm:$0xff] }
 0x6b3   :  { %3814 = vmatprep.subr.bf16.mxu1 %v3639_v42  ;;  %3896 = vmatprep.subr.bf16.mxu0 %v3641_v49  ;;  %v3725_v42 = vld [vmem:[#allocation4 + $0x670] sm:$0xff]  ;;  %v3722_v49 = vld [vmem:[#allocation4 + $0x658] sm:$0xff] }
 0x6b4   :  { %3844 = vmatprep.mubr.bf16.mxu1 %v6407_v12  ;;  %3926 = vmatprep.mubr.bf16.mxu0 %v6407_v12 }
 0x6b6   :  { %3815 = vmatpush1.bf16.msra.mxu1 %v3638_v31  ;;  %3897 = vmatpush1.bf16.msra.mxu0 %v3640_v35  ;;  %v3724_v31 = vld [vmem:[#allocation4 + $0x668] sm:$0xff]  ;;  %v3730_v35 = vld [vmem:[#allocation4 + $0x698] sm:$0xff] }
 0x6b7   :  { %3816 = vmatprep.subr.bf16.mxu1 %v3646_v13  ;;  %3898 = vmatprep.subr.bf16.mxu0 %v3648_v14  ;;  %v3732_v13 = vld [vmem:[#allocation4 + $0x6a8] sm:$0xff]  ;;  %v3729_v14 = vld [vmem:[#allocation4 + $0x690] sm:$0xff] }
 0x6ba   :  { %3817 = vmatpush1.bf16.msra.mxu1 %v3645_v43  ;;  %3899 = vmatpush1.bf16.msra.mxu0 %v3647_v5  ;;  %v3731_v43 = vld [vmem:[#allocation4 + $0x6a0] sm:$0xff]  ;;  %v3737_v5 = vld [vmem:[#allocation4 + $0x6d0] sm:$0xff] }
 0x6bb   :  { %3818 = vmatprep.subr.bf16.mxu1 %v3653_v26  ;;  %3900 = vmatprep.subr.bf16.mxu0 %v3655_v15  ;;  %v3739_v26 = vld [vmem:[#allocation4 + $0x6e0] sm:$0xff]  ;;  %v3736_v15 = vld [vmem:[#allocation4 + $0x6c8] sm:$0xff] }
 0x6be   :  { %3819 = vmatpush1.bf16.msra.mxu1 %v3652_v54  ;;  %3901 = vmatpush1.bf16.msra.mxu0 %v3654_v33  ;;  %v3738_v54 = vld [vmem:[#allocation4 + $0x6d8] sm:$0xff]  ;;  %v3524_v33 = vld [vmem:[#allocation4 + $0x28] sm:$0xff] }
 0x6bf   :  { %3820 = vmatprep.subr.bf16.mxu1 %v3660_v37  ;;  %3902 = vmatprep.subr.bf16.mxu0 %v3662_v19  ;;  %v3581_v37 = vld [vmem:[#allocation4 + $0x1f0] sm:$0xff]  ;;  %v6416_v19 = vpack.c.bf16 %v3511_v36, %v3511_v36  ;;  %v3538_v36 = vld [vmem:[#allocation4 + $0x98] sm:$0xff] }
 0x6c2   :  { %3821 = vmatpush1.bf16.msra.mxu1 %v3659_v20  ;;  %3903 = vmatpush1.bf16.msra.mxu0 %v3661_v22  ;;  %v3523_v20 = vld [vmem:[#allocation4 + $0x20] sm:$0xff]  ;;  %v3525_v22 = vld [vmem:[#allocation4 + $0x30] sm:$0xff] }
 0x6c3   :  { %3822 = vmatprep.subr.bf16.mxu1 %v3667_v24  ;;  %3904 = vmatprep.subr.bf16.mxu0 %v3669_v27  ;;  %v3531_v24 = vld [vmem:[#allocation4 + $0x60] sm:$0xff]  ;;  %v3588_v27 = vld [vmem:[#allocation4 + $0x228] sm:$0xff] }
 0x6c6   :  { %3823 = vmatpush1.bf16.msra.mxu1 %v3666_v29  ;;  %3905 = vmatpush1.bf16.msra.mxu0 %v3668_v30  ;;  %v3530_v29 = vld [vmem:[#allocation4 + $0x58] sm:$0xff]  ;;  %v3595_v30 = vld [vmem:[#allocation4 + $0x260] sm:$0xff] }
 0x6c7   :  { %3824 = vmatprep.subr.bf16.mxu1 %v3674_v17  ;;  %3906 = vmatprep.subr.bf16.mxu0 %v3676_v32  ;;  %v3537_v17 = vld [vmem:[#allocation4 + $0x90] sm:$0xff]  ;;  %v3539_v32 = vld [vmem:[#allocation4 + $0xa0] sm:$0xff] }
 0x6ca   :  { %3825 = vmatpush1.bf16.msra.mxu1 %v3673_v34  ;;  %3907 = vmatpush1.bf16.msra.mxu0 %v3675_v52  ;;  %v3545_v34 = vld [vmem:[#allocation4 + $0xd0] sm:$0xff]  ;;  %v3602_v52 = vld [vmem:[#allocation4 + $0x298] sm:$0xff] }
 0x6cb   :  { %3826 = vmatprep.subr.bf16.mxu1 %v3681_v18  ;;  %3908 = vmatprep.subr.bf16.mxu0 %v3683_v23  ;;  %v3544_v18 = vld [vmem:[#allocation4 + $0xc8] sm:$0xff]  ;;  %v3546_v23 = vld [vmem:[#allocation4 + $0xd8] sm:$0xff] }
 0x6ce   :  { %3827 = vmatpush1.bf16.msra.mxu1 %v3680_v51  ;;  %3909 = vmatpush1.bf16.msra.mxu0 %v3682_v28  ;;  %v3552_v51 = vld [vmem:[#allocation4 + $0x108] sm:$0xff]  ;;  %v3609_v28 = vld [vmem:[#allocation4 + $0x2d0] sm:$0xff] }
 0x6cf   :  { %3828 = vmatprep.subr.bf16.mxu1 %v3688_v39  ;;  %3910 = vmatprep.subr.bf16.mxu0 %v3690_v56  ;;  %v3553_v39 = vld [vmem:[#allocation4 + $0x110] sm:$0xff]  ;;  %v3559_v56 = vld [vmem:[#allocation4 + $0x140] sm:$0xff] }
 0x6d2   :  { %3829 = vmatpush1.bf16.msra.mxu1 %v3687_v10  ;;  %3911 = vmatpush1.bf16.msra.mxu0 %v3689_v40  ;;  %v3616_v10 = vld [vmem:[#allocation4 + $0x308] sm:$0xff]  ;;  %v3558_v40 = vld [vmem:[#allocation4 + $0x138] sm:$0xff] }
 0x6d3   :  { %3830 = vmatprep.subr.bf16.mxu1 %v3695_v41  ;;  %3912 = vmatprep.subr.bf16.mxu0 %v3697_v44  ;;  %v3560_v41 = vld [vmem:[#allocation4 + $0x148] sm:$0xff]  ;;  %v3566_v44 = vld [vmem:[#allocation4 + $0x178] sm:$0xff] }
 0x6d6   :  { %3831 = vmatpush1.bf16.msra.mxu1 %v3694_v45  ;;  %3913 = vmatpush1.bf16.msra.mxu0 %v3696_v46  ;;  %v3623_v45 = vld [vmem:[#allocation4 + $0x340] sm:$0xff]  ;;  %v3565_v46 = vld [vmem:[#allocation4 + $0x170] sm:$0xff] }
 0x6d7   :  { %3832 = vmatprep.subr.bf16.mxu1 %v3702_v21  ;;  %3914 = vmatprep.subr.bf16.mxu0 %v3704_v25  ;;  %v3567_v21 = vld [vmem:[#allocation4 + $0x180] sm:$0xff]  ;;  %v3573_v25 = vld [vmem:[#allocation4 + $0x1b0] sm:$0xff] }
 0x6da   :  { %3833 = vmatpush1.bf16.msra.mxu1 %v3701_v47  ;;  %3915 = vmatpush1.bf16.msra.mxu0 %v3703_v48  ;;  %v3630_v47 = vld [vmem:[#allocation4 + $0x378] sm:$0xff]  ;;  %v3572_v48 = vld [vmem:[#allocation4 + $0x1a8] sm:$0xff] }
 0x6db   :  { %3834 = vmatprep.subr.bf16.mxu1 %v3709_v6  ;;  %3916 = vmatprep.subr.bf16.mxu0 %v3711_v50  ;;  %v3574_v6 = vld [vmem:[#allocation4 + $0x1b8] sm:$0xff]  ;;  %v3580_v50 = vld [vmem:[#allocation4 + $0x1e8] sm:$0xff] }
 0x6de   :  { %3835 = vmatpush1.bf16.msra.mxu1 %v3708_v53  ;;  %3917 = vmatpush1.bf16.msra.mxu0 %v3710_v55  ;;  %v3693_v53 = vld [vmem:[#allocation4 + $0x570] sm:$0xff]  ;;  %v3579_v55 = vld [vmem:[#allocation4 + $0x1e0] sm:$0xff] }
 0x6df   :  { %3836 = vmatprep.subr.bf16.mxu1 %v3716_v59  ;;  %3918 = vmatprep.subr.bf16.mxu0 %v3718_v63  ;;  %v3637_v59 = vld [vmem:[#allocation4 + $0x3b0] sm:$0xff]  ;;  %v3587_v63 = vld [vmem:[#allocation4 + $0x220] sm:$0xff] }
 0x6e2   :  { %3837 = vmatpush1.bf16.msra.mxu1 %v3715_v7  ;;  %3919 = vmatpush1.bf16.msra.mxu0 %v3717_v9  ;;  %v3700_v7 = vld [vmem:[#allocation4 + $0x5a8] sm:$0xff]  ;;  %v3586_v9 = vld [vmem:[#allocation4 + $0x218] sm:$0xff] }
 0x6e3   :  { %3838 = vmatprep.subr.bf16.mxu1 %v3723_v11  ;;  %3920 = vmatprep.subr.bf16.mxu0 %v3725_v42  ;;  %v3644_v11 = vld [vmem:[#allocation4 + $0x3e8] sm:$0xff]  ;;  %v3594_v42 = vld [vmem:[#allocation4 + $0x258] sm:$0xff] }
 0x6e6   :  { %3839 = vmatpush1.bf16.msra.mxu1 %v3722_v49  ;;  %3921 = vmatpush1.bf16.msra.mxu0 %v3724_v31  ;;  %v3707_v49 = vld [vmem:[#allocation4 + $0x5e0] sm:$0xff]  ;;  %v3593_v31 = vld [vmem:[#allocation4 + $0x250] sm:$0xff] }
 0x6e7   :  { %3840 = vmatprep.subr.bf16.mxu1 %v3730_v35  ;;  %3922 = vmatprep.subr.bf16.mxu0 %v3732_v13  ;;  %v3651_v35 = vld [vmem:[#allocation4 + $0x420] sm:$0xff]  ;;  %v3601_v13 = vld [vmem:[#allocation4 + $0x290] sm:$0xff] }
 0x6ea   :  { %3841 = vmatpush1.bf16.msra.mxu1 %v3729_v14  ;;  %3923 = vmatpush1.bf16.msra.mxu0 %v3731_v43  ;;  %v3714_v14 = vld [vmem:[#allocation4 + $0x618] sm:$0xff]  ;;  %v3600_v43 = vld [vmem:[#allocation4 + $0x288] sm:$0xff] }
 0x6eb   :  { %3842 = vmatprep.subr.bf16.mxu1 %v3737_v5  ;;  %3924 = vmatprep.subr.bf16.mxu0 %v3739_v26  ;;  %v3658_v5 = vld [vmem:[#allocation4 + $0x458] sm:$0xff]  ;;  %v3608_v26 = vld [vmem:[#allocation4 + $0x2c8] sm:$0xff] }
 0x6ee   :  { %3843 = vmatpush1.bf16.msra.mxu1 %v3736_v15  ;;  %3925 = vmatpush1.bf16.msra.mxu0 %v3738_v54  ;;  %v3721_v15 = vld [vmem:[#allocation4 + $0x650] sm:$0xff]  ;;  %v3607_v54 = vld [vmem:[#allocation4 + $0x2c0] sm:$0xff] }
 0x6ef   :  { %3935 = vmatprep.subr.bf16.mxu1 %v3524_v33  ;;  %5517 = vmatprep.subr.bf16.mxu0 %v3581_v37  ;;  %v3665_v33 = vld [vmem:[#allocation4 + $0x490] sm:$0xff]  ;;  %v3615_v37 = vld [vmem:[#allocation4 + $0x300] sm:$0xff] }
 0x6f1   :  { %3845 = vmatmul.mubr.bf16.vlgmr.msra.gmra.mrb[36].mxu1 %v6416_v19  ;;  %3927 = vmatmul.mubr.bf16.vlgmr.msra.gmra.mrb[32].mxu0 %v6416_v19 }
 0x6f2   :  { %3936 = vmatpush1.bf16.msra.mxu1 %v3523_v20  ;;  %5518 = vmatpush3.bf16.msra.mxu0 %v3525_v22  ;;  %v3728_v20 = vld [vmem:[#allocation4 + $0x688] sm:$0xff]  ;;  %v3614_v22 = vld [vmem:[#allocation4 + $0x2f8] sm:$0xff] }
 0x6f3   :  { %3937 = vmatprep.subr.bf16.mxu1 %v3531_v24  ;;  %5519 = vmatprep.subr.bf16.mxu0 %v3588_v27  ;;  %v3672_v24 = vld [vmem:[#allocation4 + $0x4c8] sm:$0xff]  ;;  %v3622_v27 = vld [vmem:[#allocation4 + $0x338] sm:$0xff] }
 0x6f4   :  { %3967 = vmatprep.mubr.bf16.mxu1 %v6395_v38  ;;  %4049 = vmatprep.mubr.bf16.mxu0 %v6395_v38  ;;  %v3551_v38 = vld [vmem:[#allocation4 + $0x100] sm:$0xff] }
 0x6f6   :  { %3938 = vmatpush1.bf16.msra.mxu1 %v3530_v29  ;;  %5520 = vmatpush3.bf16.msra.mxu0 %v3532_v16  ;;  %v3735_v29 = vld [vmem:[#allocation4 + $0x6c0] sm:$0xff]  ;;  %v3621_v16 = vld [vmem:[#allocation4 + $0x330] sm:$0xff] }
 0x6f7   :  { %3939 = vmatprep.subr.bf16.mxu1 %v3538_v36  ;;  %5521 = vmatprep.subr.bf16.mxu0 %v3595_v30  ;;  %v3679_v36 = vld [vmem:[#allocation4 + $0x500] sm:$0xff]  ;;  %v3629_v30 = vld [vmem:[#allocation4 + $0x370] sm:$0xff] }
 0x6fa   :  { %3940 = vmatpush1.bf16.msra.mxu1 %v3537_v17  ;;  %5522 = vmatpush3.bf16.msra.mxu0 %v3539_v32  ;;  %v3742_v17 = vld [vmem:[#allocation4 + $0x6f8] sm:$0xff]  ;;  %v3628_v32 = vld [vmem:[#allocation4 + $0x368] sm:$0xff] }
 0x6fb   :  { %3941 = vmatprep.subr.bf16.mxu1 %v3545_v34  ;;  %5523 = vmatprep.subr.bf16.mxu0 %v3602_v52  ;;  %v3686_v34 = vld [vmem:[#allocation4 + $0x538] sm:$0xff]  ;;  %v3636_v52 = vld [vmem:[#allocation4 + $0x3a8] sm:$0xff] }
 0x6fe   :  { %3942 = vmatpush1.bf16.msra.mxu1 %v3544_v18  ;;  %5524 = vmatpush3.bf16.msra.mxu0 %v3546_v23  ;;  %v3635_v18 = vld [vmem:[#allocation4 + $0x3a0] sm:$0xff] }
 0x6ff   :  { %3943 = vmatprep.subr.bf16.mxu1 %v3552_v51  ;;  %5525 = vmatprep.subr.bf16.mxu0 %v3609_v28  ;;  %v3643_v23 = vld [vmem:[#allocation4 + $0x3e0] sm:$0xff]  ;;  %v3642_v51 = vld [vmem:[#allocation4 + $0x3d8] sm:$0xff] }
 0x700   :  { %v3650_v28 = vld [vmem:[#allocation4 + $0x418] sm:$0xff] }
 0x702   :  { %3944 = vmatpush1.bf16.msra.mxu1 %v3551_v38  ;;  %5526 = vmatpush3.bf16.msra.mxu0 %v3553_v39  ;;  %v3649_v38 = vld [vmem:[#allocation4 + $0x410] sm:$0xff] }
 0x703   :  { %3945 = vmatprep.subr.bf16.mxu1 %v3559_v56  ;;  %5527 = vmatprep.subr.bf16.mxu0 %v3616_v10  ;;  %v3657_v39 = vld [vmem:[#allocation4 + $0x450] sm:$0xff]  ;;  %v3656_v56 = vld [vmem:[#allocation4 + $0x448] sm:$0xff] }
 0x704   :  { %v3664_v10 = vld [vmem:[#allocation4 + $0x488] sm:$0xff] }
 0x706   :  { %3946 = vmatpush1.bf16.msra.mxu1 %v3558_v40  ;;  %5528 = vmatpush3.bf16.msra.mxu0 %v3560_v41  ;;  %v3663_v40 = vld [vmem:[#allocation4 + $0x480] sm:$0xff]  ;;  %v3670_v41 = vld [vmem:[#allocation4 + $0x4b8] sm:$0xff] }
 0x707   :  { %3947 = vmatprep.subr.bf16.mxu1 %v3566_v44  ;;  %5529 = vmatprep.subr.bf16.mxu0 %v3623_v45  ;;  %v3678_v44 = vld [vmem:[#allocation4 + $0x4f8] sm:$0xff]  ;;  %v3685_v45 = vld [vmem:[#allocation4 + $0x530] sm:$0xff] }
 0x70a   :  { %3948 = vmatpush1.bf16.msra.mxu1 %v3565_v46  ;;  %5530 = vmatpush3.bf16.msra.mxu0 %v3567_v21  ;;  %v3684_v46 = vld [vmem:[#allocation4 + $0x528] sm:$0xff] }
 0x70b   :  { %3949 = vmatprep.subr.bf16.mxu1 %v3573_v25  ;;  %5531 = vmatprep.subr.bf16.mxu0 %v3630_v47  ;;  %v3692_v21 = vld [vmem:[#allocation4 + $0x568] sm:$0xff]  ;;  %v3691_v25 = vld [vmem:[#allocation4 + $0x560] sm:$0xff] }
 0x70c   :  { %v3699_v47 = vld [vmem:[#allocation4 + $0x5a0] sm:$0xff] }
 0x70e   :  { %3950 = vmatpush1.bf16.msra.mxu1 %v3572_v48  ;;  %5532 = vmatpush3.bf16.msra.mxu0 %v3574_v6  ;;  %v3698_v48 = vld [vmem:[#allocation4 + $0x598] sm:$0xff] }
 0x70f   :  { %3951 = vmatprep.subr.bf16.mxu1 %v3580_v50  ;;  %5539 = vmatprep.subr.bf16.mxu0 %v3693_v53  ;;  %v3706_v6 = vld [vmem:[#allocation4 + $0x5d8] sm:$0xff]  ;;  %v3705_v50 = vld [vmem:[#allocation4 + $0x5d0] sm:$0xff] }
 0x710   :  { %v3713_v53 = vld [vmem:[#allocation4 + $0x610] sm:$0xff] }
 0x711   :  { %4050 = vmatmul.mubr.bf16.vlgmr.msra.gmra.mrb[36].mxu0 %v6402_v8 }
 0x712   :  { %3952 = vmatpush1.bf16.msra.mxu1 %v3579_v55  ;;  %5540 = vmatpush3.bf16.msra.mxu0 %v3637_v59  ;;  %v3712_v55 = vld [vmem:[#allocation4 + $0x608] sm:$0xff] }
 0x713   :  { %3953 = vmatprep.subr.bf16.mxu1 %v3587_v63  ;;  %5541 = vmatprep.subr.bf16.mxu0 %v3700_v7  ;;  %v3720_v59 = vld [vmem:[#allocation4 + $0x648] sm:$0xff]  ;;  %v3719_v63 = vld [vmem:[#allocation4 + $0x640] sm:$0xff] }
 0x714   :  { %4089 = vmatprep.mubr.bf16.mxu0 %v6407_v12  ;;  %v3727_v7 = vld [vmem:[#allocation4 + $0x680] sm:$0xff] }
 0x716   :  { %3954 = vmatpush1.bf16.msra.mxu1 %v3586_v9  ;;  %5542 = vmatpush3.bf16.msra.mxu0 %v3644_v11  ;;  %v3726_v9 = vld [vmem:[#allocation4 + $0x678] sm:$0xff] }
 0x717   :  { %3955 = vmatprep.subr.bf16.mxu1 %v3594_v42  ;;  %5543 = vmatprep.subr.bf16.mxu0 %v3707_v49  ;;  %v3734_v11 = vld [vmem:[#allocation4 + $0x6b8] sm:$0xff]  ;;  %v3733_v42 = vld [vmem:[#allocation4 + $0x6b0] sm:$0xff] }
 0x718   :  { %v3741_v49 = vld [vmem:[#allocation4 + $0x6f0] sm:$0xff] }
 0x71a   :  { %3956 = vmatpush1.bf16.msra.mxu1 %v3593_v31  ;;  %5544 = vmatpush3.bf16.msra.mxu0 %v3651_v35  ;;  %v3740_v31 = vld [vmem:[#allocation4 + $0x6e8] sm:$0xff]  ;;  %v3745_v35 = vsub.s32 4, %v6246_v58 }
 0x71b   :  { %3957 = vmatprep.subr.bf16.mxu1 %v3601_v13  ;;  %5545 = vmatprep.subr.bf16.mxu0 %v3714_v14 }
 0x71c   :  { %v3746_v13 = vrot.slane %v6252_v60, %v3745_v35  ;;  %v3754_v14 = vrot.slane %v6257_v61, %v3745_v35 }
 0x71e   :  { %3958 = vmatpush1.bf16.msra.mxu1 %v3600_v43  ;;  %5546 = vmatpush3.bf16.msra.mxu0 %v3658_v5  ;;  %v3750_v43 = vrot.slane %v6262_v62, %v3745_v35  ;;  %v3758_v5 = vrot.slane %v6267_v4, %v3745_v35 }
 0x71f   :  { %3959 = vmatprep.subr.bf16.mxu1 %v3608_v26  ;;  %5547 = vmatprep.subr.bf16.mxu0 %v3721_v15 }
 0x722   :  { %3960 = vmatpush1.bf16.msra.mxu1 %v3607_v54  ;;  %5548 = vmatpush3.bf16.msra.mxu0 %v3665_v33 }
 0x723   :  { %3961 = vmatprep.subr.bf16.mxu1 %v3615_v37  ;;  %5549 = vmatprep.subr.bf16.mxu0 %v3728_v20 }
 0x726   :  { %3962 = vmatpush1.bf16.msra.mxu1 %v3614_v22  ;;  %5550 = vmatpush3.bf16.msra.mxu0 %v3672_v24 }
 0x727   :  { %3963 = vmatprep.subr.bf16.mxu1 %v3622_v27  ;;  %5551 = vmatprep.subr.bf16.mxu0 %v3735_v29 }
 0x72a   :  { %3964 = vmatpush1.bf16.msra.mxu1 %v3621_v16  ;;  %5552 = vmatpush3.bf16.msra.mxu0 %v3679_v36 }
 0x72b   :  { %3965 = vmatprep.subr.bf16.mxu1 %v3629_v30  ;;  %5553 = vmatprep.subr.bf16.mxu0 %v3742_v17 }
 0x72e   :  { %3966 = vmatpush1.bf16.msra.mxu1 %v3628_v32  ;;  %5554 = vmatpush3.bf16.msra.mxu0 %v3686_v34 }
 0x72f   :  { %3976 = vmatprep.subr.bf16.mxu1 %v3636_v52 }
 0x731   :  { %3968 = vmatmul.mubr.bf16.vlgmr.msra.gmra.mrb[40].mxu1 %v6402_v8  ;;  %4090 = vmatmul.mubr.bf16.vlgmr.msra.gmra.mrb[40].mxu0 %v6416_v19  ;;  %v3671_v8 = vld [vmem:[#allocation4 + $0x4c0] sm:$0xff] }
 0x732   :  { %3977 = vmatpush1.bf16.msra.mxu1 %v3635_v18  ;;  %4008 = vmatprep.mubr.bf16.mxu1 %v6407_v12  ;;  %v3677_v12 = vld [vmem:[#allocation4 + $0x4f0] sm:$0xff] }
 0x733   :  { %3978 = vmatprep.subr.bf16.mxu1 %v3643_v23 }
 0x736   :  { %3979 = vmatpush1.bf16.msra.mxu1 %v3642_v51 }
 0x737   :  { %3980 = vmatprep.subr.bf16.mxu1 %v3650_v28  ;;  %v3770_v28 = vrot.slane %v6224_v3, %v3745_v35 }
 0x73a   :  { %3981 = vmatpush1.bf16.msra.mxu1 %v3649_v38 }
 0x73b   :  { %3982 = vmatprep.subr.bf16.mxu1 %v3657_v39 }
 0x73e   :  { %3983 = vmatpush1.bf16.msra.mxu1 %v3656_v56 }
 0x73f   :  { %3984 = vmatprep.subr.bf16.mxu1 %v3664_v10 }
 0x742   :  { %3985 = vmatpush1.bf16.msra.mxu1 %v3663_v40 }
 0x743   :  { %3986 = vmatprep.subr.bf16.mxu1 %v3671_v8 }
 0x746   :  { %3987 = vmatpush1.bf16.msra.mxu1 %v3670_v41 }
 0x747   :  { %3988 = vmatprep.subr.bf16.mxu1 %v3678_v44 }
 0x74a   :  { %3989 = vmatpush1.bf16.msra.mxu1 %v3677_v12  ;;  %v3762_v12 = vrot.slane %v6214_v1, %v3745_v35 }
 0x74b   :  { %3990 = vmatprep.subr.bf16.mxu1 %v3685_v45  ;;  %v3766_v45 = vrot.slane %v6219_v2, %v3745_v35 }
 0x74e   :  { %3991 = vmatpush1.bf16.msra.mxu1 %v3684_v46 }
 0x74f   :  { %3992 = vmatprep.subr.bf16.mxu1 %v3692_v21 }
 0x752   :  { %3993 = vmatpush1.bf16.msra.mxu1 %v3691_v25 }
 0x753   :  { %3994 = vmatprep.subr.bf16.mxu1 %v3699_v47 }
 0x756   :  { %3995 = vmatpush1.bf16.msra.mxu1 %v3698_v48 }
 0x757   :  { %3996 = vmatprep.subr.bf16.mxu1 %v3706_v6 }
 0x75a   :  { %3997 = vmatpush1.bf16.msra.mxu1 %v3705_v50 }
 0x75b   :  { %3998 = vmatprep.subr.bf16.mxu1 %v3713_v53 }
 0x75e   :  { %3999 = vmatpush1.bf16.msra.mxu1 %v3712_v55 }
 0x75f   :  { %4000 = vmatprep.subr.bf16.mxu1 %v3720_v59 }
 0x762   :  { %4001 = vmatpush1.bf16.msra.mxu1 %v3719_v63 }
 0x763   :  { %4002 = vmatprep.subr.bf16.mxu1 %v3727_v7 }
 0x766   :  { %4003 = vmatpush1.bf16.msra.mxu1 %v3726_v9 }
 0x767   :  { %4004 = vmatprep.subr.bf16.mxu1 %v3734_v11 }
 0x76a   :  { %4005 = vmatpush1.bf16.msra.mxu1 %v3733_v42 }
 0x76b   :  { %4006 = vmatprep.subr.bf16.mxu1 %v3741_v49 }
 0x76e   :  { %4007 = vmatpush1.bf16.msra.mxu1 %v3740_v31 }
 0x771   :  { %4009 = vmatmul.mubr.bf16.vlgmr.msra.gmra.mrb[40].mxu1 %v6416_v19 }
 0x7c4   :  { %v3846_v26 = vpop.f32.mrb[36].mxu1  ;;  %v3928_v15 = vpop.f32.mrb[32].mxu0 }
 0x7c5   :  { %v6433_v54 = vadd.f32 %v3846_v26, %v3746_v13  ;;  %v6435_v33 = vadd.f32 %v3928_v15, %v3754_v14  ;;  %v3848_v37 = vpop.f32.mrb[37].mxu1  ;;  %v3930_v20 = vpop.f32.mrb[33].mxu0 }
 0x7c6   :  { %v5620_v22 = vadd.f32 %v3848_v37, %v3750_v43  ;;  %v6437_v19 = vadd.f32 %v3930_v20, %v3758_v5  ;;  %v3850_v24 = vpop.f32.mrb[38].mxu1  ;;  %v3932_v27 = vpop.f32.mrb[34].mxu0 }
 0x7c7   :  { %v4097_v29 = vmax.f32 %v6433_v54, 0.0  ;;  %v4099_v16 = vmax.f32 %v6435_v33, 0.0  ;;  %v3851_v36 = vpop.f32.mrb[39].mxu1  ;;  %v3933_v30 = vpop.f32.mrb[35].mxu0 }
 0x7c8   :  { %v4098_v17 = vmax.f32 %v5620_v22, 0.0  ;;  %v4100_v32 = vmax.f32 %v6437_v19, 0.0 }
 0x7e4   :  { %v5533_v34 = vpop.f32.mrb[36].mxu0 }
 0x7e5   :  { %v5534_v52 = vpop.f32.mrb[37].mxu0 }
 0x7e6   :  { %v5535_v18 = vadd.f32 %v5534_v52, %v5533_v34  ;;  %v5536_v23 = vpop.f32.mrb[38].mxu0 }
 0x7e7   :  { %v5537_v51 = vpop.f32.mrb[39].mxu0 }
 0x7e8   :  { %v4052_v38 = vadd.f32 %v5535_v18, %v3770_v28 }
 0x804   :  { %v5555_v39 = vpop.f32.mrb[40].mxu0 }
 0x805   :  { %v5556_v56 = vpop.f32.mrb[41].mxu0 }
 0x806   :  { %v5557_v10 = vadd.f32 %v5556_v56, %v5555_v39  ;;  %v5558_v40 = vpop.f32.mrb[42].mxu0 }
 0x807   :  { %v5559_v8 = vpop.f32.mrb[43].mxu0 }
 0x808   :  { %v6443_v41 = vadd.f32 %v5557_v10, %v4052_v38 }
 0x80a   :  { %v4103_v44 = vmax.f32 %v6443_v41, 0.0 }
 0x844   :  { %v4010_v46 = vpop.f32.mrb[40].mxu1 }
 0x845   :  { %v6448_v21 = vadd.f32 %v4010_v46, %v3762_v12  ;;  %v4012_v25 = vpop.f32.mrb[41].mxu1 }
 0x846   :  { %v6450_v47 = vadd.f32 %v4012_v25, %v3766_v45  ;;  %v4014_v3 = vpop.f32.mrb[42].mxu1 }
 0x847   :  { %v4101_v48 = vmax.f32 %v6448_v21, 0.0  ;;  %v4015_v6 = vpop.f32.mrb[43].mxu1 }
 0x848   :  { %v4102_v50 = vmax.f32 %v6450_v47, 0.0 }
 0x849   :  { %6019 = dma.done.wait [#allocation8 + $0x3], 28672 }
 0x84a   :  { %6020 = vsyncadd [#allocation8 + $0x3], 4294938624  ;;  %v4107_v53 = vpack.c.bf16 %v4098_v17, %v4098_v17  ;;  %v4114_v1 = vld [vmem:[#allocation5 + $0x8] sm:$0xff]  ;;  %v4116_v55 = vld [vmem:[#allocation5 + $0x18] sm:$0xff] }
 0x84b   :  { %v4113_v2 = vld [vmem:[#allocation5] sm:$0xff]  ;;  %4353 = vmatprep.subr.bf16.mxu0 %v4114_v1  ;;  %4517 = vmatprep.subr.bf16.mxu1 %v4116_v55  ;;  %v4115_v59 = vld [vmem:[#allocation5 + $0x10] sm:$0xff]  ;;  %v4118_v63 = vld [vmem:[#allocation5 + $0x28] sm:$0xff] }
 0x84c   :  { %4385 = vmatprep.mubr.bf16.mxu0 %v4107_v53  ;;  %4549 = vmatprep.mubr.bf16.mxu1 %v4107_v53  ;;  %v4120_v7 = vld [vmem:[#allocation5 + $0x38] sm:$0xff]  ;;  %v4117_v9 = vld [vmem:[#allocation5 + $0x20] sm:$0xff]  ;;  %v4119_v11 = vld [vmem:[#allocation5 + $0x30] sm:$0xff] }
 0x84d   :  { %4354 = vmatpush1.bf16.msra.mxu0 %v4113_v2  ;;  %4518 = vmatpush1.bf16.msra.mxu1 %v4115_v59  ;;  %v4122_v42 = vld [vmem:[#allocation5 + $0x48] sm:$0xff]  ;;  %v4124_v49 = vld [vmem:[#allocation5 + $0x58] sm:$0xff]  ;;  %v4121_v31 = vld [vmem:[#allocation5 + $0x40] sm:$0xff] }
 0x84e   :  { %4355 = vmatprep.subr.bf16.mxu0 %v4118_v63  ;;  %4519 = vmatprep.subr.bf16.mxu1 %v4120_v7  ;;  %v4123_v35 = vld [vmem:[#allocation5 + $0x50] sm:$0xff]  ;;  %v4126_v13 = vld [vmem:[#allocation5 + $0x68] sm:$0xff]  ;;  %v4128_v14 = vld [vmem:[#allocation5 + $0x78] sm:$0xff] }
 0x84f   :  { %v4125_v43 = vld [vmem:[#allocation5 + $0x60] sm:$0xff]  ;;  %v4127_v5 = vld [vmem:[#allocation5 + $0x70] sm:$0xff]  ;;  %v4130_v26 = vld [vmem:[#allocation5 + $0x88] sm:$0xff] }
 0x850   :  { %v4132_v15 = vld [vmem:[#allocation5 + $0x98] sm:$0xff]  ;;  %v4129_v37 = vld [vmem:[#allocation5 + $0x80] sm:$0xff]  ;;  %v4131_v20 = vld [vmem:[#allocation5 + $0x90] sm:$0xff] }
 0x851   :  { %4356 = vmatpush1.bf16.msra.mxu0 %v4117_v9  ;;  %4520 = vmatpush1.bf16.msra.mxu1 %v4119_v11  ;;  %v4134_v22 = vld [vmem:[#allocation5 + $0xa8] sm:$0xff]  ;;  %v4136_v24 = vld [vmem:[#allocation5 + $0xb8] sm:$0xff]  ;;  %v4133_v27 = vld [vmem:[#allocation5 + $0xa0] sm:$0xff] }
 0x852   :  { %4357 = vmatprep.subr.bf16.mxu0 %v4122_v42  ;;  %4521 = vmatprep.subr.bf16.mxu1 %v4124_v49  ;;  %v4135_v36 = vld [vmem:[#allocation5 + $0xb0] sm:$0xff]  ;;  %v4138_v30 = vld [vmem:[#allocation5 + $0xc8] sm:$0xff]  ;;  %v4140_v17 = vld [vmem:[#allocation5 + $0xd8] sm:$0xff] }
 0x853   :  { %v4137_v34 = vld [vmem:[#allocation5 + $0xc0] sm:$0xff]  ;;  %v4139_v52 = vld [vmem:[#allocation5 + $0xd0] sm:$0xff]  ;;  %v4142_v18 = vld [vmem:[#allocation5 + $0xe8] sm:$0xff] }
 0x854   :  { %v4144_v23 = vld [vmem:[#allocation5 + $0xf8] sm:$0xff]  ;;  %v4141_v51 = vld [vmem:[#allocation5 + $0xe0] sm:$0xff]  ;;  %v4143_v28 = vld [vmem:[#allocation5 + $0xf0] sm:$0xff] }
 0x855   :  { %4358 = vmatpush1.bf16.msra.mxu0 %v4121_v31  ;;  %4522 = vmatpush1.bf16.msra.mxu1 %v4123_v35  ;;  %v4146_v38 = vld [vmem:[#allocation5 + $0x108] sm:$0xff]  ;;  %v4148_v39 = vld [vmem:[#allocation5 + $0x118] sm:$0xff]  ;;  %v4145_v56 = vld [vmem:[#allocation5 + $0x100] sm:$0xff] }
 0x856   :  { %4359 = vmatprep.subr.bf16.mxu0 %v4126_v13  ;;  %4523 = vmatprep.subr.bf16.mxu1 %v4128_v14  ;;  %v4147_v10 = vld [vmem:[#allocation5 + $0x110] sm:$0xff]  ;;  %v4150_v40 = vld [vmem:[#allocation5 + $0x128] sm:$0xff]  ;;  %v4152_v8 = vld [vmem:[#allocation5 + $0x138] sm:$0xff] }
 0x857   :  { %v4149_v12 = vld [vmem:[#allocation5 + $0x120] sm:$0xff]  ;;  %v4151_v45 = vld [vmem:[#allocation5 + $0x130] sm:$0xff]  ;;  %v4154_v46 = vld [vmem:[#allocation5 + $0x148] sm:$0xff] }
 0x858   :  { %v4156_v25 = vld [vmem:[#allocation5 + $0x158] sm:$0xff]  ;;  %v4153_v3 = vld [vmem:[#allocation5 + $0x140] sm:$0xff]  ;;  %v4155_v6 = vld [vmem:[#allocation5 + $0x150] sm:$0xff] }
 0x859   :  { %4360 = vmatpush1.bf16.msra.mxu0 %v4125_v43  ;;  %4524 = vmatpush1.bf16.msra.mxu1 %v4127_v5  ;;  %v4158_v53 = vld [vmem:[#allocation5 + $0x168] sm:$0xff]  ;;  %v4160_v1 = vld [vmem:[#allocation5 + $0x178] sm:$0xff]  ;;  %v4157_v55 = vld [vmem:[#allocation5 + $0x160] sm:$0xff] }
 0x85a   :  { %4361 = vmatprep.subr.bf16.mxu0 %v4130_v26  ;;  %4525 = vmatprep.subr.bf16.mxu1 %v4132_v15  ;;  %v4159_v2 = vld [vmem:[#allocation5 + $0x170] sm:$0xff]  ;;  %v4162_v59 = vld [vmem:[#allocation5 + $0x188] sm:$0xff]  ;;  %v4164_v63 = vld [vmem:[#allocation5 + $0x198] sm:$0xff] }
 0x85b   :  { %v4161_v7 = vld [vmem:[#allocation5 + $0x180] sm:$0xff]  ;;  %v4163_v9 = vld [vmem:[#allocation5 + $0x190] sm:$0xff]  ;;  %v4166_v11 = vld [vmem:[#allocation5 + $0x1a8] sm:$0xff] }
 0x85c   :  { %v4168_v42 = vld [vmem:[#allocation5 + $0x1b8] sm:$0xff]  ;;  %v4165_v49 = vld [vmem:[#allocation5 + $0x1a0] sm:$0xff]  ;;  %v4167_v31 = vld [vmem:[#allocation5 + $0x1b0] sm:$0xff] }
 0x85d   :  { %4362 = vmatpush1.bf16.msra.mxu0 %v4129_v37  ;;  %4526 = vmatpush1.bf16.msra.mxu1 %v4131_v20  ;;  %v4170_v35 = vld [vmem:[#allocation5 + $0x1c8] sm:$0xff]  ;;  %v4172_v13 = vld [vmem:[#allocation5 + $0x1d8] sm:$0xff]  ;;  %v4169_v14 = vld [vmem:[#allocation5 + $0x1c0] sm:$0xff] }
 0x85e   :  { %4363 = vmatprep.subr.bf16.mxu0 %v4134_v22  ;;  %4527 = vmatprep.subr.bf16.mxu1 %v4136_v24  ;;  %v4171_v43 = vld [vmem:[#allocation5 + $0x1d0] sm:$0xff]  ;;  %v4174_v5 = vld [vmem:[#allocation5 + $0x1e8] sm:$0xff]  ;;  %v4176_v26 = vld [vmem:[#allocation5 + $0x1f8] sm:$0xff]  ;;  %v4106_v24 = vpack.c.bf16 %v4097_v29, %v4097_v29 }
 0x85f   :  { %v4173_v15 = vld [vmem:[#allocation5 + $0x1e0] sm:$0xff]  ;;  %v4175_v37 = vld [vmem:[#allocation5 + $0x1f0] sm:$0xff]  ;;  %v4178_v20 = vld [vmem:[#allocation5 + $0x208] sm:$0xff] }
 0x860   :  { %v4180_v22 = vld [vmem:[#allocation5 + $0x218] sm:$0xff]  ;;  %v4181_v54 = vld [vmem:[#allocation5 + $0x220] sm:$0xff]  ;;  %v4183_v29 = vld [vmem:[#allocation5 + $0x230] sm:$0xff] }
 0x861   :  { %4364 = vmatpush1.bf16.msra.mxu0 %v4133_v27  ;;  %4528 = vmatpush1.bf16.msra.mxu1 %v4135_v36  ;;  %v4177_v27 = vld [vmem:[#allocation5 + $0x200] sm:$0xff]  ;;  %v4179_v36 = vld [vmem:[#allocation5 + $0x210] sm:$0xff]  ;;  %v4316_v21 = vld [vmem:[#allocation5 + $0x658] sm:$0xff] }
 0x862   :  { %4365 = vmatprep.subr.bf16.mxu0 %v4138_v30  ;;  %4529 = vmatprep.subr.bf16.mxu1 %v4140_v17  ;;  %v4182_v30 = vld [vmem:[#allocation5 + $0x228] sm:$0xff]  ;;  %v4184_v17 = vld [vmem:[#allocation5 + $0x238] sm:$0xff]  ;;  %v4187_v19 = vld [vmem:[#allocation5 + $0x250] sm:$0xff] }
 0x863   :  { %v4245_v33 = vld [vmem:[#allocation5 + $0x420] sm:$0xff]  ;;  %v4251_v47 = vld [vmem:[#allocation5 + $0x450] sm:$0xff] }
 0x865   :  { %4366 = vmatpush1.bf16.msra.mxu0 %v4137_v34  ;;  %4530 = vmatpush1.bf16.msra.mxu1 %v4139_v52  ;;  %v4109_v34 = vpack.c.bf16 %v4100_v32, %v4100_v32  ;;  %v4186_v52 = vld [vmem:[#allocation5 + $0x248] sm:$0xff]  ;;  %v4192_v32 = vld [vmem:[#allocation5 + $0x278] sm:$0xff] }
 0x866   :  { %4367 = vmatprep.subr.bf16.mxu0 %v4142_v18  ;;  %4531 = vmatprep.subr.bf16.mxu1 %v4144_v23  ;;  %v4188_v18 = vld [vmem:[#allocation5 + $0x258] sm:$0xff]  ;;  %v4185_v23 = vld [vmem:[#allocation5 + $0x240] sm:$0xff] }
 0x869   :  { %4368 = vmatpush1.bf16.msra.mxu0 %v4141_v51  ;;  %4532 = vmatpush1.bf16.msra.mxu1 %v4143_v28  ;;  %v4190_v51 = vld [vmem:[#allocation5 + $0x268] sm:$0xff]  ;;  %v4189_v28 = vld [vmem:[#allocation5 + $0x260] sm:$0xff] }
 0x86a   :  { %4369 = vmatprep.subr.bf16.mxu0 %v4146_v38  ;;  %4533 = vmatprep.subr.bf16.mxu1 %v4148_v39  ;;  %v4191_v38 = vld [vmem:[#allocation5 + $0x270] sm:$0xff]  ;;  %v4194_v39 = vld [vmem:[#allocation5 + $0x288] sm:$0xff] }
 0x86d   :  { %4370 = vmatpush1.bf16.msra.mxu0 %v4145_v56  ;;  %4534 = vmatpush1.bf16.msra.mxu1 %v4147_v10  ;;  %v4196_v56 = vld [vmem:[#allocation5 + $0x298] sm:$0xff]  ;;  %v4193_v10 = vld [vmem:[#allocation5 + $0x280] sm:$0xff] }
 0x86e   :  { %4371 = vmatprep.subr.bf16.mxu0 %v4150_v40  ;;  %4535 = vmatprep.subr.bf16.mxu1 %v4152_v8  ;;  %v4195_v40 = vld [vmem:[#allocation5 + $0x290] sm:$0xff]  ;;  %v4198_v8 = vld [vmem:[#allocation5 + $0x2a8] sm:$0xff] }
 0x871   :  { %4372 = vmatpush1.bf16.msra.mxu0 %v4149_v12  ;;  %4536 = vmatpush1.bf16.msra.mxu1 %v4151_v45  ;;  %v4200_v12 = vld [vmem:[#allocation5 + $0x2b8] sm:$0xff]  ;;  %v4197_v45 = vld [vmem:[#allocation5 + $0x2a0] sm:$0xff] }
 0x872   :  { %4373 = vmatprep.subr.bf16.mxu0 %v4154_v46  ;;  %4537 = vmatprep.subr.bf16.mxu1 %v4156_v25  ;;  %v4199_v46 = vld [vmem:[#allocation5 + $0x2b0] sm:$0xff]  ;;  %v4202_v25 = vld [vmem:[#allocation5 + $0x2c8] sm:$0xff] }
 0x875   :  { %4374 = vmatpush1.bf16.msra.mxu0 %v4153_v3  ;;  %4538 = vmatpush1.bf16.msra.mxu1 %v4155_v6  ;;  %v4204_v3 = vld [vmem:[#allocation5 + $0x2d8] sm:$0xff]  ;;  %v4201_v6 = vld [vmem:[#allocation5 + $0x2c0] sm:$0xff] }
 0x876   :  { %4375 = vmatprep.subr.bf16.mxu0 %v4158_v53  ;;  %4539 = vmatprep.subr.bf16.mxu1 %v4160_v1  ;;  %v4203_v53 = vld [vmem:[#allocation5 + $0x2d0] sm:$0xff]  ;;  %v4206_v1 = vld [vmem:[#allocation5 + $0x2e8] sm:$0xff] }
 0x879   :  { %4376 = vmatpush1.bf16.msra.mxu0 %v4157_v55  ;;  %4540 = vmatpush1.bf16.msra.mxu1 %v4159_v2  ;;  %v4208_v55 = vld [vmem:[#allocation5 + $0x2f8] sm:$0xff]  ;;  %v4205_v2 = vld [vmem:[#allocation5 + $0x2e0] sm:$0xff] }
 0x87a   :  { %4377 = vmatprep.subr.bf16.mxu0 %v4162_v59  ;;  %4541 = vmatprep.subr.bf16.mxu1 %v4164_v63  ;;  %v4207_v59 = vld [vmem:[#allocation5 + $0x2f0] sm:$0xff]  ;;  %v4210_v63 = vld [vmem:[#allocation5 + $0x308] sm:$0xff] }
 0x87d   :  { %4378 = vmatpush1.bf16.msra.mxu0 %v4161_v7  ;;  %4542 = vmatpush1.bf16.msra.mxu1 %v4163_v9  ;;  %v4212_v7 = vld [vmem:[#allocation5 + $0x318] sm:$0xff]  ;;  %v4209_v9 = vld [vmem:[#allocation5 + $0x300] sm:$0xff] }
 0x87e   :  { %4379 = vmatprep.subr.bf16.mxu0 %v4166_v11  ;;  %4543 = vmatprep.subr.bf16.mxu1 %v4168_v42  ;;  %v4211_v11 = vld [vmem:[#allocation5 + $0x310] sm:$0xff]  ;;  %v4214_v42 = vld [vmem:[#allocation5 + $0x328] sm:$0xff] }
 0x881   :  { %4380 = vmatpush1.bf16.msra.mxu0 %v4165_v49  ;;  %4544 = vmatpush1.bf16.msra.mxu1 %v4167_v31  ;;  %v4216_v49 = vld [vmem:[#allocation5 + $0x338] sm:$0xff]  ;;  %v4213_v31 = vld [vmem:[#allocation5 + $0x320] sm:$0xff] }
 0x882   :  { %4381 = vmatprep.subr.bf16.mxu0 %v4170_v35  ;;  %4545 = vmatprep.subr.bf16.mxu1 %v4172_v13  ;;  %v4215_v35 = vld [vmem:[#allocation5 + $0x330] sm:$0xff]  ;;  %v4218_v13 = vld [vmem:[#allocation5 + $0x348] sm:$0xff] }
 0x885   :  { %4382 = vmatpush1.bf16.msra.mxu0 %v4169_v14  ;;  %4546 = vmatpush1.bf16.msra.mxu1 %v4171_v43  ;;  %v4220_v14 = vld [vmem:[#allocation5 + $0x358] sm:$0xff]  ;;  %v4217_v43 = vld [vmem:[#allocation5 + $0x340] sm:$0xff] }
 0x886   :  { %4383 = vmatprep.subr.bf16.mxu0 %v4174_v5  ;;  %4547 = vmatprep.subr.bf16.mxu1 %v4176_v26  ;;  %v4219_v5 = vld [vmem:[#allocation5 + $0x350] sm:$0xff]  ;;  %v4222_v26 = vld [vmem:[#allocation5 + $0x368] sm:$0xff] }
 0x889   :  { %4384 = vmatpush1.bf16.msra.mxu0 %v4173_v15  ;;  %4548 = vmatpush1.bf16.msra.mxu1 %v4175_v37  ;;  %v4224_v15 = vld [vmem:[#allocation5 + $0x378] sm:$0xff]  ;;  %v4221_v37 = vld [vmem:[#allocation5 + $0x360] sm:$0xff] }
 0x88a   :  { %4394 = vmatprep.subr.bf16.mxu0 %v4178_v20  ;;  %4558 = vmatprep.subr.bf16.mxu1 %v4180_v22  ;;  %v4223_v20 = vld [vmem:[#allocation5 + $0x370] sm:$0xff]  ;;  %v4226_v22 = vld [vmem:[#allocation5 + $0x388] sm:$0xff] }
 0x88c   :  { %4386 = vmatmul.mubr.bf16.vlgmr.msra.gmra.mrb[44].mxu0 %v4106_v24  ;;  %4550 = vmatmul.mubr.bf16.vlgmr.msra.gmra.mrb[44].mxu1 %v4106_v24  ;;  %v4228_v24 = vld [vmem:[#allocation5 + $0x398] sm:$0xff] }
 0x88d   :  { %4395 = vmatpush1.bf16.msra.mxu0 %v4177_v27  ;;  %4559 = vmatpush1.bf16.msra.mxu1 %v4179_v36  ;;  %v4225_v27 = vld [vmem:[#allocation5 + $0x380] sm:$0xff]  ;;  %v4227_v36 = vld [vmem:[#allocation5 + $0x390] sm:$0xff] }
 0x88e   :  { %4396 = vmatprep.subr.bf16.mxu0 %v4182_v30  ;;  %4560 = vmatprep.subr.bf16.mxu1 %v4184_v17  ;;  %v4230_v30 = vld [vmem:[#allocation5 + $0x3a8] sm:$0xff]  ;;  %v4232_v17 = vld [vmem:[#allocation5 + $0x3b8] sm:$0xff] }
 0x88f   :  { %4426 = vmatprep.mubr.bf16.mxu0 %v4109_v34  ;;  %4590 = vmatprep.mubr.bf16.mxu1 %v4109_v34  ;;  %v4229_v34 = vld [vmem:[#allocation5 + $0x3a0] sm:$0xff] }
 0x891   :  { %4397 = vmatpush1.bf16.msra.mxu0 %v4181_v54  ;;  %4561 = vmatpush1.bf16.msra.mxu1 %v4183_v29  ;;  %v4231_v54 = vld [vmem:[#allocation5 + $0x3b0] sm:$0xff]  ;;  %v4234_v29 = vld [vmem:[#allocation5 + $0x3c8] sm:$0xff] }
 0x892   :  { %4398 = vmatprep.subr.bf16.mxu0 %v4186_v52  ;;  %4562 = vmatprep.subr.bf16.mxu1 %v4188_v18  ;;  %v4236_v52 = vld [vmem:[#allocation5 + $0x3d8] sm:$0xff]  ;;  %v4233_v18 = vld [vmem:[#allocation5 + $0x3c0] sm:$0xff] }
 0x895   :  { %4399 = vmatpush1.bf16.msra.mxu0 %v4185_v23  ;;  %4563 = vmatpush1.bf16.msra.mxu1 %v4187_v19  ;;  %v4235_v23 = vld [vmem:[#allocation5 + $0x3d0] sm:$0xff]  ;;  %v4238_v19 = vld [vmem:[#allocation5 + $0x3e8] sm:$0xff] }
 0x896   :  { %4400 = vmatprep.subr.bf16.mxu0 %v4190_v51  ;;  %4564 = vmatprep.subr.bf16.mxu1 %v4192_v32  ;;  %v4240_v51 = vld [vmem:[#allocation5 + $0x3f8] sm:$0xff]  ;;  %v4237_v32 = vld [vmem:[#allocation5 + $0x3e0] sm:$0xff] }
 0x899   :  { %4401 = vmatpush1.bf16.msra.mxu0 %v4189_v28  ;;  %4565 = vmatpush1.bf16.msra.mxu1 %v4191_v38  ;;  %v4239_v28 = vld [vmem:[#allocation5 + $0x3f0] sm:$0xff]  ;;  %v4242_v38 = vld [vmem:[#allocation5 + $0x408] sm:$0xff] }
 0x89a   :  { %4402 = vmatprep.subr.bf16.mxu0 %v4194_v39  ;;  %4566 = vmatprep.subr.bf16.mxu1 %v4196_v56  ;;  %v4244_v39 = vld [vmem:[#allocation5 + $0x418] sm:$0xff]  ;;  %v4108_v56 = vpack.c.bf16 %v4099_v16, %v4099_v16  ;;  %v4247_v16 = vld [vmem:[#allocation5 + $0x430] sm:$0xff] }
 0x89d   :  { %4403 = vmatpush1.bf16.msra.mxu0 %v4193_v10  ;;  %4567 = vmatpush1.bf16.msra.mxu1 %v4195_v40  ;;  %v4241_v10 = vld [vmem:[#allocation5 + $0x400] sm:$0xff]  ;;  %v4243_v40 = vld [vmem:[#allocation5 + $0x410] sm:$0xff] }
 0x89e   :  { %4404 = vmatprep.subr.bf16.mxu0 %v4198_v8  ;;  %4568 = vmatprep.subr.bf16.mxu1 %v4200_v12  ;;  %v4246_v8 = vld [vmem:[#allocation5 + $0x428] sm:$0xff]  ;;  %v4248_v12 = vld [vmem:[#allocation5 + $0x438] sm:$0xff] }
 0x8a1   :  { %4405 = vmatpush1.bf16.msra.mxu0 %v4197_v45  ;;  %4569 = vmatpush1.bf16.msra.mxu1 %v4199_v46  ;;  %v4111_v45 = vpack.c.bf16 %v4102_v50, %v4102_v50  ;;  %v4250_v46 = vld [vmem:[#allocation5 + $0x448] sm:$0xff]  ;;  %v4256_v50 = vld [vmem:[#allocation5 + $0x478] sm:$0xff] }
 0x8a2   :  { %4406 = vmatprep.subr.bf16.mxu0 %v4202_v25  ;;  %4570 = vmatprep.subr.bf16.mxu1 %v4204_v3  ;;  %v4252_v25 = vld [vmem:[#allocation5 + $0x458] sm:$0xff]  ;;  %v4249_v3 = vld [vmem:[#allocation5 + $0x440] sm:$0xff] }
 0x8a5   :  { %4407 = vmatpush1.bf16.msra.mxu0 %v4201_v6  ;;  %4571 = vmatpush1.bf16.msra.mxu1 %v4203_v53  ;;  %v4254_v6 = vld [vmem:[#allocation5 + $0x468] sm:$0xff]  ;;  %v4253_v53 = vld [vmem:[#allocation5 + $0x460] sm:$0xff] }
 0x8a6   :  { %4408 = vmatprep.subr.bf16.mxu0 %v4206_v1  ;;  %4572 = vmatprep.subr.bf16.mxu1 %v4208_v55  ;;  %v4255_v1 = vld [vmem:[#allocation5 + $0x470] sm:$0xff]  ;;  %v4258_v55 = vld [vmem:[#allocation5 + $0x488] sm:$0xff] }
 0x8a9   :  { %4409 = vmatpush1.bf16.msra.mxu0 %v4205_v2  ;;  %4573 = vmatpush1.bf16.msra.mxu1 %v4207_v59  ;;  %v4260_v2 = vld [vmem:[#allocation5 + $0x498] sm:$0xff]  ;;  %v4257_v59 = vld [vmem:[#allocation5 + $0x480] sm:$0xff] }
 0x8aa   :  { %4410 = vmatprep.subr.bf16.mxu0 %v4210_v63  ;;  %4574 = vmatprep.subr.bf16.mxu1 %v4212_v7  ;;  %v4259_v63 = vld [vmem:[#allocation5 + $0x490] sm:$0xff]  ;;  %v4262_v7 = vld [vmem:[#allocation5 + $0x4a8] sm:$0xff] }
 0x8ad   :  { %4411 = vmatpush1.bf16.msra.mxu0 %v4209_v9  ;;  %4575 = vmatpush1.bf16.msra.mxu1 %v4211_v11  ;;  %v4264_v9 = vld [vmem:[#allocation5 + $0x4b8] sm:$0xff]  ;;  %v4261_v11 = vld [vmem:[#allocation5 + $0x4a0] sm:$0xff] }
 0x8ae   :  { %4412 = vmatprep.subr.bf16.mxu0 %v4214_v42  ;;  %4576 = vmatprep.subr.bf16.mxu1 %v4216_v49  ;;  %v4263_v42 = vld [vmem:[#allocation5 + $0x4b0] sm:$0xff]  ;;  %v4266_v49 = vld [vmem:[#allocation5 + $0x4c8] sm:$0xff] }
 0x8b1   :  { %4413 = vmatpush1.bf16.msra.mxu0 %v4213_v31  ;;  %4577 = vmatpush1.bf16.msra.mxu1 %v4215_v35  ;;  %v4268_v31 = vld [vmem:[#allocation5 + $0x4d8] sm:$0xff]  ;;  %v4265_v35 = vld [vmem:[#allocation5 + $0x4c0] sm:$0xff] }
 0x8b2   :  { %4414 = vmatprep.subr.bf16.mxu0 %v4218_v13  ;;  %4578 = vmatprep.subr.bf16.mxu1 %v4220_v14  ;;  %v4267_v13 = vld [vmem:[#allocation5 + $0x4d0] sm:$0xff]  ;;  %v4270_v14 = vld [vmem:[#allocation5 + $0x4e8] sm:$0xff] }
 0x8b5   :  { %4415 = vmatpush1.bf16.msra.mxu0 %v4217_v43  ;;  %4579 = vmatpush1.bf16.msra.mxu1 %v4219_v5  ;;  %v4272_v43 = vld [vmem:[#allocation5 + $0x4f8] sm:$0xff]  ;;  %v4269_v5 = vld [vmem:[#allocation5 + $0x4e0] sm:$0xff] }
 0x8b6   :  { %4416 = vmatprep.subr.bf16.mxu0 %v4222_v26  ;;  %4580 = vmatprep.subr.bf16.mxu1 %v4224_v15  ;;  %v4271_v26 = vld [vmem:[#allocation5 + $0x4f0] sm:$0xff]  ;;  %v4274_v15 = vld [vmem:[#allocation5 + $0x508] sm:$0xff] }
 0x8b9   :  { %4417 = vmatpush1.bf16.msra.mxu0 %v4221_v37  ;;  %4581 = vmatpush1.bf16.msra.mxu1 %v4223_v20  ;;  %v4276_v37 = vld [vmem:[#allocation5 + $0x518] sm:$0xff]  ;;  %v4273_v20 = vld [vmem:[#allocation5 + $0x500] sm:$0xff] }
 0x8ba   :  { %4418 = vmatprep.subr.bf16.mxu0 %v4226_v22  ;;  %4582 = vmatprep.subr.bf16.mxu1 %v4228_v24  ;;  %v4275_v22 = vld [vmem:[#allocation5 + $0x510] sm:$0xff]  ;;  %v4278_v24 = vld [vmem:[#allocation5 + $0x528] sm:$0xff] }
 0x8bd   :  { %4419 = vmatpush1.bf16.msra.mxu0 %v4225_v27  ;;  %4583 = vmatpush1.bf16.msra.mxu1 %v4227_v36  ;;  %v4280_v27 = vld [vmem:[#allocation5 + $0x538] sm:$0xff]  ;;  %v4277_v36 = vld [vmem:[#allocation5 + $0x520] sm:$0xff] }
 0x8be   :  { %4420 = vmatprep.subr.bf16.mxu0 %v4230_v30  ;;  %4584 = vmatprep.subr.bf16.mxu1 %v4232_v17  ;;  %v4279_v30 = vld [vmem:[#allocation5 + $0x530] sm:$0xff]  ;;  %v4282_v17 = vld [vmem:[#allocation5 + $0x548] sm:$0xff] }
 0x8c1   :  { %4421 = vmatpush1.bf16.msra.mxu0 %v4229_v34  ;;  %4585 = vmatpush1.bf16.msra.mxu1 %v4231_v54  ;;  %v4284_v34 = vld [vmem:[#allocation5 + $0x558] sm:$0xff]  ;;  %v4281_v54 = vld [vmem:[#allocation5 + $0x540] sm:$0xff] }
 0x8c2   :  { %4422 = vmatprep.subr.bf16.mxu0 %v4234_v29  ;;  %4586 = vmatprep.subr.bf16.mxu1 %v4236_v52  ;;  %v4283_v29 = vld [vmem:[#allocation5 + $0x550] sm:$0xff]  ;;  %v4286_v52 = vld [vmem:[#allocation5 + $0x568] sm:$0xff] }
 0x8c5   :  { %4423 = vmatpush1.bf16.msra.mxu0 %v4233_v18  ;;  %4587 = vmatpush1.bf16.msra.mxu1 %v4235_v23  ;;  %v4288_v18 = vld [vmem:[#allocation5 + $0x578] sm:$0xff]  ;;  %v4285_v23 = vld [vmem:[#allocation5 + $0x560] sm:$0xff] }
 0x8c6   :  { %4424 = vmatprep.subr.bf16.mxu0 %v4238_v19  ;;  %4588 = vmatprep.subr.bf16.mxu1 %v4240_v51  ;;  %v4287_v19 = vld [vmem:[#allocation5 + $0x570] sm:$0xff]  ;;  %v4290_v51 = vld [vmem:[#allocation5 + $0x588] sm:$0xff] }
 0x8c9   :  { %4425 = vmatpush1.bf16.msra.mxu0 %v4237_v32  ;;  %4589 = vmatpush1.bf16.msra.mxu1 %v4239_v28  ;;  %v4292_v32 = vld [vmem:[#allocation5 + $0x598] sm:$0xff]  ;;  %v4289_v28 = vld [vmem:[#allocation5 + $0x580] sm:$0xff] }
 0x8ca   :  { %4435 = vmatprep.subr.bf16.mxu0 %v4242_v38  ;;  %4599 = vmatprep.subr.bf16.mxu1 %v4244_v39  ;;  %v4291_v38 = vld [vmem:[#allocation5 + $0x590] sm:$0xff]  ;;  %v4294_v39 = vld [vmem:[#allocation5 + $0x5a8] sm:$0xff] }
 0x8cc   :  { %4427 = vmatmul.mubr.bf16.vlgmr.msra.gmra.mrb[44].mxu0 %v4108_v56  ;;  %4591 = vmatmul.mubr.bf16.vlgmr.msra.gmra.mrb[44].mxu1 %v4108_v56  ;;  %v4296_v56 = vld [vmem:[#allocation5 + $0x5b8] sm:$0xff] }
 0x8cd   :  { %4436 = vmatpush1.bf16.msra.mxu0 %v4241_v10  ;;  %4600 = vmatpush1.bf16.msra.mxu1 %v4243_v40  ;;  %v4293_v10 = vld [vmem:[#allocation5 + $0x5a0] sm:$0xff]  ;;  %v4295_v40 = vld [vmem:[#allocation5 + $0x5b0] sm:$0xff] }
 0x8ce   :  { %4437 = vmatprep.subr.bf16.mxu0 %v4246_v8  ;;  %4601 = vmatprep.subr.bf16.mxu1 %v4248_v12  ;;  %v4298_v8 = vld [vmem:[#allocation5 + $0x5c8] sm:$0xff]  ;;  %v4300_v12 = vld [vmem:[#allocation5 + $0x5d8] sm:$0xff] }
 0x8cf   :  { %4467 = vmatprep.mubr.bf16.mxu0 %v4111_v45  ;;  %4631 = vmatprep.mubr.bf16.mxu1 %v4111_v45  ;;  %v4297_v45 = vld [vmem:[#allocation5 + $0x5c0] sm:$0xff] }
 0x8d1   :  { %4438 = vmatpush1.bf16.msra.mxu0 %v4245_v33  ;;  %4602 = vmatpush1.bf16.msra.mxu1 %v4247_v16  ;;  %v4299_v33 = vld [vmem:[#allocation5 + $0x5d0] sm:$0xff]  ;;  %v4302_v16 = vld [vmem:[#allocation5 + $0x5e8] sm:$0xff] }
 0x8d2   :  { %4439 = vmatprep.subr.bf16.mxu0 %v4250_v46  ;;  %4603 = vmatprep.subr.bf16.mxu1 %v4252_v25  ;;  %v4304_v46 = vld [vmem:[#allocation5 + $0x5f8] sm:$0xff]  ;;  %v4301_v25 = vld [vmem:[#allocation5 + $0x5e0] sm:$0xff] }
 0x8d5   :  { %4440 = vmatpush1.bf16.msra.mxu0 %v4249_v3  ;;  %4604 = vmatpush1.bf16.msra.mxu1 %v4251_v47  ;;  %v4303_v3 = vld [vmem:[#allocation5 + $0x5f0] sm:$0xff]  ;;  %v4306_v47 = vld [vmem:[#allocation5 + $0x608] sm:$0xff] }
 0x8d6   :  { %4441 = vmatprep.subr.bf16.mxu0 %v4254_v6  ;;  %4605 = vmatprep.subr.bf16.mxu1 %v4256_v50  ;;  %v4308_v6 = vld [vmem:[#allocation5 + $0x618] sm:$0xff]  ;;  %v4110_v50 = vpack.c.bf16 %v4101_v48, %v4101_v48  ;;  %v4313_v48 = vld [vmem:[#allocation5 + $0x640] sm:$0xff] }
 0x8d9   :  { %4442 = vmatpush1.bf16.msra.mxu0 %v4253_v53  ;;  %4606 = vmatpush1.bf16.msra.mxu1 %v4255_v1  ;;  %v4305_v53 = vld [vmem:[#allocation5 + $0x600] sm:$0xff]  ;;  %v4307_v1 = vld [vmem:[#allocation5 + $0x610] sm:$0xff] }
 0x8da   :  { %4443 = vmatprep.subr.bf16.mxu0 %v4258_v55  ;;  %4607 = vmatprep.subr.bf16.mxu1 %v4260_v2  ;;  %v4310_v55 = vld [vmem:[#allocation5 + $0x628] sm:$0xff]  ;;  %v4312_v2 = vld [vmem:[#allocation5 + $0x638] sm:$0xff] }
 0x8dd   :  { %4444 = vmatpush1.bf16.msra.mxu0 %v4257_v59  ;;  %4608 = vmatpush1.bf16.msra.mxu1 %v4259_v63  ;;  %v4309_v59 = vld [vmem:[#allocation5 + $0x620] sm:$0xff]  ;;  %v4311_v63 = vld [vmem:[#allocation5 + $0x630] sm:$0xff] }
 0x8de   :  { %4445 = vmatprep.subr.bf16.mxu0 %v4262_v7  ;;  %4609 = vmatprep.subr.bf16.mxu1 %v4264_v9  ;;  %v4314_v7 = vld [vmem:[#allocation5 + $0x648] sm:$0xff]  ;;  %v4315_v9 = vld [vmem:[#allocation5 + $0x650] sm:$0xff] }
 0x8e1   :  { %4446 = vmatpush1.bf16.msra.mxu0 %v4261_v11  ;;  %4610 = vmatpush1.bf16.msra.mxu1 %v4263_v42  ;;  %v4318_v11 = vld [vmem:[#allocation5 + $0x668] sm:$0xff]  ;;  %v4320_v42 = vld [vmem:[#allocation5 + $0x678] sm:$0xff] }
 0x8e2   :  { %4447 = vmatprep.subr.bf16.mxu0 %v4266_v49  ;;  %4611 = vmatprep.subr.bf16.mxu1 %v4268_v31  ;;  %v4317_v49 = vld [vmem:[#allocation5 + $0x660] sm:$0xff]  ;;  %v4319_v31 = vld [vmem:[#allocation5 + $0x670] sm:$0xff] }
 0x8e5   :  { %4448 = vmatpush1.bf16.msra.mxu0 %v4265_v35  ;;  %4612 = vmatpush1.bf16.msra.mxu1 %v4267_v13  ;;  %v4322_v35 = vld [vmem:[#allocation5 + $0x688] sm:$0xff]  ;;  %v4324_v13 = vld [vmem:[#allocation5 + $0x698] sm:$0xff] }
 0x8e6   :  { %4449 = vmatprep.subr.bf16.mxu0 %v4270_v14  ;;  %4613 = vmatprep.subr.bf16.mxu1 %v4272_v43  ;;  %v4323_v14 = vld [vmem:[#allocation5 + $0x690] sm:$0xff]  ;;  %v4326_v43 = vld [vmem:[#allocation5 + $0x6a8] sm:$0xff] }
 0x8e9   :  { %4450 = vmatpush1.bf16.msra.mxu0 %v4269_v5  ;;  %4614 = vmatpush1.bf16.msra.mxu1 %v4271_v26  ;;  %v4328_v5 = vld [vmem:[#allocation5 + $0x6b8] sm:$0xff]  ;;  %v4325_v26 = vld [vmem:[#allocation5 + $0x6a0] sm:$0xff] }
 0x8ea   :  { %4451 = vmatprep.subr.bf16.mxu0 %v4274_v15  ;;  %4615 = vmatprep.subr.bf16.mxu1 %v4276_v37  ;;  %v4327_v15 = vld [vmem:[#allocation5 + $0x6b0] sm:$0xff]  ;;  %v4330_v37 = vld [vmem:[#allocation5 + $0x6c8] sm:$0xff] }
 0x8ed   :  { %4452 = vmatpush1.bf16.msra.mxu0 %v4273_v20  ;;  %4616 = vmatpush1.bf16.msra.mxu1 %v4275_v22  ;;  %v4332_v20 = vld [vmem:[#allocation5 + $0x6d8] sm:$0xff]  ;;  %v4329_v22 = vld [vmem:[#allocation5 + $0x6c0] sm:$0xff] }
 0x8ee   :  { %4453 = vmatprep.subr.bf16.mxu0 %v4278_v24  ;;  %4617 = vmatprep.subr.bf16.mxu1 %v4280_v27  ;;  %v4331_v24 = vld [vmem:[#allocation5 + $0x6d0] sm:$0xff]  ;;  %v4334_v27 = vld [vmem:[#allocation5 + $0x6e8] sm:$0xff] }
 0x8f1   :  { %4454 = vmatpush1.bf16.msra.mxu0 %v4277_v36  ;;  %4618 = vmatpush1.bf16.msra.mxu1 %v4279_v30  ;;  %v4336_v36 = vld [vmem:[#allocation5 + $0x6f8] sm:$0xff]  ;;  %v4333_v30 = vld [vmem:[#allocation5 + $0x6e0] sm:$0xff] }
 0x8f2   :  { %4455 = vmatprep.subr.bf16.mxu0 %v4282_v17  ;;  %4619 = vmatprep.subr.bf16.mxu1 %v4284_v34  ;;  %v4335_v17 = vld [vmem:[#allocation5 + $0x6f0] sm:$0xff]  ;;  %v4112_v34 = vpack.c.bf16 %v4103_v44, %v4103_v44 }
 0x8f5   :  { %4456 = vmatpush1.bf16.msra.mxu0 %v4281_v54  ;;  %4620 = vmatpush1.bf16.msra.mxu1 %v4283_v29  ;;  %v4339_v54 = vsub.s32 5, %v6246_v58 }
 0x8f6   :  { %4457 = vmatprep.subr.bf16.mxu0 %v4286_v52  ;;  %4621 = vmatprep.subr.bf16.mxu1 %v4288_v18 }
 0x8f7   :  { %v4340_v29 = vrot.slane %v6252_v60, %v4339_v54  ;;  %v4348_v52 = vrot.slane %v6257_v61, %v4339_v54  ;;  %v4344_v18 = vrot.slane %v6262_v62, %v4339_v54 }
 0x8f9   :  { %4458 = vmatpush1.bf16.msra.mxu0 %v4285_v23  ;;  %4622 = vmatpush1.bf16.msra.mxu1 %v4287_v19  ;;  %v4352_v23 = vrot.slane %v6267_v4, %v4339_v54 }
 0x8fa   :  { %4459 = vmatprep.subr.bf16.mxu0 %v4290_v51  ;;  %4623 = vmatprep.subr.bf16.mxu1 %v4292_v32 }
 0x8fd   :  { %4460 = vmatpush1.bf16.msra.mxu0 %v4289_v28  ;;  %4624 = vmatpush1.bf16.msra.mxu1 %v4291_v38 }
 0x8fe   :  { %4461 = vmatprep.subr.bf16.mxu0 %v4294_v39  ;;  %4625 = vmatprep.subr.bf16.mxu1 %v4296_v56 }
 0x901   :  { %4462 = vmatpush1.bf16.msra.mxu0 %v4293_v10  ;;  %4626 = vmatpush1.bf16.msra.mxu1 %v4295_v40 }
 0x902   :  { %4463 = vmatprep.subr.bf16.mxu0 %v4298_v8  ;;  %4627 = vmatprep.subr.bf16.mxu1 %v4300_v12 }
 0x905   :  { %4464 = vmatpush1.bf16.msra.mxu0 %v4297_v45  ;;  %4628 = vmatpush1.bf16.msra.mxu1 %v4299_v33 }
 0x906   :  { %4465 = vmatprep.subr.bf16.mxu0 %v4302_v16  ;;  %4629 = vmatprep.subr.bf16.mxu1 %v4304_v46 }
 0x909   :  { %4466 = vmatpush1.bf16.msra.mxu0 %v4301_v25  ;;  %4630 = vmatpush1.bf16.msra.mxu1 %v4303_v3 }
 0x90a   :  { %4476 = vmatprep.subr.bf16.mxu0 %v4306_v47  ;;  %4640 = vmatprep.subr.bf16.mxu1 %v4308_v6 }
 0x90c   :  { %4468 = vmatmul.mubr.bf16.vlgmr.msra.gmra.mrb[44].mxu0 %v4110_v50  ;;  %4632 = vmatmul.mubr.bf16.vlgmr.msra.gmra.mrb[44].mxu1 %v4110_v50 }
 0x90d   :  { %4477 = vmatpush1.bf16.msra.mxu0 %v4305_v53  ;;  %4641 = vmatpush1.bf16.msra.mxu1 %v4307_v1 }
 0x90e   :  { %4478 = vmatprep.subr.bf16.mxu0 %v4310_v55  ;;  %4642 = vmatprep.subr.bf16.mxu1 %v4312_v2 }
 0x90f   :  { %4508 = vmatprep.mubr.bf16.mxu0 %v6032_v0  ;;  %4672 = vmatprep.mubr.bf16.mxu1 %v6032_v0  ;;  %v4321_v0 = vld [vmem:[#allocation5 + $0x680] sm:$0xff] }
 0x911   :  { %4479 = vmatpush1.bf16.msra.mxu0 %v4309_v59  ;;  %4643 = vmatpush1.bf16.msra.mxu1 %v4311_v63 }
 0x912   :  { %4480 = vmatprep.subr.bf16.mxu0 %v4314_v7  ;;  %4644 = vmatprep.subr.bf16.mxu1 %v4316_v21 }
 0x915   :  { %4481 = vmatpush1.bf16.msra.mxu0 %v4313_v48  ;;  %4645 = vmatpush1.bf16.msra.mxu1 %v4315_v9 }
 0x916   :  { %4482 = vmatprep.subr.bf16.mxu0 %v4318_v11  ;;  %4646 = vmatprep.subr.bf16.mxu1 %v4320_v42 }
 0x919   :  { %4483 = vmatpush1.bf16.msra.mxu0 %v4317_v49  ;;  %4647 = vmatpush1.bf16.msra.mxu1 %v4319_v31 }
 0x91a   :  { %4484 = vmatprep.subr.bf16.mxu0 %v4322_v35  ;;  %4648 = vmatprep.subr.bf16.mxu1 %v4324_v13 }
 0x91d   :  { %4485 = vmatpush1.bf16.msra.mxu0 %v4321_v0  ;;  %4649 = vmatpush1.bf16.msra.mxu1 %v4323_v14 }
 0x91e   :  { %4486 = vmatprep.subr.bf16.mxu0 %v4326_v43  ;;  %4650 = vmatprep.subr.bf16.mxu1 %v4328_v5 }
 0x921   :  { %4487 = vmatpush1.bf16.msra.mxu0 %v4325_v26  ;;  %4651 = vmatpush1.bf16.msra.mxu1 %v4327_v15 }
 0x922   :  { %4488 = vmatprep.subr.bf16.mxu0 %v4330_v37  ;;  %4652 = vmatprep.subr.bf16.mxu1 %v4332_v20 }
 0x925   :  { %4489 = vmatpush1.bf16.msra.mxu0 %v4329_v22  ;;  %4653 = vmatpush1.bf16.msra.mxu1 %v4331_v24 }
 0x926   :  { %4490 = vmatprep.subr.bf16.mxu0 %v4334_v27  ;;  %4654 = vmatprep.subr.bf16.mxu1 %v4336_v36 }
 0x929   :  { %4491 = vmatpush1.bf16.msra.mxu0 %v4333_v30  ;;  %4655 = vmatpush1.bf16.msra.mxu1 %v4335_v17 }
 0x92c   :  { %4509 = vmatmul.mubr.bf16.vlgmr.msra.gmra.mrb[44].mxu0 %v4112_v34  ;;  %4673 = vmatmul.mubr.bf16.vlgmr.msra.gmra.mrb[44].mxu1 %v4112_v34 }
 0x9ff   :  { %v4510_v19 = vpop.f32.mrb[44].mxu0  ;;  %v4674_v51 = vpop.f32.mrb[44].mxu1 }
 0xa00   :  { %v6479_v32 = vadd.f32 %v4510_v19, %v4340_v29  ;;  %v6481_v41 = vadd.f32 %v4674_v51, %v4348_v52  ;;  %v4512_v44 = vpop.f32.mrb[45].mxu0  ;;  %v4676_v28 = vpop.f32.mrb[45].mxu1 }
 0xa01   :  { %v5626_v38 = vadd.f32 %v4512_v44, %v4344_v18  ;;  %v6483_v39 = vadd.f32 %v4676_v28, %v4352_v23  ;;  %v4514_v56 = vpop.f32.mrb[46].mxu0  ;;  %v4678_v10 = vpop.f32.mrb[46].mxu1 }
 0xa02   :  { %v4681_v40 = vmax.f32 %v6479_v32, 0.0  ;;  %v4683_v8 = vmax.f32 %v6481_v41, 0.0  ;;  %v4515_v12 = vpop.f32.mrb[47].mxu0  ;;  %v4679_v45 = vpop.f32.mrb[47].mxu1 }
 0xa03   :  { %v4682_v33 = vmax.f32 %v5626_v38, 0.0  ;;  %v4684_v16 = vmax.f32 %v6483_v39, 0.0 }
 0xa04   :  { %6021 = dma.done.wait [#allocation8 + $0x4], 16384 }
 0xa05   :  { %6022 = vsyncadd [#allocation8 + $0x4], 4294950912  ;;  %v4689_v46 = vpack.c.bf16 %v4682_v33, %v4682_v33  ;;  %v4693_v25 = vld [vmem:[#allocation6 + $0x8] sm:$0xff]  ;;  %v4695_v3 = vld [vmem:[#allocation6 + $0x18] sm:$0xff] }
 0xa06   :  { %v4692_v47 = vld [vmem:[#allocation6] sm:$0xff]  ;;  %4836 = vmatprep.subr.bf16.mxu0 %v4693_v25  ;;  %4918 = vmatprep.subr.bf16.mxu1 %v4695_v3  ;;  %v4694_v6 = vld [vmem:[#allocation6 + $0x10] sm:$0xff]  ;;  %v4697_v50 = vld [vmem:[#allocation6 + $0x28] sm:$0xff] }
 0xa07   :  { %4868 = vmatprep.mubr.bf16.mxu0 %v4689_v46  ;;  %4950 = vmatprep.mubr.bf16.mxu1 %v4689_v46  ;;  %v4699_v53 = vld [vmem:[#allocation6 + $0x38] sm:$0xff]  ;;  %v4696_v1 = vld [vmem:[#allocation6 + $0x20] sm:$0xff]  ;;  %v4698_v55 = vld [vmem:[#allocation6 + $0x30] sm:$0xff] }
 0xa08   :  { %4837 = vmatpush1.bf16.msra.mxu0 %v4692_v47  ;;  %4919 = vmatpush1.bf16.msra.mxu1 %v4694_v6  ;;  %v4701_v2 = vld [vmem:[#allocation6 + $0x48] sm:$0xff]  ;;  %v4703_v59 = vld [vmem:[#allocation6 + $0x58] sm:$0xff]  ;;  %v4700_v63 = vld [vmem:[#allocation6 + $0x40] sm:$0xff] }
 0xa09   :  { %4838 = vmatprep.subr.bf16.mxu0 %v4697_v50  ;;  %4920 = vmatprep.subr.bf16.mxu1 %v4699_v53  ;;  %v4702_v7 = vld [vmem:[#allocation6 + $0x50] sm:$0xff]  ;;  %v4705_v21 = vld [vmem:[#allocation6 + $0x68] sm:$0xff]  ;;  %v4707_v48 = vld [vmem:[#allocation6 + $0x78] sm:$0xff] }
 0xa0a   :  { %v4704_v9 = vld [vmem:[#allocation6 + $0x60] sm:$0xff]  ;;  %v4706_v11 = vld [vmem:[#allocation6 + $0x70] sm:$0xff]  ;;  %v4709_v42 = vld [vmem:[#allocation6 + $0x88] sm:$0xff] }
 0xa0b   :  { %v4711_v49 = vld [vmem:[#allocation6 + $0x98] sm:$0xff]  ;;  %v4708_v31 = vld [vmem:[#allocation6 + $0x80] sm:$0xff]  ;;  %v4710_v35 = vld [vmem:[#allocation6 + $0x90] sm:$0xff] }
 0xa0c   :  { %4839 = vmatpush1.bf16.msra.mxu0 %v4696_v1  ;;  %4921 = vmatpush1.bf16.msra.mxu1 %v4698_v55  ;;  %v4713_v13 = vld [vmem:[#allocation6 + $0xa8] sm:$0xff]  ;;  %v4715_v0 = vld [vmem:[#allocation6 + $0xb8] sm:$0xff]  ;;  %v4712_v14 = vld [vmem:[#allocation6 + $0xa0] sm:$0xff] }
 0xa0d   :  { %4840 = vmatprep.subr.bf16.mxu0 %v4701_v2  ;;  %4922 = vmatprep.subr.bf16.mxu1 %v4703_v59  ;;  %v4714_v43 = vld [vmem:[#allocation6 + $0xb0] sm:$0xff]  ;;  %v4717_v5 = vld [vmem:[#allocation6 + $0xc8] sm:$0xff]  ;;  %v4719_v26 = vld [vmem:[#allocation6 + $0xd8] sm:$0xff] }
 0xa0e   :  { %v4716_v15 = vld [vmem:[#allocation6 + $0xc0] sm:$0xff]  ;;  %v4718_v37 = vld [vmem:[#allocation6 + $0xd0] sm:$0xff]  ;;  %v4721_v20 = vld [vmem:[#allocation6 + $0xe8] sm:$0xff] }
 0xa0f   :  { %v4723_v22 = vld [vmem:[#allocation6 + $0xf8] sm:$0xff]  ;;  %v4720_v24 = vld [vmem:[#allocation6 + $0xe0] sm:$0xff]  ;;  %v4722_v27 = vld [vmem:[#allocation6 + $0xf0] sm:$0xff] }
 0xa10   :  { %4841 = vmatpush1.bf16.msra.mxu0 %v4700_v63  ;;  %4923 = vmatpush1.bf16.msra.mxu1 %v4702_v7  ;;  %v4725_v36 = vld [vmem:[#allocation6 + $0x108] sm:$0xff]  ;;  %v4727_v30 = vld [vmem:[#allocation6 + $0x118] sm:$0xff]  ;;  %v4724_v17 = vld [vmem:[#allocation6 + $0x100] sm:$0xff] }
 0xa11   :  { %4842 = vmatprep.subr.bf16.mxu0 %v4705_v21  ;;  %4924 = vmatprep.subr.bf16.mxu1 %v4707_v48  ;;  %v4726_v34 = vld [vmem:[#allocation6 + $0x110] sm:$0xff]  ;;  %v4729_v54 = vld [vmem:[#allocation6 + $0x128] sm:$0xff]  ;;  %v4731_v29 = vld [vmem:[#allocation6 + $0x138] sm:$0xff] }
 0xa12   :  { %v4728_v52 = vld [vmem:[#allocation6 + $0x120] sm:$0xff]  ;;  %v4730_v18 = vld [vmem:[#allocation6 + $0x130] sm:$0xff]  ;;  %v4733_v23 = vld [vmem:[#allocation6 + $0x148] sm:$0xff] }
 0xa13   :  { %v4735_v19 = vld [vmem:[#allocation6 + $0x158] sm:$0xff]  ;;  %v4732_v51 = vld [vmem:[#allocation6 + $0x140] sm:$0xff]  ;;  %v4734_v44 = vld [vmem:[#allocation6 + $0x150] sm:$0xff] }
 0xa14   :  { %4843 = vmatpush1.bf16.msra.mxu0 %v4704_v9  ;;  %4925 = vmatpush1.bf16.msra.mxu1 %v4706_v11  ;;  %v4737_v28 = vld [vmem:[#allocation6 + $0x168] sm:$0xff]  ;;  %v4739_v38 = vld [vmem:[#allocation6 + $0x178] sm:$0xff]  ;;  %v4736_v56 = vld [vmem:[#allocation6 + $0x160] sm:$0xff]  ;;  %v4688_v9 = vpack.c.bf16 %v4681_v40, %v4681_v40 }
 0xa15   :  { %4844 = vmatprep.subr.bf16.mxu0 %v4709_v42  ;;  %4926 = vmatprep.subr.bf16.mxu1 %v4711_v49  ;;  %v4738_v10 = vld [vmem:[#allocation6 + $0x170] sm:$0xff]  ;;  %v4741_v12 = vld [vmem:[#allocation6 + $0x188] sm:$0xff]  ;;  %v4743_v45 = vld [vmem:[#allocation6 + $0x198] sm:$0xff] }
 0xa16   :  { %v4740_v33 = vld [vmem:[#allocation6 + $0x180] sm:$0xff]  ;;  %v4742_v46 = vld [vmem:[#allocation6 + $0x190] sm:$0xff]  ;;  %v4745_v25 = vld [vmem:[#allocation6 + $0x1a8] sm:$0xff] }
 0xa17   :  { %v4747_v3 = vld [vmem:[#allocation6 + $0x1b8] sm:$0xff]  ;;  %v4744_v47 = vld [vmem:[#allocation6 + $0x1a0] sm:$0xff]  ;;  %v4746_v6 = vld [vmem:[#allocation6 + $0x1b0] sm:$0xff] }
 0xa18   :  { %4845 = vmatpush1.bf16.msra.mxu0 %v4708_v31  ;;  %4927 = vmatpush1.bf16.msra.mxu1 %v4710_v35  ;;  %v4749_v50 = vld [vmem:[#allocation6 + $0x1c8] sm:$0xff]  ;;  %v4751_v53 = vld [vmem:[#allocation6 + $0x1d8] sm:$0xff]  ;;  %v4748_v1 = vld [vmem:[#allocation6 + $0x1c0] sm:$0xff]  ;;  %v4691_v35 = vpack.c.bf16 %v4684_v16, %v4684_v16 }
 0xa19   :  { %4846 = vmatprep.subr.bf16.mxu0 %v4713_v13  ;;  %4928 = vmatprep.subr.bf16.mxu1 %v4715_v0  ;;  %v4750_v55 = vld [vmem:[#allocation6 + $0x1d0] sm:$0xff]  ;;  %v4753_v2 = vld [vmem:[#allocation6 + $0x1e8] sm:$0xff]  ;;  %v4755_v59 = vld [vmem:[#allocation6 + $0x1f8] sm:$0xff] }
 0xa1a   :  { %v4752_v63 = vld [vmem:[#allocation6 + $0x1e0] sm:$0xff]  ;;  %v4754_v7 = vld [vmem:[#allocation6 + $0x1f0] sm:$0xff]  ;;  %v4757_v21 = vld [vmem:[#allocation6 + $0x208] sm:$0xff] }
 0xa1b   :  { %v4759_v48 = vld [vmem:[#allocation6 + $0x218] sm:$0xff]  ;;  %v4756_v11 = vld [vmem:[#allocation6 + $0x200] sm:$0xff]  ;;  %v4758_v42 = vld [vmem:[#allocation6 + $0x210] sm:$0xff] }
 0xa1c   :  { %4847 = vmatpush1.bf16.msra.mxu0 %v4712_v14  ;;  %4929 = vmatpush1.bf16.msra.mxu1 %v4714_v43  ;;  %v4761_v49 = vld [vmem:[#allocation6 + $0x228] sm:$0xff]  ;;  %v4763_v31 = vld [vmem:[#allocation6 + $0x238] sm:$0xff]  ;;  %v4760_v32 = vld [vmem:[#allocation6 + $0x220] sm:$0xff] }
 0xa1d   :  { %4848 = vmatprep.subr.bf16.mxu0 %v4717_v5  ;;  %4930 = vmatprep.subr.bf16.mxu1 %v4719_v26  ;;  %v4762_v40 = vld [vmem:[#allocation6 + $0x230] sm:$0xff]  ;;  %v4765_v13 = vld [vmem:[#allocation6 + $0x248] sm:$0xff]  ;;  %v4767_v0 = vld [vmem:[#allocation6 + $0x258] sm:$0xff] }
 0xa1e   :  { %v4764_v14 = vld [vmem:[#allocation6 + $0x240] sm:$0xff]  ;;  %v4766_v39 = vld [vmem:[#allocation6 + $0x250] sm:$0xff]  ;;  %v4769_v43 = vld [vmem:[#allocation6 + $0x268] sm:$0xff] }
 0xa1f   :  { %v4771_v16 = vld [vmem:[#allocation6 + $0x278] sm:$0xff]  ;;  %v4768_v5 = vld [vmem:[#allocation6 + $0x260] sm:$0xff]  ;;  %v4770_v26 = vld [vmem:[#allocation6 + $0x270] sm:$0xff] }
 0xa20   :  { %4849 = vmatpush1.bf16.msra.mxu0 %v4716_v15  ;;  %4931 = vmatpush1.bf16.msra.mxu1 %v4718_v37  ;;  %v4773_v15 = vld [vmem:[#allocation6 + $0x288] sm:$0xff]  ;;  %v4775_v37 = vld [vmem:[#allocation6 + $0x298] sm:$0xff] }
 0xa21   :  { %4850 = vmatprep.subr.bf16.mxu0 %v4721_v20  ;;  %4932 = vmatprep.subr.bf16.mxu1 %v4723_v22  ;;  %v4772_v20 = vld [vmem:[#allocation6 + $0x280] sm:$0xff]  ;;  %v4774_v22 = vld [vmem:[#allocation6 + $0x290] sm:$0xff] }
 0xa24   :  { %4851 = vmatpush1.bf16.msra.mxu0 %v4720_v24  ;;  %4933 = vmatpush1.bf16.msra.mxu1 %v4722_v27  ;;  %v4777_v24 = vld [vmem:[#allocation6 + $0x2a8] sm:$0xff]  ;;  %v4779_v27 = vld [vmem:[#allocation6 + $0x2b8] sm:$0xff] }
 0xa25   :  { %4852 = vmatprep.subr.bf16.mxu0 %v4725_v36  ;;  %4934 = vmatprep.subr.bf16.mxu1 %v4727_v30  ;;  %v4776_v36 = vld [vmem:[#allocation6 + $0x2a0] sm:$0xff]  ;;  %v4778_v30 = vld [vmem:[#allocation6 + $0x2b0] sm:$0xff] }
 0xa28   :  { %4853 = vmatpush1.bf16.msra.mxu0 %v4724_v17  ;;  %4935 = vmatpush1.bf16.msra.mxu1 %v4726_v34  ;;  %v4781_v17 = vld [vmem:[#allocation6 + $0x2c8] sm:$0xff]  ;;  %v4783_v34 = vld [vmem:[#allocation6 + $0x2d8] sm:$0xff] }
 0xa29   :  { %4854 = vmatprep.subr.bf16.mxu0 %v4729_v54  ;;  %4936 = vmatprep.subr.bf16.mxu1 %v4731_v29  ;;  %v4780_v54 = vld [vmem:[#allocation6 + $0x2c0] sm:$0xff]  ;;  %v4782_v29 = vld [vmem:[#allocation6 + $0x2d0] sm:$0xff] }
 0xa2c   :  { %4855 = vmatpush1.bf16.msra.mxu0 %v4728_v52  ;;  %4937 = vmatpush1.bf16.msra.mxu1 %v4730_v18  ;;  %v4785_v52 = vld [vmem:[#allocation6 + $0x2e8] sm:$0xff]  ;;  %v4787_v18 = vld [vmem:[#allocation6 + $0x2f8] sm:$0xff] }
 0xa2d   :  { %4856 = vmatprep.subr.bf16.mxu0 %v4733_v23  ;;  %4938 = vmatprep.subr.bf16.mxu1 %v4735_v19  ;;  %v4784_v23 = vld [vmem:[#allocation6 + $0x2e0] sm:$0xff]  ;;  %v4786_v19 = vld [vmem:[#allocation6 + $0x2f0] sm:$0xff] }
 0xa30   :  { %4857 = vmatpush1.bf16.msra.mxu0 %v4732_v51  ;;  %4939 = vmatpush1.bf16.msra.mxu1 %v4734_v44  ;;  %v4789_v51 = vld [vmem:[#allocation6 + $0x308] sm:$0xff]  ;;  %v4791_v44 = vld [vmem:[#allocation6 + $0x318] sm:$0xff] }
 0xa31   :  { %4858 = vmatprep.subr.bf16.mxu0 %v4737_v28  ;;  %4940 = vmatprep.subr.bf16.mxu1 %v4739_v38  ;;  %v4788_v28 = vld [vmem:[#allocation6 + $0x300] sm:$0xff]  ;;  %v4790_v38 = vld [vmem:[#allocation6 + $0x310] sm:$0xff] }
 0xa34   :  { %4859 = vmatpush1.bf16.msra.mxu0 %v4736_v56  ;;  %4941 = vmatpush1.bf16.msra.mxu1 %v4738_v10  ;;  %v4793_v56 = vld [vmem:[#allocation6 + $0x328] sm:$0xff]  ;;  %v4795_v10 = vld [vmem:[#allocation6 + $0x338] sm:$0xff] }
 0xa35   :  { %4860 = vmatprep.subr.bf16.mxu0 %v4741_v12  ;;  %4942 = vmatprep.subr.bf16.mxu1 %v4743_v45  ;;  %v4792_v12 = vld [vmem:[#allocation6 + $0x320] sm:$0xff]  ;;  %v4794_v45 = vld [vmem:[#allocation6 + $0x330] sm:$0xff] }
 0xa38   :  { %4861 = vmatpush1.bf16.msra.mxu0 %v4740_v33  ;;  %4943 = vmatpush1.bf16.msra.mxu1 %v4742_v46  ;;  %v4797_v33 = vld [vmem:[#allocation6 + $0x348] sm:$0xff]  ;;  %v4799_v46 = vld [vmem:[#allocation6 + $0x358] sm:$0xff] }
 0xa39   :  { %4862 = vmatprep.subr.bf16.mxu0 %v4745_v25  ;;  %4944 = vmatprep.subr.bf16.mxu1 %v4747_v3  ;;  %v4796_v25 = vld [vmem:[#allocation6 + $0x340] sm:$0xff]  ;;  %v4798_v3 = vld [vmem:[#allocation6 + $0x350] sm:$0xff] }
 0xa3c   :  { %4863 = vmatpush1.bf16.msra.mxu0 %v4744_v47  ;;  %4945 = vmatpush1.bf16.msra.mxu1 %v4746_v6  ;;  %v4801_v47 = vld [vmem:[#allocation6 + $0x368] sm:$0xff]  ;;  %v4803_v6 = vld [vmem:[#allocation6 + $0x378] sm:$0xff] }
 0xa3d   :  { %4864 = vmatprep.subr.bf16.mxu0 %v4749_v50  ;;  %4946 = vmatprep.subr.bf16.mxu1 %v4751_v53  ;;  %v4800_v50 = vld [vmem:[#allocation6 + $0x360] sm:$0xff]  ;;  %v4802_v53 = vld [vmem:[#allocation6 + $0x370] sm:$0xff] }
 0xa40   :  { %4865 = vmatpush1.bf16.msra.mxu0 %v4748_v1  ;;  %4947 = vmatpush1.bf16.msra.mxu1 %v4750_v55  ;;  %v4805_v1 = vld [vmem:[#allocation6 + $0x388] sm:$0xff]  ;;  %v4807_v55 = vld [vmem:[#allocation6 + $0x398] sm:$0xff] }
 0xa41   :  { %4866 = vmatprep.subr.bf16.mxu0 %v4753_v2  ;;  %4948 = vmatprep.subr.bf16.mxu1 %v4755_v59  ;;  %v4804_v2 = vld [vmem:[#allocation6 + $0x380] sm:$0xff]  ;;  %v4806_v59 = vld [vmem:[#allocation6 + $0x390] sm:$0xff] }
 0xa44   :  { %4867 = vmatpush1.bf16.msra.mxu0 %v4752_v63  ;;  %4949 = vmatpush1.bf16.msra.mxu1 %v4754_v7  ;;  %v4809_v63 = vld [vmem:[#allocation6 + $0x3a8] sm:$0xff]  ;;  %v4811_v7 = vld [vmem:[#allocation6 + $0x3b8] sm:$0xff] }
 0xa45   :  { %4877 = vmatprep.subr.bf16.mxu0 %v4757_v21  ;;  %4959 = vmatprep.subr.bf16.mxu1 %v4759_v48  ;;  %v4808_v21 = vld [vmem:[#allocation6 + $0x3a0] sm:$0xff]  ;;  %v4810_v48 = vld [vmem:[#allocation6 + $0x3b0] sm:$0xff] }
 0xa47   :  { %4869 = vmatmul.mubr.bf16.vlgmr.msra.gmra.mrb[48].mxu0 %v4688_v9  ;;  %4951 = vmatmul.mubr.bf16.vlgmr.msra.gmra.mrb[48].mxu1 %v4688_v9  ;;  %v4813_v9 = vld [vmem:[#allocation6 + $0x3c8] sm:$0xff] }
 0xa48   :  { %4878 = vmatpush1.bf16.msra.mxu0 %v4756_v11  ;;  %4960 = vmatpush1.bf16.msra.mxu1 %v4758_v42  ;;  %v4815_v11 = vld [vmem:[#allocation6 + $0x3d8] sm:$0xff]  ;;  %v4812_v42 = vld [vmem:[#allocation6 + $0x3c0] sm:$0xff] }
 0xa49   :  { %4879 = vmatprep.subr.bf16.mxu0 %v4761_v49  ;;  %4961 = vmatprep.subr.bf16.mxu1 %v4763_v31  ;;  %v4814_v49 = vld [vmem:[#allocation6 + $0x3d0] sm:$0xff]  ;;  %v4817_v31 = vld [vmem:[#allocation6 + $0x3e8] sm:$0xff] }
 0xa4a   :  { %4909 = vmatprep.mubr.bf16.mxu0 %v4691_v35  ;;  %4991 = vmatprep.mubr.bf16.mxu1 %v4691_v35  ;;  %v4819_v35 = vld [vmem:[#allocation6 + $0x3f8] sm:$0xff] }
 0xa4c   :  { %4880 = vmatpush1.bf16.msra.mxu0 %v4760_v32  ;;  %4962 = vmatpush1.bf16.msra.mxu1 %v4762_v40  ;;  %v4816_v32 = vld [vmem:[#allocation6 + $0x3e0] sm:$0xff]  ;;  %v4818_v40 = vld [vmem:[#allocation6 + $0x3f0] sm:$0xff] }
 0xa4d   :  { %4881 = vmatprep.subr.bf16.mxu0 %v4765_v13  ;;  %4963 = vmatprep.subr.bf16.mxu1 %v4767_v0  ;;  %v4690_v13 = vpack.c.bf16 %v4683_v8, %v4683_v8  ;;  %v4822_v0 = vsub.s32 6, %v6246_v58 }
 0xa50   :  { %4882 = vmatpush1.bf16.msra.mxu0 %v4764_v14  ;;  %4964 = vmatpush1.bf16.msra.mxu1 %v4766_v39  ;;  %v4823_v14 = vrot.slane %v6252_v60, %v4822_v0  ;;  %v4831_v39 = vrot.slane %v6257_v61, %v4822_v0 }
 0xa51   :  { %4883 = vmatprep.subr.bf16.mxu0 %v4769_v43  ;;  %4965 = vmatprep.subr.bf16.mxu1 %v4771_v16  ;;  %v4827_v43 = vrot.slane %v6262_v62, %v4822_v0  ;;  %v4835_v16 = vrot.slane %v6267_v4, %v4822_v0 }
 0xa54   :  { %4884 = vmatpush1.bf16.msra.mxu0 %v4768_v5  ;;  %4966 = vmatpush1.bf16.msra.mxu1 %v4770_v26 }
 0xa55   :  { %4885 = vmatprep.subr.bf16.mxu0 %v4773_v15  ;;  %4967 = vmatprep.subr.bf16.mxu1 %v4775_v37 }
 0xa58   :  { %4886 = vmatpush1.bf16.msra.mxu0 %v4772_v20  ;;  %4968 = vmatpush1.bf16.msra.mxu1 %v4774_v22 }
 0xa59   :  { %4887 = vmatprep.subr.bf16.mxu0 %v4777_v24  ;;  %4969 = vmatprep.subr.bf16.mxu1 %v4779_v27 }
 0xa5c   :  { %4888 = vmatpush1.bf16.msra.mxu0 %v4776_v36  ;;  %4970 = vmatpush1.bf16.msra.mxu1 %v4778_v30 }
 0xa5d   :  { %4889 = vmatprep.subr.bf16.mxu0 %v4781_v17  ;;  %4971 = vmatprep.subr.bf16.mxu1 %v4783_v34 }
 0xa60   :  { %4890 = vmatpush1.bf16.msra.mxu0 %v4780_v54  ;;  %4972 = vmatpush1.bf16.msra.mxu1 %v4782_v29 }
 0xa61   :  { %4891 = vmatprep.subr.bf16.mxu0 %v4785_v52  ;;  %4973 = vmatprep.subr.bf16.mxu1 %v4787_v18 }
 0xa64   :  { %4892 = vmatpush1.bf16.msra.mxu0 %v4784_v23  ;;  %4974 = vmatpush1.bf16.msra.mxu1 %v4786_v19 }
 0xa65   :  { %4893 = vmatprep.subr.bf16.mxu0 %v4789_v51  ;;  %4975 = vmatprep.subr.bf16.mxu1 %v4791_v44 }
 0xa68   :  { %4894 = vmatpush1.bf16.msra.mxu0 %v4788_v28  ;;  %4976 = vmatpush1.bf16.msra.mxu1 %v4790_v38 }
 0xa69   :  { %4895 = vmatprep.subr.bf16.mxu0 %v4793_v56  ;;  %4977 = vmatprep.subr.bf16.mxu1 %v4795_v10 }
 0xa6c   :  { %4896 = vmatpush1.bf16.msra.mxu0 %v4792_v12  ;;  %4978 = vmatpush1.bf16.msra.mxu1 %v4794_v45 }
 0xa6d   :  { %4897 = vmatprep.subr.bf16.mxu0 %v4797_v33  ;;  %4979 = vmatprep.subr.bf16.mxu1 %v4799_v46 }
 0xa70   :  { %4898 = vmatpush1.bf16.msra.mxu0 %v4796_v25  ;;  %4980 = vmatpush1.bf16.msra.mxu1 %v4798_v3 }
 0xa71   :  { %4899 = vmatprep.subr.bf16.mxu0 %v4801_v47  ;;  %4981 = vmatprep.subr.bf16.mxu1 %v4803_v6 }
 0xa74   :  { %4900 = vmatpush1.bf16.msra.mxu0 %v4800_v50  ;;  %4982 = vmatpush1.bf16.msra.mxu1 %v4802_v53 }
 0xa75   :  { %4901 = vmatprep.subr.bf16.mxu0 %v4805_v1  ;;  %4983 = vmatprep.subr.bf16.mxu1 %v4807_v55 }
 0xa78   :  { %4902 = vmatpush1.bf16.msra.mxu0 %v4804_v2  ;;  %4984 = vmatpush1.bf16.msra.mxu1 %v4806_v59 }
 0xa79   :  { %4903 = vmatprep.subr.bf16.mxu0 %v4809_v63  ;;  %4985 = vmatprep.subr.bf16.mxu1 %v4811_v7 }
 0xa7c   :  { %4904 = vmatpush1.bf16.msra.mxu0 %v4808_v21  ;;  %4986 = vmatpush1.bf16.msra.mxu1 %v4810_v48 }
 0xa7d   :  { %4905 = vmatprep.subr.bf16.mxu0 %v4813_v9  ;;  %4987 = vmatprep.subr.bf16.mxu1 %v4815_v11 }
 0xa80   :  { %4906 = vmatpush1.bf16.msra.mxu0 %v4812_v42  ;;  %4988 = vmatpush1.bf16.msra.mxu1 %v4814_v49 }
 0xa81   :  { %4907 = vmatprep.subr.bf16.mxu0 %v4817_v31  ;;  %4989 = vmatprep.subr.bf16.mxu1 %v4819_v35 }
 0xa84   :  { %4908 = vmatpush1.bf16.msra.mxu0 %v4816_v32  ;;  %4990 = vmatpush1.bf16.msra.mxu1 %v4818_v40 }
 0xa87   :  { %4910 = vmatmul.mubr.bf16.vlgmr.msra.gmra.mrb[48].mxu0 %v4690_v13  ;;  %4992 = vmatmul.mubr.bf16.vlgmr.msra.gmra.mrb[48].mxu1 %v4690_v13 }
 0xb5a   :  { %v4911_v5 = vpop.f32.mrb[48].mxu0  ;;  %v4993_v26 = vpop.f32.mrb[48].mxu1 }
 0xb5b   :  { %v6502_v15 = vadd.f32 %v4911_v5, %v4823_v14  ;;  %v6504_v41 = vadd.f32 %v4993_v26, %v4831_v39  ;;  %v4913_v8 = vpop.f32.mrb[49].mxu0  ;;  %v4995_v37 = vpop.f32.mrb[49].mxu1 }
 0xb5c   :  { %v5630_v20 = vadd.f32 %v4913_v8, %v4827_v43  ;;  %v5632_v22 = vadd.f32 %v4995_v37, %v4835_v16  ;;  %v4915_v24 = vpop.f32.mrb[50].mxu0  ;;  %v4997_v27 = vpop.f32.mrb[50].mxu1 }
 0xb5d   :  { %v5000_v36 = vmax.f32 %v6502_v15, 0.0  ;;  %v5002_v61 = vmax.f32 %v6504_v41, 0.0  ;;  %v4916_v30 = vpop.f32.mrb[51].mxu0  ;;  %v4998_v62 = vpop.f32.mrb[51].mxu1 }
 0xb5e   :  { %v5001_v17 = vmax.f32 %v5630_v20, 0.0  ;;  %v5003_v4 = vmax.f32 %v5632_v22, 0.0 }
 0xb5f   :  { %6023 = dma.done.wait [#allocation8 + $0x5], 4096 }
 0xb60   :  { %6024 = vsyncadd [#allocation8 + $0x5], 4294963200  ;;  %v5008_v34 = vpack.c.bf16 %v5001_v17, %v5001_v17  ;;  %v5010_v54 = vpack.c.bf16 %v5003_v4, %v5003_v4  ;;  %v5019_v29 = vld [vmem:[#allocation7 + $0x40] sm:$0xff]  ;;  %v5020_v19 = vld [vmem:[#allocation7 + $0x48] sm:$0xff]  ;;  %v5007_v49 = vpack.c.bf16 %v5000_v36, %v5000_v36  ;;  %v5009_v31 = vpack.c.bf16 %v5002_v61, %v5002_v61 }
 0xb61   :  { %v5035_v52 = vld [vmem:[#allocation7 + $0xc0] sm:$0xff]  ;;  %5561 = vmatprep.subr.bf16.mxu0 %v5019_v29  ;;  %v5036_v51 = vld [vmem:[#allocation7 + $0xc8] sm:$0xff]  ;;  %v5021_v38 = vld [vmem:[#allocation7 + $0x50] sm:$0xff]  ;;  %v5045_v35 = vsub.s32 7, %v6246_v58  ;;  %v5130_v37 = vand.u32 127, %v1357_v57  ;;  %vm5147_vm0 = vcmask 7168  }
 0xb62   :  { %5079 = vmatprep.mubr.bf16.mxu0 %v5008_v34  ;;  %5119 = vmatprep.mubr.bf16.mxu1 %v5010_v54  ;;  %v5011_v18 = vld [vmem:[#allocation7] sm:$0xff]  ;;  %v5012_v44 = vld [vmem:[#allocation7 + $0x8] sm:$0xff]  ;;  %v5037_v56 = vld [vmem:[#allocation7 + $0xd0] sm:$0xff] }
 0xb63   :  { %5583 = vmatprep.subr.bf16.mxu1 %v5035_v52  ;;  %v5027_v23 = vld [vmem:[#allocation7 + $0x80] sm:$0xff]  ;;  %5562 = vmatpush3.bf16.msra.mxu0 %v5011_v18  ;;  %v5028_v28 = vld [vmem:[#allocation7 + $0x88] sm:$0xff]  ;;  %v5013_v10 = vld [vmem:[#allocation7 + $0x10] sm:$0xff]  ;;  %v5046_v13 = vrot.slane %v6252_v60, %v5045_v35 }
 0xb64   :  { %5584 = vmatpush3.bf16.msra.mxu1 %v5027_v23  ;;  %5563 = vmatprep.subr.bf16.mxu0 %v5020_v19  ;;  %v5029_v12 = vld [vmem:[#allocation7 + $0x90] sm:$0xff]  ;;  %v5022_v45 = vld [vmem:[#allocation7 + $0x58] sm:$0xff]  ;;  %v5023_v3 = vld [vmem:[#allocation7 + $0x60] sm:$0xff] }
 0xb65   :  { %5585 = vmatprep.subr.bf16.mxu1 %v5036_v51  ;;  %v5038_v33 = vld [vmem:[#allocation7 + $0xd8] sm:$0xff]  ;;  %v5039_v47 = vld [vmem:[#allocation7 + $0xe0] sm:$0xff]  ;;  %v5024_v53 = vld [vmem:[#allocation7 + $0x68] sm:$0xff] }
 0xb66   :  { %v5014_v46 = vld [vmem:[#allocation7 + $0x18] sm:$0xff]  ;;  %v5015_v6 = vld [vmem:[#allocation7 + $0x20] sm:$0xff]  ;;  %v5040_v1 = vld [vmem:[#allocation7 + $0xe8] sm:$0xff] }
 0xb67   :  { %5564 = vmatpush3.bf16.msra.mxu0 %v5012_v44  ;;  %v5030_v25 = vld [vmem:[#allocation7 + $0x98] sm:$0xff]  ;;  %v5031_v50 = vld [vmem:[#allocation7 + $0xa0] sm:$0xff]  ;;  %v5016_v55 = vld [vmem:[#allocation7 + $0x28] sm:$0xff] }
 0xb68   :  { %5586 = vmatpush3.bf16.msra.mxu1 %v5028_v28  ;;  %5565 = vmatprep.subr.bf16.mxu0 %v5021_v38  ;;  %v5032_v2 = vld [vmem:[#allocation7 + $0xa8] sm:$0xff]  ;;  %v5025_v59 = vld [vmem:[#allocation7 + $0x70] sm:$0xff]  ;;  %v5026_v48 = vld [vmem:[#allocation7 + $0x78] sm:$0xff] }
 0xb69   :  { %5587 = vmatprep.subr.bf16.mxu1 %v5037_v56  ;;  %v5041_v63 = vld [vmem:[#allocation7 + $0xf0] sm:$0xff]  ;;  %v5042_v9 = vld [vmem:[#allocation7 + $0xf8] sm:$0xff] }
 0xb6a   :  { %v5017_v7 = vld [vmem:[#allocation7 + $0x30] sm:$0xff]  ;;  %v5018_v11 = vld [vmem:[#allocation7 + $0x38] sm:$0xff] }
 0xb6b   :  { %5566 = vmatpush3.bf16.msra.mxu0 %v5013_v10  ;;  %v5033_v21 = vld [vmem:[#allocation7 + $0xb0] sm:$0xff]  ;;  %v5034_v42 = vld [vmem:[#allocation7 + $0xb8] sm:$0xff] }
 0xb6c   :  { %5588 = vmatpush3.bf16.msra.mxu1 %v5029_v12  ;;  %5567 = vmatprep.subr.bf16.mxu0 %v5022_v45 }
 0xb6d   :  { %5589 = vmatprep.subr.bf16.mxu1 %v5038_v33 }
 0xb6f   :  { %5568 = vmatpush3.bf16.msra.mxu0 %v5014_v46 }
 0xb70   :  { %5590 = vmatpush3.bf16.msra.mxu1 %v5030_v25  ;;  %5569 = vmatprep.subr.bf16.mxu0 %v5023_v3 }
 0xb71   :  { %5591 = vmatprep.subr.bf16.mxu1 %v5039_v47 }
 0xb73   :  { %5570 = vmatpush3.bf16.msra.mxu0 %v5015_v6 }
 0xb74   :  { %5592 = vmatpush3.bf16.msra.mxu1 %v5031_v50  ;;  %5571 = vmatprep.subr.bf16.mxu0 %v5024_v53 }
 0xb75   :  { %5593 = vmatprep.subr.bf16.mxu1 %v5040_v1 }
 0xb77   :  { %5572 = vmatpush3.bf16.msra.mxu0 %v5016_v55 }
 0xb78   :  { %5594 = vmatpush3.bf16.msra.mxu1 %v5032_v2  ;;  %5573 = vmatprep.subr.bf16.mxu0 %v5025_v59 }
 0xb79   :  { %5595 = vmatprep.subr.bf16.mxu1 %v5041_v63 }
 0xb7b   :  { %5574 = vmatpush3.bf16.msra.mxu0 %v5017_v7 }
 0xb7c   :  { %5596 = vmatpush3.bf16.msra.mxu1 %v5033_v21  ;;  %5575 = vmatprep.subr.bf16.mxu0 %v5026_v48 }
 0xb7d   :  { %5597 = vmatprep.subr.bf16.mxu1 %v5042_v9 }
 0xb7f   :  { %5576 = vmatpush3.bf16.msra.mxu0 %v5018_v11 }
 0xb80   :  { %5598 = vmatpush3.bf16.msra.mxu1 %v5034_v42 }
 0xb82   :  { %5080 = vmatmul.mubr.bf16.vlgmr.msra.gmra.mrb[52].mxu0 %v5007_v49 }
 0xb83   :  { %5120 = vmatmul.mubr.bf16.vlgmr.msra.gmra.mrb[52].mxu1 %v5009_v31 }
 0xc55   :  { %v5577_v32 = vpop.f32.mrb[52].mxu0 }
 0xc56   :  { %v5599_v40 = vpop.f32.mrb[52].mxu1  ;;  %v5578_v0 = vpop.f32.mrb[53].mxu0 }
 0xc57   :  { %v5600_v14 = vpop.f32.mrb[53].mxu1  ;;  %v5579_v39 = vadd.f32 %v5578_v0, %v5577_v32  ;;  %v5580_v16 = vpop.f32.mrb[54].mxu0 }
 0xc58   :  { %v5601_v43 = vadd.f32 %v5600_v14, %v5599_v40  ;;  %v5602_v5 = vpop.f32.mrb[54].mxu1  ;;  %v5581_v26 = vpop.f32.mrb[55].mxu0 }
 0xc59   :  { %v5603_v15 = vpop.f32.mrb[55].mxu1  ;;  %v5082_v41 = vadd.f32 %v5579_v39, %v5046_v13 }
 0xc5b   :  { %v5122_v8 = vadd.f32 %v5601_v43, %v5082_v41 }
 0xc5d   :  { %5127 = vmax.xlane.f32.xlu0 %v5122_v8 }
 0xcea   :  { %v5128_v20 = vpop.xlane.xlu0 %5127 }
 0xceb   :  { %vm5131_vm1 = vcmp.eq.f32.partialorder %v5122_v8, %v5128_v20  ;;  %5148 = vst.msk [vmem:[%s6535_s10] sm:$0xff] %vm5147_vm0, %v5128_v20 }
 0xcec   :  { %v5132_v58 = vsel %vm5131_vm1, %v5130_v37, 128 }
 0xced   :  { %v5134_v60 = vshra.s32 %v5132_v58, 16  ;;  %v5133_v24 = vand.u32 65535, %v5132_v58 }
 0xcef   :  { %v5136_v22 = vcvt.s32.f32 %v5134_v60  ;;  %v5135_v36 = vcvt.s32.f32 %v5133_v24 }
 0xcf1   :  { %5137 = vmin.xlane.f32.xlu0 %v5136_v22 }
 0xd7e   :  { %v5138_v27 = vpop.xlane.xlu0 %5137 }
 0xd7f   :  { %vm5139_vm2 = vcmp.eq.f32.partialorder %v5136_v22, %v5138_v27  ;;  %v5144_v30 = vcvt.f32.s32 %v5138_v27 }
 0xd80   :  { %v5140_v61 = vsel %vm5139_vm2, %v5135_v36, inf }
 0xd81   :  { %5141 = vmin.xlane.f32.xlu1 %v5140_v61  ;;  %v5145_v62 = vshll.u32 %v5144_v30, 16 }
 0xe0e   :  { %v5142_v57 = vpop.xlane.xlu1 %5141 }
 0xe0f   :  { %v5143_v17 = vcvt.f32.s32 %v5142_v57 }
 0xe11   :  { %v5146_v4 = vadd.s32 %v5145_v62, %v5143_v17 }
 0xe13   :  { %5149 = vst.msk [vmem:[%s6536_s11] sm:$0xff] %vm5147_vm0, %v5146_v4 }
 0xe14   :  { %5158 = vsyncpa [#allocation10], 1 }
 0xe15   :  { %5159 = vsyncpa [#allocation12], 1 }
 0xe16   :  { %5160 = vsyncmov [#allocation8] }
 0xe19   :  { %s5161_s10 = vpop.sfrf %5160 }
 0xe1a   :  { %p5467_p10 = scmp.ne.s32.totalorder %s5161_s10, 0 }
 0xe1c   :  { %5165 = shalt.err (%p5467_p10)  }
 0xe1d   :  { %5167 = vsyncmov [#allocation8 + $0x1] }
 0xe20   :  { %s5168_s16 = vpop.sfrf %5167 }
 0xe21   :  { %p5468_p11 = scmp.ne.s32.totalorder %s5168_s16, 0 }
 0xe23   :  { %5172 = shalt.err (%p5468_p11)  }
 0xe24   :  { %5174 = vsyncmov [#allocation8 + $0x2] }
 0xe27   :  { %s5175_s1 = vpop.sfrf %5174 }
 0xe28   :  { %p5469_p12 = scmp.ne.s32.totalorder %s5175_s1, 0 }
 0xe2a   :  { %5179 = shalt.err (%p5469_p12)  }
 0xe2b   :  { %5181 = vsyncmov [#allocation8 + $0x3] }
 0xe2e   :  { %s5182_s28 = vpop.sfrf %5181 }
 0xe2f   :  { %p5470_p13 = scmp.ne.s32.totalorder %s5182_s28, 0 }
 0xe31   :  { %5186 = shalt.err (%p5470_p13)  }
 0xe32   :  { %5188 = vsyncmov [#allocation8 + $0x4] }
 0xe35   :  { %s5189_s11 = vpop.sfrf %5188 }
 0xe36   :  { %p5471_p0 = scmp.ne.s32.totalorder %s5189_s11, 0 }
 0xe38   :  { %5193 = shalt.err (%p5471_p0)  }
 0xe39   :  { %5195 = vsyncmov [#allocation8 + $0x5] }
 0xe3c   :  { %s5196_s8 = vpop.sfrf %5195 }
 0xe3d   :  { %p5472_p1 = scmp.ne.s32.totalorder %s5196_s8, 0 }
 0xe3f   :  { %5200 = shalt.err (%p5472_p1)  }

</bundles_post_ra>
